<compile_context>
chip_gen: v5e
topology: v5e:2x2
jax: 0.10.0
libtpu: 0.0.40
codegen_flags: <defaults>
</compile_context>

<pallas_src>
import jax
import jax.numpy as jnp
from jax import lax
from jax.experimental import pallas as pl
from jax.experimental.pallas import tpu as pltpu


# ---------------------------------------------------------------------------
# Fused whole-DoubleRes kernel: one grid step == one batch element.
# ---------------------------------------------------------------------------

def _double_res_kernel(x_ref, w11_ref, w12_ref, wp_ref, w21_ref, w22_ref,
                       b_ref, o_ref, xp_ref, ap_ref, zp_ref):
    """Two fused Residual blocks on a VMEM-resident, lane-folded volume.

    x_ref   : (1, D, H, W*Cin)  bf16  input volume (W and C folded on lanes)
    w11_ref : (9, W*Cin, W*C)   bf16  banded weights, residual-1 conv1
    w12_ref : (9, W*C,  W*C)    bf16  banded weights, residual-1 conv2
    wp_ref  : (W*Cin, W*C)      bf16  folded 1x1x1 projection shortcut
    w21_ref : (9, W*C,  W*C)    bf16  banded weights, residual-2 conv1
    w22_ref : (9, W*C,  W*C)    bf16  banded weights, residual-2 conv2
    b_ref   : (5, 1, W*C)       f32   folded biases (b11, b12, bproj, b21, b22)
    o_ref   : (1, D*H, W*C)     f32   output volume
    xp/ap/zp: (D+2, H+2, .)     f32   zero-haloed VMEM scratch volumes
    """
    f32, bf16 = jnp.float32, jnp.bfloat16
    dp, hp, kin = xp_ref.shape
    d, h = dp - 2, hp - 2
    kc = ap_ref.shape[2]                       # W * C (folded lane width)

    def conv3x3x3(pad_ref, w_ref):
        """Zero-padded 3x3x3 conv as 9 MXU matmuls over (kd, kh) shifts.

        The kw taps and the W-axis zero padding live inside the banded weight
        blocks, so only D/H shifts (cheap outer/sublane-dim slices of the
        padded VMEM buffer) are needed here.
        """
        k_in = pad_ref.shape[2]
        acc = jnp.zeros((d * h, kc), f32)
        for kd in range(3):
            for kh in range(3):
                lhs = (pad_ref[kd:kd + d, kh:kh + h, :]
                       .reshape(d * h, k_in).astype(bf16))
                acc = acc + jnp.dot(lhs, w_ref[kd * 3 + kh],
                                    preferred_element_type=f32)
        return acc

    # Zero the halo rings once; only the interiors are (over)written below.
    xp_ref[...] = jnp.zeros_like(xp_ref)
    ap_ref[...] = jnp.zeros_like(ap_ref)
    zp_ref[...] = jnp.zeros_like(zp_ref)

    xp_ref[1:1 + d, 1:1 + h, :] = x_ref[0].astype(f32)

    # ---- Residual 1: conv1 + tanh ----------------------------------------
    t1 = jnp.tanh(conv3x3x3(xp_ref, w11_ref) + b_ref[0])
    ap_ref[1:1 + d, 1:1 + h, :] = t1.reshape(d, h, kc)

    # ---- Residual 1: conv2 + 1x1x1 projection shortcut + tanh -------------
    y1 = conv3x3x3(ap_ref, w12_ref) + b_ref[1]
    x_flat = xp_ref[1:1 + d, 1:1 + h, :].reshape(d * h, kin).astype(bf16)
    sc = jnp.dot(x_flat, wp_ref[...], preferred_element_type=f32) + b_ref[2]
    z1 = jnp.tanh(y1 + sc)
    zp_ref[1:1 + d, 1:1 + h, :] = z1.reshape(d, h, kc)

    # ---- Residual 2: conv1 + tanh ----------------------------------------
    t2 = jnp.tanh(conv3x3x3(zp_ref, w21_ref) + b_ref[3])
    ap_ref[1:1 + d, 1:1 + h, :] = t2.reshape(d, h, kc)

    # ---- Residual 2: conv2 + identity shortcut + tanh ---------------------
    y2 = conv3x3x3(ap_ref, w22_ref) + b_ref[4]
    o_ref[0] = jnp.tanh(y2 + z1).astype(o_ref.dtype)


# ---------------------------------------------------------------------------
# Wrapper-side weight folding (one-time layout plumbing, tiny arrays).
# ---------------------------------------------------------------------------

def _fold_conv3_weight(wk, w_size):
    """(3,3,3,Ci,Co) DHWIO kernel -> (9, W*Ci, W*Co) banded weight blocks.

    Block kd*3+kh maps the lane-folded row x[d+kd-1, h+kh-1, :, :] (width W*Ci)
    to the lane-folded output row y[d, h, :, :] (width W*Co); the kw taps and
    the W-axis zero padding are encoded in the band structure.
    """
    _, _, _, ci, co = wk.shape
    blocks = []
    for kd in range(3):
        for kh in range(3):
            m = jnp.zeros((w_size * ci, w_size * co), wk.dtype)
            for kw in range(3):
                # selector[w_in, w_out] = 1  iff  w_in == w_out + kw - 1
                sel = jnp.eye(w_size, k=1 - kw, dtype=wk.dtype)
                m = m + jnp.kron(sel, wk[kd, kh, kw])
            blocks.append(m)
    return jnp.stack(blocks)


def _fold_proj_weight(wp, w_size):
    """(1,1,1,Ci,Co) 1x1x1 kernel -> (W*Ci, W*Co) block-diagonal matrix."""
    ci, co = wp.shape[-2], wp.shape[-1]
    return jnp.kron(jnp.eye(w_size, dtype=wp.dtype), wp.reshape(ci, co))


def _fold_bias(b, w_size):
    """(Co,) -> (1, W*Co): bias replicated once per folded W position."""
    return jnp.tile(b, w_size).reshape(1, w_size * b.shape[0])


# ---------------------------------------------------------------------------
# Host wrappers.
# ---------------------------------------------------------------------------

def double_res_ndhwc(x_ndhwc, params):
    """DoubleRes forward, NDHWC in / NDHWC out, one fused pallas_call."""
    n, d, h, w, cin = x_ndhwc.shape
    c = params["r1_b1"].shape[0]
    assert params["r1_w1"].shape[-2:] == (cin, c)
    assert params["r1_w2"].shape[-2:] == (c, c)
    assert params["r1_w3"].shape[-2:] == (cin, c)
    assert params["r2_w1"].shape[-2:] == (c, c)
    assert params["r2_w2"].shape[-2:] == (c, c)
    # Keeps the in-kernel (D, H, .) <-> (D*H, .) reshapes layout-trivial
    # (H rows == whole sublane tiles).
    assert h % 8 == 0, "this fused kernel assumes H to be a multiple of 8"

    bf16 = jnp.bfloat16
    kin, kc = w * cin, w * c

    # Streamed operands: bf16 (halves HBM/DMA bytes, native MXU dtype).
    x_in = x_ndhwc.reshape(n, d, h, kin).astype(bf16)
    w11 = _fold_conv3_weight(params["r1_w1"], w).astype(bf16)
    w12 = _fold_conv3_weight(params["r1_w2"], w).astype(bf16)
    wpj = _fold_proj_weight(params["r1_w3"], w).astype(bf16)
    w21 = _fold_conv3_weight(params["r2_w1"], w).astype(bf16)
    w22 = _fold_conv3_weight(params["r2_w2"], w).astype(bf16)
    biases = jnp.stack([
        _fold_bias(params["r1_b1"], w), _fold_bias(params["r1_b2"], w),
        _fold_bias(params["r1_b3"], w), _fold_bias(params["r2_b1"], w),
        _fold_bias(params["r2_b2"], w)]).astype(jnp.float32)     # (5, 1, W*C)

    # Whole-volume residency budget check (v5e 16 MiB scoped / v7x 64 MiB).
    est_vmem = (
        2 * 2 * (w11.size + w12.size + wpj.size + w21.size + w22.size)
        + 2 * 4 * biases.size
        + 2 * 2 * d * h * kin + 2 * 4 * d * h * kc
        + 4 * (d + 2) * (h + 2) * (kin + 2 * kc))
    assert est_vmem < 12 * 2**20, (
        "TODO(synk): volume too large for whole-volume VMEM residency; tile D "
        "into halo'd slabs or fall back to a K=27*C im2col kernel.")

    def resident(*shape):
        return pl.BlockSpec(shape, lambda b, _s=len(shape): (0,) * _s)

    out = pl.pallas_call(
        _double_res_kernel,
        out_shape=jax.ShapeDtypeStruct((n, d * h, kc), jnp.float32),
        grid_spec=pltpu.PrefetchScalarGridSpec(
            num_scalar_prefetch=0,
            grid=(n,),
            in_specs=[
                pl.BlockSpec((1, d, h, kin), lambda b: (b, 0, 0, 0)),
                resident(9, kin, kc),       # w11
                resident(9, kc, kc),        # w12
                resident(kin, kc),          # projection
                resident(9, kc, kc),        # w21
                resident(9, kc, kc),        # w22
                resident(5, 1, kc),         # biases
            ],
            out_specs=pl.BlockSpec((1, d * h, kc), lambda b: (b, 0, 0)),
            scratch_shapes=[
                pltpu.VMEM((d + 2, h + 2, kin), jnp.float32),   # padded x
                pltpu.VMEM((d + 2, h + 2, kc), jnp.float32),    # padded t1/t2
                pltpu.VMEM((d + 2, h + 2, kc), jnp.float32),    # padded z1
            ],
        ),
        compiler_params=pltpu.CompilerParams(
            dimension_semantics=("parallel",)),
    )(x_in, w11, w12, wpj, w21, w22, biases)

    return out.reshape(n, d, h, w, c)


def double_res(x_ncdhw, params):
    """PyTorch-parity entry point (NCDHW in / NCDHW out).

    The two transposes below are only for parity with the PyTorch layout; in a
    full network call `double_res_ndhwc` directly and stay NDHWC end-to-end.
    """
    x = jnp.transpose(x_ncdhw, (0, 2, 3, 4, 1))            # NCDHW -> NDHWC
    y = double_res_ndhwc(x, params)
    return jnp.transpose(y, (0, 4, 1, 2, 3))               # NDHWC -> NCDHW


# ---------------------------------------------------------------------------
# Pure-JAX reference (XLA conv) for the correctness check.
# ---------------------------------------------------------------------------

def _ref_double_res(x_ncdhw, params):
    x = jnp.transpose(x_ncdhw, (0, 2, 3, 4, 1))

    def conv(x, w, b, pad):
        y = lax.conv_general_dilated(
            x, w, window_strides=(1, 1, 1), padding=((pad, pad),) * 3,
            dimension_numbers=("NDHWC", "DHWIO", "NDHWC"))
        return y + b

    def residual(x, w1, b1, w2, b2, w3=None, b3=None):
        y = jnp.tanh(conv(x, w1, b1, 1))
        y = conv(y, w2, b2, 1)
        sc = x if w3 is None else conv(x, w3, b3, 0)
        return jnp.tanh(y + sc)

    y = residual(x, params["r1_w1"], params["r1_b1"], params["r1_w2"],
                 params["r1_b2"], params["r1_w3"], params["r1_b3"])
    y = residual(y, params["r2_w1"], params["r2_b1"], params["r2_w2"],
                 params["r2_b2"])
    return jnp.transpose(y, (0, 4, 1, 2, 3))


if __name__ == "__main__":
    # Small shapes: batch=2, in_channels=4, num_channels=8, D=H=W=8.
    N, Cin, Cmid, D, H, W = 2, 4, 8, 8, 8, 8

    key = jax.random.PRNGKey(0)
    keys = jax.random.split(key, 11)

    x = jax.random.normal(keys[0], (N, Cin, D, H, W), jnp.float32)  # NCDHW
    # Synthetic parameters in DHWIO layout (a real PyTorch port would transpose
    # Conv3d weights from (Cout, Cin, kd, kh, kw) -> (kd, kh, kw, Cin, Cout)).
    params = {
        "r1_w1": jax.random.normal(keys[1], (3, 3, 3, Cin, Cmid), jnp.float32) * 0.1,
        "r1_b1": jax.random.normal(keys[2], (Cmid,), jnp.float32) * 0.1,
        "r1_w2": jax.random.normal(keys[3], (3, 3, 3, Cmid, Cmid), jnp.float32) * 0.1,
        "r1_b2": jax.random.normal(keys[4], (Cmid,), jnp.float32) * 0.1,
        "r1_w3": jax.random.normal(keys[5], (1, 1, 1, Cin, Cmid), jnp.float32) * 0.1,
        "r1_b3": jax.random.normal(keys[6], (Cmid,), jnp.float32) * 0.1,
        "r2_w1": jax.random.normal(keys[7], (3, 3, 3, Cmid, Cmid), jnp.float32) * 0.1,
        "r2_b1": jax.random.normal(keys[8], (Cmid,), jnp.float32) * 0.1,
        "r2_w2": jax.random.normal(keys[9], (3, 3, 3, Cmid, Cmid), jnp.float32) * 0.1,
        "r2_b2": jax.random.normal(keys[10], (Cmid,), jnp.float32) * 0.1,
    }

    # The Pallas path streams bf16 operands; quantize x / params once so both
    # the kernel and the f32 reference consume identical values.  Remaining
    # divergence is only the in-kernel bf16 rounding of intermediate
    # activations plus f32 accumulation order.
    q = lambda a: a.astype(jnp.bfloat16).astype(jnp.float32)
    x_q = q(x)
    params_q = jax.tree_util.tree_map(q, params)

    out = jax.block_until_ready(jax.jit(double_res)(x_q, params_q))
    ref = jax.block_until_ready(jax.jit(_ref_double_res)(x_q, params_q))

    assert out.shape == (N, Cmid, D, H, W), out.shape
    max_err = float(jnp.max(jnp.abs(out - ref)))
    assert jnp.allclose(out, ref, atol=2e-2, rtol=2e-2), max_err

    print("KERNEL_OK")
</pallas_src>

<mosaic_0001>
module attributes {stable_mosaic.version = 11 : i64} {
  func.func @_double_res_kernel(%arg0: i32, %arg1: memref<1x8x8x32xbf16, #tpu.memory_space<vmem>>, %arg2: memref<9x32x64xbf16, #tpu.memory_space<vmem>>, %arg3: memref<9x64x64xbf16, #tpu.memory_space<vmem>>, %arg4: memref<32x64xbf16, #tpu.memory_space<vmem>>, %arg5: memref<9x64x64xbf16, #tpu.memory_space<vmem>>, %arg6: memref<9x64x64xbf16, #tpu.memory_space<vmem>>, %arg7: memref<5x1x64xf32, #tpu.memory_space<vmem>>, %arg8: memref<1x64x64xf32, #tpu.memory_space<vmem>>, %arg9: memref<10x10x32xf32, #tpu.memory_space<vmem>>, %arg10: memref<10x10x64xf32, #tpu.memory_space<vmem>>, %arg11: memref<10x10x64xf32, #tpu.memory_space<vmem>>) attributes {dimension_semantics = [#tpu.dimension_semantics<parallel>], iteration_bounds = array<i64: 2>, scalar_prefetch = 0 : i64, scratch_operands = 3 : i64, tpu.core_type = #tpu.core_type<tc>, window_params = [{transform_indices = @transform_0, window_bounds = array<i64: 1, 8, 8, 32>}, {pipeline_mode = #tpu.pipeline_mode<synchronous>, transform_indices = @transform_1, window_bounds = array<i64: 9, 32, 64>}, {pipeline_mode = #tpu.pipeline_mode<synchronous>, transform_indices = @transform_2, window_bounds = array<i64: 9, 64, 64>}, {pipeline_mode = #tpu.pipeline_mode<synchronous>, transform_indices = @transform_3, window_bounds = array<i64: 32, 64>}, {pipeline_mode = #tpu.pipeline_mode<synchronous>, transform_indices = @transform_4, window_bounds = array<i64: 9, 64, 64>}, {pipeline_mode = #tpu.pipeline_mode<synchronous>, transform_indices = @transform_5, window_bounds = array<i64: 9, 64, 64>}, {pipeline_mode = #tpu.pipeline_mode<synchronous>, transform_indices = @transform_6, window_bounds = array<i64: 5, 1, 64>}, {transform_indices = @transform_7, window_bounds = array<i64: 1, 64, 64>}]} {
    %cst = arith.constant 0.000000e+00 : f32
    %0 = vector.broadcast %cst : f32 to vector<10x10x32xf32>
    %c0 = arith.constant 0 : index
    %c0_0 = arith.constant 0 : index
    %c0_1 = arith.constant 0 : index
    %1 = vector.load %arg9[%c0, %c0_0, %c0_1] : memref<10x10x32xf32, #tpu.memory_space<vmem>>, vector<10x10x32xf32>
    tpu.vector_store %arg9[%c0, %c0_0, %c0_1], %0 {strides = array<i32>} : memref<10x10x32xf32, #tpu.memory_space<vmem>>, vector<10x10x32xf32>,
    %cst_2 = arith.constant 0.000000e+00 : f32
    %2 = vector.broadcast %cst_2 : f32 to vector<10x10x64xf32>
    %c0_3 = arith.constant 0 : index
    %c0_4 = arith.constant 0 : index
    %c0_5 = arith.constant 0 : index
    %3 = vector.load %arg10[%c0_3, %c0_4, %c0_5] : memref<10x10x64xf32, #tpu.memory_space<vmem>>, vector<10x10x64xf32>
    tpu.vector_store %arg10[%c0_3, %c0_4, %c0_5], %2 {strides = array<i32>} : memref<10x10x64xf32, #tpu.memory_space<vmem>>, vector<10x10x64xf32>,
    %cst_6 = arith.constant 0.000000e+00 : f32
    %4 = vector.broadcast %cst_6 : f32 to vector<10x10x64xf32>
    %c0_7 = arith.constant 0 : index
    %c0_8 = arith.constant 0 : index
    %c0_9 = arith.constant 0 : index
    %5 = vector.load %arg11[%c0_7, %c0_8, %c0_9] : memref<10x10x64xf32, #tpu.memory_space<vmem>>, vector<10x10x64xf32>
    tpu.vector_store %arg11[%c0_7, %c0_8, %c0_9], %4 {strides = array<i32>} : memref<10x10x64xf32, #tpu.memory_space<vmem>>, vector<10x10x64xf32>,
    %c0_10 = arith.constant 0 : index
    %c0_11 = arith.constant 0 : index
    %c0_12 = arith.constant 0 : index
    %c0_13 = arith.constant 0 : index
    %6 = vector.load %arg1[%c0_10, %c0_11, %c0_12, %c0_13] : memref<1x8x8x32xbf16, #tpu.memory_space<vmem>>, vector<1x8x8x32xbf16>
    %7 = vector.shape_cast %6 : vector<1x8x8x32xbf16> to vector<8x8x32xbf16>
    %8 = arith.extf %7 : vector<8x8x32xbf16> to vector<8x8x32xf32>
    %c1 = arith.constant 1 : index
    %c1_14 = arith.constant 1 : index
    %c0_15 = arith.constant 0 : index
    %9 = vector.load %arg9[%c1, %c1_14, %c0_15] : memref<10x10x32xf32, #tpu.memory_space<vmem>>, vector<8x8x32xf32>
    tpu.vector_store %arg9[%c1, %c1_14, %c0_15], %8 {strides = array<i32>} : memref<10x10x32xf32, #tpu.memory_space<vmem>>, vector<8x8x32xf32>,
    %cst_16 = arith.constant 0.000000e+00 : f32
    %10 = vector.broadcast %cst_16 : f32 to vector<64x64xf32>
    %c0_17 = arith.constant 0 : index
    %c0_18 = arith.constant 0 : index
    %c0_19 = arith.constant 0 : index
    %11 = vector.load %arg9[%c0_17, %c0_18, %c0_19] : memref<10x10x32xf32, #tpu.memory_space<vmem>>, vector<8x8x32xf32>
    %12 = vector.shape_cast %11 : vector<8x8x32xf32> to vector<64x32xf32>
    %13 = arith.truncf %12 : vector<64x32xf32> to vector<64x32xbf16>
    %c0_20 = arith.constant 0 : index
    %c0_21 = arith.constant 0 : index
    %c0_22 = arith.constant 0 : index
    %14 = vector.load %arg2[%c0_20, %c0_21, %c0_22] : memref<9x32x64xbf16, #tpu.memory_space<vmem>>, vector<1x32x64xbf16>
    %15 = vector.shape_cast %14 : vector<1x32x64xbf16> to vector<32x64xbf16>
    %cst_23 = arith.constant dense<0.000000e+00> : vector<64x64xf32>
    %16 = tpu.matmul %13, %15, %cst_23 {dimension_numbers = #tpu.dot_dimension_numbers<[1], [0], [0], [1], [0, 0, 1, 1], [], []>} : vector<64x32xbf16>, vector<32x64xbf16>, vector<64x64xf32> -> vector<64x64xf32>
    %17 = arith.addf %10, %16 : vector<64x64xf32>
    %c0_24 = arith.constant 0 : index
    %c1_25 = arith.constant 1 : index
    %c0_26 = arith.constant 0 : index
    %18 = vector.load %arg9[%c0_24, %c1_25, %c0_26] : memref<10x10x32xf32, #tpu.memory_space<vmem>>, vector<8x8x32xf32>
    %19 = vector.shape_cast %18 : vector<8x8x32xf32> to vector<64x32xf32>
    %20 = arith.truncf %19 : vector<64x32xf32> to vector<64x32xbf16>
    %c1_27 = arith.constant 1 : index
    %c0_28 = arith.constant 0 : index
    %c0_29 = arith.constant 0 : index
    %21 = vector.load %arg2[%c1_27, %c0_28, %c0_29] : memref<9x32x64xbf16, #tpu.memory_space<vmem>>, vector<1x32x64xbf16>
    %22 = vector.shape_cast %21 : vector<1x32x64xbf16> to vector<32x64xbf16>
    %cst_30 = arith.constant dense<0.000000e+00> : vector<64x64xf32>
    %23 = tpu.matmul %20, %22, %cst_30 {dimension_numbers = #tpu.dot_dimension_numbers<[1], [0], [0], [1], [0, 0, 1, 1], [], []>} : vector<64x32xbf16>, vector<32x64xbf16>, vector<64x64xf32> -> vector<64x64xf32>
    %24 = arith.addf %17, %23 : vector<64x64xf32>
    %c0_31 = arith.constant 0 : index
    %c2 = arith.constant 2 : index
    %c0_32 = arith.constant 0 : index
    %25 = vector.load %arg9[%c0_31, %c2, %c0_32] : memref<10x10x32xf32, #tpu.memory_space<vmem>>, vector<8x8x32xf32>
    %26 = vector.shape_cast %25 : vector<8x8x32xf32> to vector<64x32xf32>
    %27 = arith.truncf %26 : vector<64x32xf32> to vector<64x32xbf16>
    %c2_33 = arith.constant 2 : index
    %c0_34 = arith.constant 0 : index
    %c0_35 = arith.constant 0 : index
    %28 = vector.load %arg2[%c2_33, %c0_34, %c0_35] : memref<9x32x64xbf16, #tpu.memory_space<vmem>>, vector<1x32x64xbf16>
    %29 = vector.shape_cast %28 : vector<1x32x64xbf16> to vector<32x64xbf16>
    %cst_36 = arith.constant dense<0.000000e+00> : vector<64x64xf32>
    %30 = tpu.matmul %27, %29, %cst_36 {dimension_numbers = #tpu.dot_dimension_numbers<[1], [0], [0], [1], [0, 0, 1, 1], [], []>} : vector<64x32xbf16>, vector<32x64xbf16>, vector<64x64xf32> -> vector<64x64xf32>
    %31 = arith.addf %24, %30 : vector<64x64xf32>
    %c1_37 = arith.constant 1 : index
    %c0_38 = arith.constant 0 : index
    %c0_39 = arith.constant 0 : index
    %32 = vector.load %arg9[%c1_37, %c0_38, %c0_39] : memref<10x10x32xf32, #tpu.memory_space<vmem>>, vector<8x8x32xf32>
    %33 = vector.shape_cast %32 : vector<8x8x32xf32> to vector<64x32xf32>
    %34 = arith.truncf %33 : vector<64x32xf32> to vector<64x32xbf16>
    %c3 = arith.constant 3 : index
    %c0_40 = arith.constant 0 : index
    %c0_41 = arith.constant 0 : index
    %35 = vector.load %arg2[%c3, %c0_40, %c0_41] : memref<9x32x64xbf16, #tpu.memory_space<vmem>>, vector<1x32x64xbf16>
    %36 = vector.shape_cast %35 : vector<1x32x64xbf16> to vector<32x64xbf16>
    %cst_42 = arith.constant dense<0.000000e+00> : vector<64x64xf32>
    %37 = tpu.matmul %34, %36, %cst_42 {dimension_numbers = #tpu.dot_dimension_numbers<[1], [0], [0], [1], [0, 0, 1, 1], [], []>} : vector<64x32xbf16>, vector<32x64xbf16>, vector<64x64xf32> -> vector<64x64xf32>
    %38 = arith.addf %31, %37 : vector<64x64xf32>
    %c1_43 = arith.constant 1 : index
    %c1_44 = arith.constant 1 : index
    %c0_45 = arith.constant 0 : index
    %39 = vector.load %arg9[%c1_43, %c1_44, %c0_45] : memref<10x10x32xf32, #tpu.memory_space<vmem>>, vector<8x8x32xf32>
    %40 = vector.shape_cast %39 : vector<8x8x32xf32> to vector<64x32xf32>
    %41 = arith.truncf %40 : vector<64x32xf32> to vector<64x32xbf16>
    %c4 = arith.constant 4 : index
    %c0_46 = arith.constant 0 : index
    %c0_47 = arith.constant 0 : index
    %42 = vector.load %arg2[%c4, %c0_46, %c0_47] : memref<9x32x64xbf16, #tpu.memory_space<vmem>>, vector<1x32x64xbf16>
    %43 = vector.shape_cast %42 : vector<1x32x64xbf16> to vector<32x64xbf16>
    %cst_48 = arith.constant dense<0.000000e+00> : vector<64x64xf32>
    %44 = tpu.matmul %41, %43, %cst_48 {dimension_numbers = #tpu.dot_dimension_numbers<[1], [0], [0], [1], [0, 0, 1, 1], [], []>} : vector<64x32xbf16>, vector<32x64xbf16>, vector<64x64xf32> -> vector<64x64xf32>
    %45 = arith.addf %38, %44 : vector<64x64xf32>
    %c1_49 = arith.constant 1 : index
    %c2_50 = arith.constant 2 : index
    %c0_51 = arith.constant 0 : index
    %46 = vector.load %arg9[%c1_49, %c2_50, %c0_51] : memref<10x10x32xf32, #tpu.memory_space<vmem>>, vector<8x8x32xf32>
    %47 = vector.shape_cast %46 : vector<8x8x32xf32> to vector<64x32xf32>
    %48 = arith.truncf %47 : vector<64x32xf32> to vector<64x32xbf16>
    %c5 = arith.constant 5 : index
    %c0_52 = arith.constant 0 : index
    %c0_53 = arith.constant 0 : index
    %49 = vector.load %arg2[%c5, %c0_52, %c0_53] : memref<9x32x64xbf16, #tpu.memory_space<vmem>>, vector<1x32x64xbf16>
    %50 = vector.shape_cast %49 : vector<1x32x64xbf16> to vector<32x64xbf16>
    %cst_54 = arith.constant dense<0.000000e+00> : vector<64x64xf32>
    %51 = tpu.matmul %48, %50, %cst_54 {dimension_numbers = #tpu.dot_dimension_numbers<[1], [0], [0], [1], [0, 0, 1, 1], [], []>} : vector<64x32xbf16>, vector<32x64xbf16>, vector<64x64xf32> -> vector<64x64xf32>
    %52 = arith.addf %45, %51 : vector<64x64xf32>
    %c2_55 = arith.constant 2 : index
    %c0_56 = arith.constant 0 : index
    %c0_57 = arith.constant 0 : index
    %53 = vector.load %arg9[%c2_55, %c0_56, %c0_57] : memref<10x10x32xf32, #tpu.memory_space<vmem>>, vector<8x8x32xf32>
    %54 = vector.shape_cast %53 : vector<8x8x32xf32> to vector<64x32xf32>
    %55 = arith.truncf %54 : vector<64x32xf32> to vector<64x32xbf16>
    %c6 = arith.constant 6 : index
    %c0_58 = arith.constant 0 : index
    %c0_59 = arith.constant 0 : index
    %56 = vector.load %arg2[%c6, %c0_58, %c0_59] : memref<9x32x64xbf16, #tpu.memory_space<vmem>>, vector<1x32x64xbf16>
    %57 = vector.shape_cast %56 : vector<1x32x64xbf16> to vector<32x64xbf16>
    %cst_60 = arith.constant dense<0.000000e+00> : vector<64x64xf32>
    %58 = tpu.matmul %55, %57, %cst_60 {dimension_numbers = #tpu.dot_dimension_numbers<[1], [0], [0], [1], [0, 0, 1, 1], [], []>} : vector<64x32xbf16>, vector<32x64xbf16>, vector<64x64xf32> -> vector<64x64xf32>
    %59 = arith.addf %52, %58 : vector<64x64xf32>
    %c2_61 = arith.constant 2 : index
    %c1_62 = arith.constant 1 : index
    %c0_63 = arith.constant 0 : index
    %60 = vector.load %arg9[%c2_61, %c1_62, %c0_63] : memref<10x10x32xf32, #tpu.memory_space<vmem>>, vector<8x8x32xf32>
    %61 = vector.shape_cast %60 : vector<8x8x32xf32> to vector<64x32xf32>
    %62 = arith.truncf %61 : vector<64x32xf32> to vector<64x32xbf16>
    %c7 = arith.constant 7 : index
    %c0_64 = arith.constant 0 : index
    %c0_65 = arith.constant 0 : index
    %63 = vector.load %arg2[%c7, %c0_64, %c0_65] : memref<9x32x64xbf16, #tpu.memory_space<vmem>>, vector<1x32x64xbf16>
    %64 = vector.shape_cast %63 : vector<1x32x64xbf16> to vector<32x64xbf16>
    %cst_66 = arith.constant dense<0.000000e+00> : vector<64x64xf32>
    %65 = tpu.matmul %62, %64, %cst_66 {dimension_numbers = #tpu.dot_dimension_numbers<[1], [0], [0], [1], [0, 0, 1, 1], [], []>} : vector<64x32xbf16>, vector<32x64xbf16>, vector<64x64xf32> -> vector<64x64xf32>
    %66 = arith.addf %59, %65 : vector<64x64xf32>
    %c2_67 = arith.constant 2 : index
    %c2_68 = arith.constant 2 : index
    %c0_69 = arith.constant 0 : index
    %67 = vector.load %arg9[%c2_67, %c2_68, %c0_69] : memref<10x10x32xf32, #tpu.memory_space<vmem>>, vector<8x8x32xf32>
    %68 = vector.shape_cast %67 : vector<8x8x32xf32> to vector<64x32xf32>
    %69 = arith.truncf %68 : vector<64x32xf32> to vector<64x32xbf16>
    %c8 = arith.constant 8 : index
    %c0_70 = arith.constant 0 : index
    %c0_71 = arith.constant 0 : index
    %70 = vector.load %arg2[%c8, %c0_70, %c0_71] : memref<9x32x64xbf16, #tpu.memory_space<vmem>>, vector<1x32x64xbf16>
    %71 = vector.shape_cast %70 : vector<1x32x64xbf16> to vector<32x64xbf16>
    %cst_72 = arith.constant dense<0.000000e+00> : vector<64x64xf32>
    %72 = tpu.matmul %69, %71, %cst_72 {dimension_numbers = #tpu.dot_dimension_numbers<[1], [0], [0], [1], [0, 0, 1, 1], [], []>} : vector<64x32xbf16>, vector<32x64xbf16>, vector<64x64xf32> -> vector<64x64xf32>
    %73 = arith.addf %66, %72 : vector<64x64xf32>
    %c0_73 = arith.constant 0 : index
    %c0_74 = arith.constant 0 : index
    %c0_75 = arith.constant 0 : index
    %74 = vector.load %arg7[%c0_73, %c0_74, %c0_75] : memref<5x1x64xf32, #tpu.memory_space<vmem>>, vector<1x1x64xf32>
    %75 = vector.shape_cast %74 : vector<1x1x64xf32> to vector<1x64xf32>
    %76 = vector.broadcast %75 : vector<1x64xf32> to vector<64x64xf32>
    %77 = arith.addf %73, %76 : vector<64x64xf32>
    %78 = math.tanh %77 : vector<64x64xf32>
    %79 = vector.shape_cast %78 : vector<64x64xf32> to vector<8x8x64xf32>
    %c1_76 = arith.constant 1 : index
    %c1_77 = arith.constant 1 : index
    %c0_78 = arith.constant 0 : index
    %80 = vector.load %arg10[%c1_76, %c1_77, %c0_78] : memref<10x10x64xf32, #tpu.memory_space<vmem>>, vector<8x8x64xf32>
    tpu.vector_store %arg10[%c1_76, %c1_77, %c0_78], %79 {strides = array<i32>} : memref<10x10x64xf32, #tpu.memory_space<vmem>>, vector<8x8x64xf32>,
    %cst_79 = arith.constant 0.000000e+00 : f32
    %81 = vector.broadcast %cst_79 : f32 to vector<64x64xf32>
    %c0_80 = arith.constant 0 : index
    %c0_81 = arith.constant 0 : index
    %c0_82 = arith.constant 0 : index
    %82 = vector.load %arg10[%c0_80, %c0_81, %c0_82] : memref<10x10x64xf32, #tpu.memory_space<vmem>>, vector<8x8x64xf32>
    %83 = vector.shape_cast %82 : vector<8x8x64xf32> to vector<64x64xf32>
    %84 = arith.truncf %83 : vector<64x64xf32> to vector<64x64xbf16>
    %c0_83 = arith.constant 0 : index
    %c0_84 = arith.constant 0 : index
    %c0_85 = arith.constant 0 : index
    %85 = vector.load %arg3[%c0_83, %c0_84, %c0_85] : memref<9x64x64xbf16, #tpu.memory_space<vmem>>, vector<1x64x64xbf16>
    %86 = vector.shape_cast %85 : vector<1x64x64xbf16> to vector<64x64xbf16>
    %cst_86 = arith.constant dense<0.000000e+00> : vector<64x64xf32>
    %87 = tpu.matmul %84, %86, %cst_86 {dimension_numbers = #tpu.dot_dimension_numbers<[1], [0], [0], [1], [0, 0, 1, 1], [], []>} : vector<64x64xbf16>, vector<64x64xbf16>, vector<64x64xf32> -> vector<64x64xf32>
    %88 = arith.addf %81, %87 : vector<64x64xf32>
    %c0_87 = arith.constant 0 : index
    %c1_88 = arith.constant 1 : index
    %c0_89 = arith.constant 0 : index
    %89 = vector.load %arg10[%c0_87, %c1_88, %c0_89] : memref<10x10x64xf32, #tpu.memory_space<vmem>>, vector<8x8x64xf32>
    %90 = vector.shape_cast %89 : vector<8x8x64xf32> to vector<64x64xf32>
    %91 = arith.truncf %90 : vector<64x64xf32> to vector<64x64xbf16>
    %c1_90 = arith.constant 1 : index
    %c0_91 = arith.constant 0 : index
    %c0_92 = arith.constant 0 : index
    %92 = vector.load %arg3[%c1_90, %c0_91, %c0_92] : memref<9x64x64xbf16, #tpu.memory_space<vmem>>, vector<1x64x64xbf16>
    %93 = vector.shape_cast %92 : vector<1x64x64xbf16> to vector<64x64xbf16>
    %cst_93 = arith.constant dense<0.000000e+00> : vector<64x64xf32>
    %94 = tpu.matmul %91, %93, %cst_93 {dimension_numbers = #tpu.dot_dimension_numbers<[1], [0], [0], [1], [0, 0, 1, 1], [], []>} : vector<64x64xbf16>, vector<64x64xbf16>, vector<64x64xf32> -> vector<64x64xf32>
    %95 = arith.addf %88, %94 : vector<64x64xf32>
    %c0_94 = arith.constant 0 : index
    %c2_95 = arith.constant 2 : index
    %c0_96 = arith.constant 0 : index
    %96 = vector.load %arg10[%c0_94, %c2_95, %c0_96] : memref<10x10x64xf32, #tpu.memory_space<vmem>>, vector<8x8x64xf32>
    %97 = vector.shape_cast %96 : vector<8x8x64xf32> to vector<64x64xf32>
    %98 = arith.truncf %97 : vector<64x64xf32> to vector<64x64xbf16>
    %c2_97 = arith.constant 2 : index
    %c0_98 = arith.constant 0 : index
    %c0_99 = arith.constant 0 : index
    %99 = vector.load %arg3[%c2_97, %c0_98, %c0_99] : memref<9x64x64xbf16, #tpu.memory_space<vmem>>, vector<1x64x64xbf16>
    %100 = vector.shape_cast %99 : vector<1x64x64xbf16> to vector<64x64xbf16>
    %cst_100 = arith.constant dense<0.000000e+00> : vector<64x64xf32>
    %101 = tpu.matmul %98, %100, %cst_100 {dimension_numbers = #tpu.dot_dimension_numbers<[1], [0], [0], [1], [0, 0, 1, 1], [], []>} : vector<64x64xbf16>, vector<64x64xbf16>, vector<64x64xf32> -> vector<64x64xf32>
    %102 = arith.addf %95, %101 : vector<64x64xf32>
    %c1_101 = arith.constant 1 : index
    %c0_102 = arith.constant 0 : index
    %c0_103 = arith.constant 0 : index
    %103 = vector.load %arg10[%c1_101, %c0_102, %c0_103] : memref<10x10x64xf32, #tpu.memory_space<vmem>>, vector<8x8x64xf32>
    %104 = vector.shape_cast %103 : vector<8x8x64xf32> to vector<64x64xf32>
    %105 = arith.truncf %104 : vector<64x64xf32> to vector<64x64xbf16>
    %c3_104 = arith.constant 3 : index
    %c0_105 = arith.constant 0 : index
    %c0_106 = arith.constant 0 : index
    %106 = vector.load %arg3[%c3_104, %c0_105, %c0_106] : memref<9x64x64xbf16, #tpu.memory_space<vmem>>, vector<1x64x64xbf16>
    %107 = vector.shape_cast %106 : vector<1x64x64xbf16> to vector<64x64xbf16>
    %cst_107 = arith.constant dense<0.000000e+00> : vector<64x64xf32>
    %108 = tpu.matmul %105, %107, %cst_107 {dimension_numbers = #tpu.dot_dimension_numbers<[1], [0], [0], [1], [0, 0, 1, 1], [], []>} : vector<64x64xbf16>, vector<64x64xbf16>, vector<64x64xf32> -> vector<64x64xf32>
    %109 = arith.addf %102, %108 : vector<64x64xf32>
    %c1_108 = arith.constant 1 : index
    %c1_109 = arith.constant 1 : index
    %c0_110 = arith.constant 0 : index
    %110 = vector.load %arg10[%c1_108, %c1_109, %c0_110] : memref<10x10x64xf32, #tpu.memory_space<vmem>>, vector<8x8x64xf32>
    %111 = vector.shape_cast %110 : vector<8x8x64xf32> to vector<64x64xf32>
    %112 = arith.truncf %111 : vector<64x64xf32> to vector<64x64xbf16>
    %c4_111 = arith.constant 4 : index
    %c0_112 = arith.constant 0 : index
    %c0_113 = arith.constant 0 : index
    %113 = vector.load %arg3[%c4_111, %c0_112, %c0_113] : memref<9x64x64xbf16, #tpu.memory_space<vmem>>, vector<1x64x64xbf16>
    %114 = vector.shape_cast %113 : vector<1x64x64xbf16> to vector<64x64xbf16>
    %cst_114 = arith.constant dense<0.000000e+00> : vector<64x64xf32>
    %115 = tpu.matmul %112, %114, %cst_114 {dimension_numbers = #tpu.dot_dimension_numbers<[1], [0], [0], [1], [0, 0, 1, 1], [], []>} : vector<64x64xbf16>, vector<64x64xbf16>, vector<64x64xf32> -> vector<64x64xf32>
    %116 = arith.addf %109, %115 : vector<64x64xf32>
    %c1_115 = arith.constant 1 : index
    %c2_116 = arith.constant 2 : index
    %c0_117 = arith.constant 0 : index
    %117 = vector.load %arg10[%c1_115, %c2_116, %c0_117] : memref<10x10x64xf32, #tpu.memory_space<vmem>>, vector<8x8x64xf32>
    %118 = vector.shape_cast %117 : vector<8x8x64xf32> to vector<64x64xf32>
    %119 = arith.truncf %118 : vector<64x64xf32> to vector<64x64xbf16>
    %c5_118 = arith.constant 5 : index
    %c0_119 = arith.constant 0 : index
    %c0_120 = arith.constant 0 : index
    %120 = vector.load %arg3[%c5_118, %c0_119, %c0_120] : memref<9x64x64xbf16, #tpu.memory_space<vmem>>, vector<1x64x64xbf16>
    %121 = vector.shape_cast %120 : vector<1x64x64xbf16> to vector<64x64xbf16>
    %cst_121 = arith.constant dense<0.000000e+00> : vector<64x64xf32>
    %122 = tpu.matmul %119, %121, %cst_121 {dimension_numbers = #tpu.dot_dimension_numbers<[1], [0], [0], [1], [0, 0, 1, 1], [], []>} : vector<64x64xbf16>, vector<64x64xbf16>, vector<64x64xf32> -> vector<64x64xf32>
    %123 = arith.addf %116, %122 : vector<64x64xf32>
    %c2_122 = arith.constant 2 : index
    %c0_123 = arith.constant 0 : index
    %c0_124 = arith.constant 0 : index
    %124 = vector.load %arg10[%c2_122, %c0_123, %c0_124] : memref<10x10x64xf32, #tpu.memory_space<vmem>>, vector<8x8x64xf32>
    %125 = vector.shape_cast %124 : vector<8x8x64xf32> to vector<64x64xf32>
    %126 = arith.truncf %125 : vector<64x64xf32> to vector<64x64xbf16>
    %c6_125 = arith.constant 6 : index
    %c0_126 = arith.constant 0 : index
    %c0_127 = arith.constant 0 : index
    %127 = vector.load %arg3[%c6_125, %c0_126, %c0_127] : memref<9x64x64xbf16, #tpu.memory_space<vmem>>, vector<1x64x64xbf16>
    %128 = vector.shape_cast %127 : vector<1x64x64xbf16> to vector<64x64xbf16>
    %cst_128 = arith.constant dense<0.000000e+00> : vector<64x64xf32>
    %129 = tpu.matmul %126, %128, %cst_128 {dimension_numbers = #tpu.dot_dimension_numbers<[1], [0], [0], [1], [0, 0, 1, 1], [], []>} : vector<64x64xbf16>, vector<64x64xbf16>, vector<64x64xf32> -> vector<64x64xf32>
    %130 = arith.addf %123, %129 : vector<64x64xf32>
    %c2_129 = arith.constant 2 : index
    %c1_130 = arith.constant 1 : index
    %c0_131 = arith.constant 0 : index
    %131 = vector.load %arg10[%c2_129, %c1_130, %c0_131] : memref<10x10x64xf32, #tpu.memory_space<vmem>>, vector<8x8x64xf32>
    %132 = vector.shape_cast %131 : vector<8x8x64xf32> to vector<64x64xf32>
    %133 = arith.truncf %132 : vector<64x64xf32> to vector<64x64xbf16>
    %c7_132 = arith.constant 7 : index
    %c0_133 = arith.constant 0 : index
    %c0_134 = arith.constant 0 : index
    %134 = vector.load %arg3[%c7_132, %c0_133, %c0_134] : memref<9x64x64xbf16, #tpu.memory_space<vmem>>, vector<1x64x64xbf16>
    %135 = vector.shape_cast %134 : vector<1x64x64xbf16> to vector<64x64xbf16>
    %cst_135 = arith.constant dense<0.000000e+00> : vector<64x64xf32>
    %136 = tpu.matmul %133, %135, %cst_135 {dimension_numbers = #tpu.dot_dimension_numbers<[1], [0], [0], [1], [0, 0, 1, 1], [], []>} : vector<64x64xbf16>, vector<64x64xbf16>, vector<64x64xf32> -> vector<64x64xf32>
    %137 = arith.addf %130, %136 : vector<64x64xf32>
    %c2_136 = arith.constant 2 : index
    %c2_137 = arith.constant 2 : index
    %c0_138 = arith.constant 0 : index
    %138 = vector.load %arg10[%c2_136, %c2_137, %c0_138] : memref<10x10x64xf32, #tpu.memory_space<vmem>>, vector<8x8x64xf32>
    %139 = vector.shape_cast %138 : vector<8x8x64xf32> to vector<64x64xf32>
    %140 = arith.truncf %139 : vector<64x64xf32> to vector<64x64xbf16>
    %c8_139 = arith.constant 8 : index
    %c0_140 = arith.constant 0 : index
    %c0_141 = arith.constant 0 : index
    %141 = vector.load %arg3[%c8_139, %c0_140, %c0_141] : memref<9x64x64xbf16, #tpu.memory_space<vmem>>, vector<1x64x64xbf16>
    %142 = vector.shape_cast %141 : vector<1x64x64xbf16> to vector<64x64xbf16>
    %cst_142 = arith.constant dense<0.000000e+00> : vector<64x64xf32>
    %143 = tpu.matmul %140, %142, %cst_142 {dimension_numbers = #tpu.dot_dimension_numbers<[1], [0], [0], [1], [0, 0, 1, 1], [], []>} : vector<64x64xbf16>, vector<64x64xbf16>, vector<64x64xf32> -> vector<64x64xf32>
    %144 = arith.addf %137, %143 : vector<64x64xf32>
    %c1_143 = arith.constant 1 : index
    %c0_144 = arith.constant 0 : index
    %c0_145 = arith.constant 0 : index
    %145 = vector.load %arg7[%c1_143, %c0_144, %c0_145] : memref<5x1x64xf32, #tpu.memory_space<vmem>>, vector<1x1x64xf32>
    %146 = vector.shape_cast %145 : vector<1x1x64xf32> to vector<1x64xf32>
    %147 = vector.broadcast %146 : vector<1x64xf32> to vector<64x64xf32>
    %148 = arith.addf %144, %147 : vector<64x64xf32>
    %c1_146 = arith.constant 1 : index
    %c1_147 = arith.constant 1 : index
    %c0_148 = arith.constant 0 : index
    %149 = vector.load %arg9[%c1_146, %c1_147, %c0_148] : memref<10x10x32xf32, #tpu.memory_space<vmem>>, vector<8x8x32xf32>
    %150 = vector.shape_cast %149 : vector<8x8x32xf32> to vector<64x32xf32>
    %151 = arith.truncf %150 : vector<64x32xf32> to vector<64x32xbf16>
    %c0_149 = arith.constant 0 : index
    %c0_150 = arith.constant 0 : index
    %152 = vector.load %arg4[%c0_149, %c0_150] : memref<32x64xbf16, #tpu.memory_space<vmem>>, vector<32x64xbf16>
    %cst_151 = arith.constant dense<0.000000e+00> : vector<64x64xf32>
    %153 = tpu.matmul %151, %152, %cst_151 {dimension_numbers = #tpu.dot_dimension_numbers<[1], [0], [0], [1], [0, 0, 1, 1], [], []>} : vector<64x32xbf16>, vector<32x64xbf16>, vector<64x64xf32> -> vector<64x64xf32>
    %c2_152 = arith.constant 2 : index
    %c0_153 = arith.constant 0 : index
    %c0_154 = arith.constant 0 : index
    %154 = vector.load %arg7[%c2_152, %c0_153, %c0_154] : memref<5x1x64xf32, #tpu.memory_space<vmem>>, vector<1x1x64xf32>
    %155 = vector.shape_cast %154 : vector<1x1x64xf32> to vector<1x64xf32>
    %156 = vector.broadcast %155 : vector<1x64xf32> to vector<64x64xf32>
    %157 = arith.addf %153, %156 : vector<64x64xf32>
    %158 = arith.addf %148, %157 : vector<64x64xf32>
    %159 = math.tanh %158 : vector<64x64xf32>
    %160 = vector.shape_cast %159 : vector<64x64xf32> to vector<8x8x64xf32>
    %c1_155 = arith.constant 1 : index
    %c1_156 = arith.constant 1 : index
    %c0_157 = arith.constant 0 : index
    %161 = vector.load %arg11[%c1_155, %c1_156, %c0_157] : memref<10x10x64xf32, #tpu.memory_space<vmem>>, vector<8x8x64xf32>
    tpu.vector_store %arg11[%c1_155, %c1_156, %c0_157], %160 {strides = array<i32>} : memref<10x10x64xf32, #tpu.memory_space<vmem>>, vector<8x8x64xf32>,
    %cst_158 = arith.constant 0.000000e+00 : f32
    %162 = vector.broadcast %cst_158 : f32 to vector<64x64xf32>
    %c0_159 = arith.constant 0 : index
    %c0_160 = arith.constant 0 : index
    %c0_161 = arith.constant 0 : index
    %163 = vector.load %arg11[%c0_159, %c0_160, %c0_161] : memref<10x10x64xf32, #tpu.memory_space<vmem>>, vector<8x8x64xf32>
    %164 = vector.shape_cast %163 : vector<8x8x64xf32> to vector<64x64xf32>
    %165 = arith.truncf %164 : vector<64x64xf32> to vector<64x64xbf16>
    %c0_162 = arith.constant 0 : index
    %c0_163 = arith.constant 0 : index
    %c0_164 = arith.constant 0 : index
    %166 = vector.load %arg5[%c0_162, %c0_163, %c0_164] : memref<9x64x64xbf16, #tpu.memory_space<vmem>>, vector<1x64x64xbf16>
    %167 = vector.shape_cast %166 : vector<1x64x64xbf16> to vector<64x64xbf16>
    %cst_165 = arith.constant dense<0.000000e+00> : vector<64x64xf32>
    %168 = tpu.matmul %165, %167, %cst_165 {dimension_numbers = #tpu.dot_dimension_numbers<[1], [0], [0], [1], [0, 0, 1, 1], [], []>} : vector<64x64xbf16>, vector<64x64xbf16>, vector<64x64xf32> -> vector<64x64xf32>
    %169 = arith.addf %162, %168 : vector<64x64xf32>
    %c0_166 = arith.constant 0 : index
    %c1_167 = arith.constant 1 : index
    %c0_168 = arith.constant 0 : index
    %170 = vector.load %arg11[%c0_166, %c1_167, %c0_168] : memref<10x10x64xf32, #tpu.memory_space<vmem>>, vector<8x8x64xf32>
    %171 = vector.shape_cast %170 : vector<8x8x64xf32> to vector<64x64xf32>
    %172 = arith.truncf %171 : vector<64x64xf32> to vector<64x64xbf16>
    %c1_169 = arith.constant 1 : index
    %c0_170 = arith.constant 0 : index
    %c0_171 = arith.constant 0 : index
    %173 = vector.load %arg5[%c1_169, %c0_170, %c0_171] : memref<9x64x64xbf16, #tpu.memory_space<vmem>>, vector<1x64x64xbf16>
    %174 = vector.shape_cast %173 : vector<1x64x64xbf16> to vector<64x64xbf16>
    %cst_172 = arith.constant dense<0.000000e+00> : vector<64x64xf32>
    %175 = tpu.matmul %172, %174, %cst_172 {dimension_numbers = #tpu.dot_dimension_numbers<[1], [0], [0], [1], [0, 0, 1, 1], [], []>} : vector<64x64xbf16>, vector<64x64xbf16>, vector<64x64xf32> -> vector<64x64xf32>
    %176 = arith.addf %169, %175 : vector<64x64xf32>
    %c0_173 = arith.constant 0 : index
    %c2_174 = arith.constant 2 : index
    %c0_175 = arith.constant 0 : index
    %177 = vector.load %arg11[%c0_173, %c2_174, %c0_175] : memref<10x10x64xf32, #tpu.memory_space<vmem>>, vector<8x8x64xf32>
    %178 = vector.shape_cast %177 : vector<8x8x64xf32> to vector<64x64xf32>
    %179 = arith.truncf %178 : vector<64x64xf32> to vector<64x64xbf16>
    %c2_176 = arith.constant 2 : index
    %c0_177 = arith.constant 0 : index
    %c0_178 = arith.constant 0 : index
    %180 = vector.load %arg5[%c2_176, %c0_177, %c0_178] : memref<9x64x64xbf16, #tpu.memory_space<vmem>>, vector<1x64x64xbf16>
    %181 = vector.shape_cast %180 : vector<1x64x64xbf16> to vector<64x64xbf16>
    %cst_179 = arith.constant dense<0.000000e+00> : vector<64x64xf32>
    %182 = tpu.matmul %179, %181, %cst_179 {dimension_numbers = #tpu.dot_dimension_numbers<[1], [0], [0], [1], [0, 0, 1, 1], [], []>} : vector<64x64xbf16>, vector<64x64xbf16>, vector<64x64xf32> -> vector<64x64xf32>
    %183 = arith.addf %176, %182 : vector<64x64xf32>
    %c1_180 = arith.constant 1 : index
    %c0_181 = arith.constant 0 : index
    %c0_182 = arith.constant 0 : index
    %184 = vector.load %arg11[%c1_180, %c0_181, %c0_182] : memref<10x10x64xf32, #tpu.memory_space<vmem>>, vector<8x8x64xf32>
    %185 = vector.shape_cast %184 : vector<8x8x64xf32> to vector<64x64xf32>
    %186 = arith.truncf %185 : vector<64x64xf32> to vector<64x64xbf16>
    %c3_183 = arith.constant 3 : index
    %c0_184 = arith.constant 0 : index
    %c0_185 = arith.constant 0 : index
    %187 = vector.load %arg5[%c3_183, %c0_184, %c0_185] : memref<9x64x64xbf16, #tpu.memory_space<vmem>>, vector<1x64x64xbf16>
    %188 = vector.shape_cast %187 : vector<1x64x64xbf16> to vector<64x64xbf16>
    %cst_186 = arith.constant dense<0.000000e+00> : vector<64x64xf32>
    %189 = tpu.matmul %186, %188, %cst_186 {dimension_numbers = #tpu.dot_dimension_numbers<[1], [0], [0], [1], [0, 0, 1, 1], [], []>} : vector<64x64xbf16>, vector<64x64xbf16>, vector<64x64xf32> -> vector<64x64xf32>
    %190 = arith.addf %183, %189 : vector<64x64xf32>
    %c1_187 = arith.constant 1 : index
    %c1_188 = arith.constant 1 : index
    %c0_189 = arith.constant 0 : index
    %191 = vector.load %arg11[%c1_187, %c1_188, %c0_189] : memref<10x10x64xf32, #tpu.memory_space<vmem>>, vector<8x8x64xf32>
    %192 = vector.shape_cast %191 : vector<8x8x64xf32> to vector<64x64xf32>
    %193 = arith.truncf %192 : vector<64x64xf32> to vector<64x64xbf16>
    %c4_190 = arith.constant 4 : index
    %c0_191 = arith.constant 0 : index
    %c0_192 = arith.constant 0 : index
    %194 = vector.load %arg5[%c4_190, %c0_191, %c0_192] : memref<9x64x64xbf16, #tpu.memory_space<vmem>>, vector<1x64x64xbf16>
    %195 = vector.shape_cast %194 : vector<1x64x64xbf16> to vector<64x64xbf16>
    %cst_193 = arith.constant dense<0.000000e+00> : vector<64x64xf32>
    %196 = tpu.matmul %193, %195, %cst_193 {dimension_numbers = #tpu.dot_dimension_numbers<[1], [0], [0], [1], [0, 0, 1, 1], [], []>} : vector<64x64xbf16>, vector<64x64xbf16>, vector<64x64xf32> -> vector<64x64xf32>
    %197 = arith.addf %190, %196 : vector<64x64xf32>
    %c1_194 = arith.constant 1 : index
    %c2_195 = arith.constant 2 : index
    %c0_196 = arith.constant 0 : index
    %198 = vector.load %arg11[%c1_194, %c2_195, %c0_196] : memref<10x10x64xf32, #tpu.memory_space<vmem>>, vector<8x8x64xf32>
    %199 = vector.shape_cast %198 : vector<8x8x64xf32> to vector<64x64xf32>
    %200 = arith.truncf %199 : vector<64x64xf32> to vector<64x64xbf16>
    %c5_197 = arith.constant 5 : index
    %c0_198 = arith.constant 0 : index
    %c0_199 = arith.constant 0 : index
    %201 = vector.load %arg5[%c5_197, %c0_198, %c0_199] : memref<9x64x64xbf16, #tpu.memory_space<vmem>>, vector<1x64x64xbf16>
    %202 = vector.shape_cast %201 : vector<1x64x64xbf16> to vector<64x64xbf16>
    %cst_200 = arith.constant dense<0.000000e+00> : vector<64x64xf32>
    %203 = tpu.matmul %200, %202, %cst_200 {dimension_numbers = #tpu.dot_dimension_numbers<[1], [0], [0], [1], [0, 0, 1, 1], [], []>} : vector<64x64xbf16>, vector<64x64xbf16>, vector<64x64xf32> -> vector<64x64xf32>
    %204 = arith.addf %197, %203 : vector<64x64xf32>
    %c2_201 = arith.constant 2 : index
    %c0_202 = arith.constant 0 : index
    %c0_203 = arith.constant 0 : index
    %205 = vector.load %arg11[%c2_201, %c0_202, %c0_203] : memref<10x10x64xf32, #tpu.memory_space<vmem>>, vector<8x8x64xf32>
    %206 = vector.shape_cast %205 : vector<8x8x64xf32> to vector<64x64xf32>
    %207 = arith.truncf %206 : vector<64x64xf32> to vector<64x64xbf16>
    %c6_204 = arith.constant 6 : index
    %c0_205 = arith.constant 0 : index
    %c0_206 = arith.constant 0 : index
    %208 = vector.load %arg5[%c6_204, %c0_205, %c0_206] : memref<9x64x64xbf16, #tpu.memory_space<vmem>>, vector<1x64x64xbf16>
    %209 = vector.shape_cast %208 : vector<1x64x64xbf16> to vector<64x64xbf16>
    %cst_207 = arith.constant dense<0.000000e+00> : vector<64x64xf32>
    %210 = tpu.matmul %207, %209, %cst_207 {dimension_numbers = #tpu.dot_dimension_numbers<[1], [0], [0], [1], [0, 0, 1, 1], [], []>} : vector<64x64xbf16>, vector<64x64xbf16>, vector<64x64xf32> -> vector<64x64xf32>
    %211 = arith.addf %204, %210 : vector<64x64xf32>
    %c2_208 = arith.constant 2 : index
    %c1_209 = arith.constant 1 : index
    %c0_210 = arith.constant 0 : index
    %212 = vector.load %arg11[%c2_208, %c1_209, %c0_210] : memref<10x10x64xf32, #tpu.memory_space<vmem>>, vector<8x8x64xf32>
    %213 = vector.shape_cast %212 : vector<8x8x64xf32> to vector<64x64xf32>
    %214 = arith.truncf %213 : vector<64x64xf32> to vector<64x64xbf16>
    %c7_211 = arith.constant 7 : index
    %c0_212 = arith.constant 0 : index
    %c0_213 = arith.constant 0 : index
    %215 = vector.load %arg5[%c7_211, %c0_212, %c0_213] : memref<9x64x64xbf16, #tpu.memory_space<vmem>>, vector<1x64x64xbf16>
    %216 = vector.shape_cast %215 : vector<1x64x64xbf16> to vector<64x64xbf16>
    %cst_214 = arith.constant dense<0.000000e+00> : vector<64x64xf32>
    %217 = tpu.matmul %214, %216, %cst_214 {dimension_numbers = #tpu.dot_dimension_numbers<[1], [0], [0], [1], [0, 0, 1, 1], [], []>} : vector<64x64xbf16>, vector<64x64xbf16>, vector<64x64xf32> -> vector<64x64xf32>
    %218 = arith.addf %211, %217 : vector<64x64xf32>
    %c2_215 = arith.constant 2 : index
    %c2_216 = arith.constant 2 : index
    %c0_217 = arith.constant 0 : index
    %219 = vector.load %arg11[%c2_215, %c2_216, %c0_217] : memref<10x10x64xf32, #tpu.memory_space<vmem>>, vector<8x8x64xf32>
    %220 = vector.shape_cast %219 : vector<8x8x64xf32> to vector<64x64xf32>
    %221 = arith.truncf %220 : vector<64x64xf32> to vector<64x64xbf16>
    %c8_218 = arith.constant 8 : index
    %c0_219 = arith.constant 0 : index
    %c0_220 = arith.constant 0 : index
    %222 = vector.load %arg5[%c8_218, %c0_219, %c0_220] : memref<9x64x64xbf16, #tpu.memory_space<vmem>>, vector<1x64x64xbf16>
    %223 = vector.shape_cast %222 : vector<1x64x64xbf16> to vector<64x64xbf16>
    %cst_221 = arith.constant dense<0.000000e+00> : vector<64x64xf32>
    %224 = tpu.matmul %221, %223, %cst_221 {dimension_numbers = #tpu.dot_dimension_numbers<[1], [0], [0], [1], [0, 0, 1, 1], [], []>} : vector<64x64xbf16>, vector<64x64xbf16>, vector<64x64xf32> -> vector<64x64xf32>
    %225 = arith.addf %218, %224 : vector<64x64xf32>
    %c3_222 = arith.constant 3 : index
    %c0_223 = arith.constant 0 : index
    %c0_224 = arith.constant 0 : index
    %226 = vector.load %arg7[%c3_222, %c0_223, %c0_224] : memref<5x1x64xf32, #tpu.memory_space<vmem>>, vector<1x1x64xf32>
    %227 = vector.shape_cast %226 : vector<1x1x64xf32> to vector<1x64xf32>
    %228 = vector.broadcast %227 : vector<1x64xf32> to vector<64x64xf32>
    %229 = arith.addf %225, %228 : vector<64x64xf32>
    %230 = math.tanh %229 : vector<64x64xf32>
    %231 = vector.shape_cast %230 : vector<64x64xf32> to vector<8x8x64xf32>
    %c1_225 = arith.constant 1 : index
    %c1_226 = arith.constant 1 : index
    %c0_227 = arith.constant 0 : index
    %232 = vector.load %arg10[%c1_225, %c1_226, %c0_227] : memref<10x10x64xf32, #tpu.memory_space<vmem>>, vector<8x8x64xf32>
    tpu.vector_store %arg10[%c1_225, %c1_226, %c0_227], %231 {strides = array<i32>} : memref<10x10x64xf32, #tpu.memory_space<vmem>>, vector<8x8x64xf32>,
    %cst_228 = arith.constant 0.000000e+00 : f32
    %233 = vector.broadcast %cst_228 : f32 to vector<64x64xf32>
    %c0_229 = arith.constant 0 : index
    %c0_230 = arith.constant 0 : index
    %c0_231 = arith.constant 0 : index
    %234 = vector.load %arg10[%c0_229, %c0_230, %c0_231] : memref<10x10x64xf32, #tpu.memory_space<vmem>>, vector<8x8x64xf32>
    %235 = vector.shape_cast %234 : vector<8x8x64xf32> to vector<64x64xf32>
    %236 = arith.truncf %235 : vector<64x64xf32> to vector<64x64xbf16>
    %c0_232 = arith.constant 0 : index
    %c0_233 = arith.constant 0 : index
    %c0_234 = arith.constant 0 : index
    %237 = vector.load %arg6[%c0_232, %c0_233, %c0_234] : memref<9x64x64xbf16, #tpu.memory_space<vmem>>, vector<1x64x64xbf16>
    %238 = vector.shape_cast %237 : vector<1x64x64xbf16> to vector<64x64xbf16>
    %cst_235 = arith.constant dense<0.000000e+00> : vector<64x64xf32>
    %239 = tpu.matmul %236, %238, %cst_235 {dimension_numbers = #tpu.dot_dimension_numbers<[1], [0], [0], [1], [0, 0, 1, 1], [], []>} : vector<64x64xbf16>, vector<64x64xbf16>, vector<64x64xf32> -> vector<64x64xf32>
    %240 = arith.addf %233, %239 : vector<64x64xf32>
    %c0_236 = arith.constant 0 : index
    %c1_237 = arith.constant 1 : index
    %c0_238 = arith.constant 0 : index
    %241 = vector.load %arg10[%c0_236, %c1_237, %c0_238] : memref<10x10x64xf32, #tpu.memory_space<vmem>>, vector<8x8x64xf32>
    %242 = vector.shape_cast %241 : vector<8x8x64xf32> to vector<64x64xf32>
    %243 = arith.truncf %242 : vector<64x64xf32> to vector<64x64xbf16>
    %c1_239 = arith.constant 1 : index
    %c0_240 = arith.constant 0 : index
    %c0_241 = arith.constant 0 : index
    %244 = vector.load %arg6[%c1_239, %c0_240, %c0_241] : memref<9x64x64xbf16, #tpu.memory_space<vmem>>, vector<1x64x64xbf16>
    %245 = vector.shape_cast %244 : vector<1x64x64xbf16> to vector<64x64xbf16>
    %cst_242 = arith.constant dense<0.000000e+00> : vector<64x64xf32>
    %246 = tpu.matmul %243, %245, %cst_242 {dimension_numbers = #tpu.dot_dimension_numbers<[1], [0], [0], [1], [0, 0, 1, 1], [], []>} : vector<64x64xbf16>, vector<64x64xbf16>, vector<64x64xf32> -> vector<64x64xf32>
    %247 = arith.addf %240, %246 : vector<64x64xf32>
    %c0_243 = arith.constant 0 : index
    %c2_244 = arith.constant 2 : index
    %c0_245 = arith.constant 0 : index
    %248 = vector.load %arg10[%c0_243, %c2_244, %c0_245] : memref<10x10x64xf32, #tpu.memory_space<vmem>>, vector<8x8x64xf32>
    %249 = vector.shape_cast %248 : vector<8x8x64xf32> to vector<64x64xf32>
    %250 = arith.truncf %249 : vector<64x64xf32> to vector<64x64xbf16>
    %c2_246 = arith.constant 2 : index
    %c0_247 = arith.constant 0 : index
    %c0_248 = arith.constant 0 : index
    %251 = vector.load %arg6[%c2_246, %c0_247, %c0_248] : memref<9x64x64xbf16, #tpu.memory_space<vmem>>, vector<1x64x64xbf16>
    %252 = vector.shape_cast %251 : vector<1x64x64xbf16> to vector<64x64xbf16>
    %cst_249 = arith.constant dense<0.000000e+00> : vector<64x64xf32>
    %253 = tpu.matmul %250, %252, %cst_249 {dimension_numbers = #tpu.dot_dimension_numbers<[1], [0], [0], [1], [0, 0, 1, 1], [], []>} : vector<64x64xbf16>, vector<64x64xbf16>, vector<64x64xf32> -> vector<64x64xf32>
    %254 = arith.addf %247, %253 : vector<64x64xf32>
    %c1_250 = arith.constant 1 : index
    %c0_251 = arith.constant 0 : index
    %c0_252 = arith.constant 0 : index
    %255 = vector.load %arg10[%c1_250, %c0_251, %c0_252] : memref<10x10x64xf32, #tpu.memory_space<vmem>>, vector<8x8x64xf32>
    %256 = vector.shape_cast %255 : vector<8x8x64xf32> to vector<64x64xf32>
    %257 = arith.truncf %256 : vector<64x64xf32> to vector<64x64xbf16>
    %c3_253 = arith.constant 3 : index
    %c0_254 = arith.constant 0 : index
    %c0_255 = arith.constant 0 : index
    %258 = vector.load %arg6[%c3_253, %c0_254, %c0_255] : memref<9x64x64xbf16, #tpu.memory_space<vmem>>, vector<1x64x64xbf16>
    %259 = vector.shape_cast %258 : vector<1x64x64xbf16> to vector<64x64xbf16>
    %cst_256 = arith.constant dense<0.000000e+00> : vector<64x64xf32>
    %260 = tpu.matmul %257, %259, %cst_256 {dimension_numbers = #tpu.dot_dimension_numbers<[1], [0], [0], [1], [0, 0, 1, 1], [], []>} : vector<64x64xbf16>, vector<64x64xbf16>, vector<64x64xf32> -> vector<64x64xf32>
    %261 = arith.addf %254, %260 : vector<64x64xf32>
    %c1_257 = arith.constant 1 : index
    %c1_258 = arith.constant 1 : index
    %c0_259 = arith.constant 0 : index
    %262 = vector.load %arg10[%c1_257, %c1_258, %c0_259] : memref<10x10x64xf32, #tpu.memory_space<vmem>>, vector<8x8x64xf32>
    %263 = vector.shape_cast %262 : vector<8x8x64xf32> to vector<64x64xf32>
    %264 = arith.truncf %263 : vector<64x64xf32> to vector<64x64xbf16>
    %c4_260 = arith.constant 4 : index
    %c0_261 = arith.constant 0 : index
    %c0_262 = arith.constant 0 : index
    %265 = vector.load %arg6[%c4_260, %c0_261, %c0_262] : memref<9x64x64xbf16, #tpu.memory_space<vmem>>, vector<1x64x64xbf16>
    %266 = vector.shape_cast %265 : vector<1x64x64xbf16> to vector<64x64xbf16>
    %cst_263 = arith.constant dense<0.000000e+00> : vector<64x64xf32>
    %267 = tpu.matmul %264, %266, %cst_263 {dimension_numbers = #tpu.dot_dimension_numbers<[1], [0], [0], [1], [0, 0, 1, 1], [], []>} : vector<64x64xbf16>, vector<64x64xbf16>, vector<64x64xf32> -> vector<64x64xf32>
    %268 = arith.addf %261, %267 : vector<64x64xf32>
    %c1_264 = arith.constant 1 : index
    %c2_265 = arith.constant 2 : index
    %c0_266 = arith.constant 0 : index
    %269 = vector.load %arg10[%c1_264, %c2_265, %c0_266] : memref<10x10x64xf32, #tpu.memory_space<vmem>>, vector<8x8x64xf32>
    %270 = vector.shape_cast %269 : vector<8x8x64xf32> to vector<64x64xf32>
    %271 = arith.truncf %270 : vector<64x64xf32> to vector<64x64xbf16>
    %c5_267 = arith.constant 5 : index
    %c0_268 = arith.constant 0 : index
    %c0_269 = arith.constant 0 : index
    %272 = vector.load %arg6[%c5_267, %c0_268, %c0_269] : memref<9x64x64xbf16, #tpu.memory_space<vmem>>, vector<1x64x64xbf16>
    %273 = vector.shape_cast %272 : vector<1x64x64xbf16> to vector<64x64xbf16>
    %cst_270 = arith.constant dense<0.000000e+00> : vector<64x64xf32>
    %274 = tpu.matmul %271, %273, %cst_270 {dimension_numbers = #tpu.dot_dimension_numbers<[1], [0], [0], [1], [0, 0, 1, 1], [], []>} : vector<64x64xbf16>, vector<64x64xbf16>, vector<64x64xf32> -> vector<64x64xf32>
    %275 = arith.addf %268, %274 : vector<64x64xf32>
    %c2_271 = arith.constant 2 : index
    %c0_272 = arith.constant 0 : index
    %c0_273 = arith.constant 0 : index
    %276 = vector.load %arg10[%c2_271, %c0_272, %c0_273] : memref<10x10x64xf32, #tpu.memory_space<vmem>>, vector<8x8x64xf32>
    %277 = vector.shape_cast %276 : vector<8x8x64xf32> to vector<64x64xf32>
    %278 = arith.truncf %277 : vector<64x64xf32> to vector<64x64xbf16>
    %c6_274 = arith.constant 6 : index
    %c0_275 = arith.constant 0 : index
    %c0_276 = arith.constant 0 : index
    %279 = vector.load %arg6[%c6_274, %c0_275, %c0_276] : memref<9x64x64xbf16, #tpu.memory_space<vmem>>, vector<1x64x64xbf16>
    %280 = vector.shape_cast %279 : vector<1x64x64xbf16> to vector<64x64xbf16>
    %cst_277 = arith.constant dense<0.000000e+00> : vector<64x64xf32>
    %281 = tpu.matmul %278, %280, %cst_277 {dimension_numbers = #tpu.dot_dimension_numbers<[1], [0], [0], [1], [0, 0, 1, 1], [], []>} : vector<64x64xbf16>, vector<64x64xbf16>, vector<64x64xf32> -> vector<64x64xf32>
    %282 = arith.addf %275, %281 : vector<64x64xf32>
    %c2_278 = arith.constant 2 : index
    %c1_279 = arith.constant 1 : index
    %c0_280 = arith.constant 0 : index
    %283 = vector.load %arg10[%c2_278, %c1_279, %c0_280] : memref<10x10x64xf32, #tpu.memory_space<vmem>>, vector<8x8x64xf32>
    %284 = vector.shape_cast %283 : vector<8x8x64xf32> to vector<64x64xf32>
    %285 = arith.truncf %284 : vector<64x64xf32> to vector<64x64xbf16>
    %c7_281 = arith.constant 7 : index
    %c0_282 = arith.constant 0 : index
    %c0_283 = arith.constant 0 : index
    %286 = vector.load %arg6[%c7_281, %c0_282, %c0_283] : memref<9x64x64xbf16, #tpu.memory_space<vmem>>, vector<1x64x64xbf16>
    %287 = vector.shape_cast %286 : vector<1x64x64xbf16> to vector<64x64xbf16>
    %cst_284 = arith.constant dense<0.000000e+00> : vector<64x64xf32>
    %288 = tpu.matmul %285, %287, %cst_284 {dimension_numbers = #tpu.dot_dimension_numbers<[1], [0], [0], [1], [0, 0, 1, 1], [], []>} : vector<64x64xbf16>, vector<64x64xbf16>, vector<64x64xf32> -> vector<64x64xf32>
    %289 = arith.addf %282, %288 : vector<64x64xf32>
    %c2_285 = arith.constant 2 : index
    %c2_286 = arith.constant 2 : index
    %c0_287 = arith.constant 0 : index
    %290 = vector.load %arg10[%c2_285, %c2_286, %c0_287] : memref<10x10x64xf32, #tpu.memory_space<vmem>>, vector<8x8x64xf32>
    %291 = vector.shape_cast %290 : vector<8x8x64xf32> to vector<64x64xf32>
    %292 = arith.truncf %291 : vector<64x64xf32> to vector<64x64xbf16>
    %c8_288 = arith.constant 8 : index
    %c0_289 = arith.constant 0 : index
    %c0_290 = arith.constant 0 : index
    %293 = vector.load %arg6[%c8_288, %c0_289, %c0_290] : memref<9x64x64xbf16, #tpu.memory_space<vmem>>, vector<1x64x64xbf16>
    %294 = vector.shape_cast %293 : vector<1x64x64xbf16> to vector<64x64xbf16>
    %cst_291 = arith.constant dense<0.000000e+00> : vector<64x64xf32>
    %295 = tpu.matmul %292, %294, %cst_291 {dimension_numbers = #tpu.dot_dimension_numbers<[1], [0], [0], [1], [0, 0, 1, 1], [], []>} : vector<64x64xbf16>, vector<64x64xbf16>, vector<64x64xf32> -> vector<64x64xf32>
    %296 = arith.addf %289, %295 : vector<64x64xf32>
    %c4_292 = arith.constant 4 : index
    %c0_293 = arith.constant 0 : index
    %c0_294 = arith.constant 0 : index
    %297 = vector.load %arg7[%c4_292, %c0_293, %c0_294] : memref<5x1x64xf32, #tpu.memory_space<vmem>>, vector<1x1x64xf32>
    %298 = vector.shape_cast %297 : vector<1x1x64xf32> to vector<1x64xf32>
    %299 = vector.broadcast %298 : vector<1x64xf32> to vector<64x64xf32>
    %300 = arith.addf %296, %299 : vector<64x64xf32>
    %301 = arith.addf %300, %159 : vector<64x64xf32>
    %302 = math.tanh %301 : vector<64x64xf32>
    %c0_295 = arith.constant 0 : index
    %c0_296 = arith.constant 0 : index
    %c0_297 = arith.constant 0 : index
    %303 = vector.load %arg8[%c0_295, %c0_296, %c0_297] : memref<1x64x64xf32, #tpu.memory_space<vmem>>, vector<1x64x64xf32>
    %304 = vector.shape_cast %303 : vector<1x64x64xf32> to vector<64x64xf32>
    %305 = vector.shape_cast %302 : vector<64x64xf32> to vector<1x64x64xf32>
    tpu.vector_store %arg8[%c0_295, %c0_296, %c0_297], %305 {strides = array<i32>} : memref<1x64x64xf32, #tpu.memory_space<vmem>>, vector<1x64x64xf32>,
    return
  }
  func.func @transform_0(%arg0: i32) -> (i32, i32, i32, i32) {
    %c0_i32 = arith.constant 0 : i32
    %c0_i32_0 = arith.constant 0 : i32
    %c0_i32_1 = arith.constant 0 : i32
    %c0_i32_2 = arith.constant 0 : i32
    return %arg0, %c0_i32, %c0_i32_0, %c0_i32_1 : i32, i32, i32, i32
  }
  func.func @transform_1(%arg0: i32) -> (i32, i32, i32) {
    %c0_i32 = arith.constant 0 : i32
    %c0_i32_0 = arith.constant 0 : i32
    %c0_i32_1 = arith.constant 0 : i32
    %c0_i32_2 = arith.constant 0 : i32
    return %c0_i32, %c0_i32_0, %c0_i32_1 : i32, i32, i32
  }
  func.func @transform_2(%arg0: i32) -> (i32, i32, i32) {
    %c0_i32 = arith.constant 0 : i32
    %c0_i32_0 = arith.constant 0 : i32
    %c0_i32_1 = arith.constant 0 : i32
    %c0_i32_2 = arith.constant 0 : i32
    return %c0_i32, %c0_i32_0, %c0_i32_1 : i32, i32, i32
  }
  func.func @transform_3(%arg0: i32) -> (i32, i32) {
    %c0_i32 = arith.constant 0 : i32
    %c0_i32_0 = arith.constant 0 : i32
    %c0_i32_1 = arith.constant 0 : i32
    return %c0_i32, %c0_i32_0 : i32, i32
  }
  func.func @transform_4(%arg0: i32) -> (i32, i32, i32) {
    %c0_i32 = arith.constant 0 : i32
    %c0_i32_0 = arith.constant 0 : i32
    %c0_i32_1 = arith.constant 0 : i32
    %c0_i32_2 = arith.constant 0 : i32
    return %c0_i32, %c0_i32_0, %c0_i32_1 : i32, i32, i32
  }
  func.func @transform_5(%arg0: i32) -> (i32, i32, i32) {
    %c0_i32 = arith.constant 0 : i32
    %c0_i32_0 = arith.constant 0 : i32
    %c0_i32_1 = arith.constant 0 : i32
    %c0_i32_2 = arith.constant 0 : i32
    return %c0_i32, %c0_i32_0, %c0_i32_1 : i32, i32, i32
  }
  func.func @transform_6(%arg0: i32) -> (i32, i32, i32) {
    %c0_i32 = arith.constant 0 : i32
    %c0_i32_0 = arith.constant 0 : i32
    %c0_i32_1 = arith.constant 0 : i32
    %c0_i32_2 = arith.constant 0 : i32
    return %c0_i32, %c0_i32_0, %c0_i32_1 : i32, i32, i32
  }
  func.func @transform_7(%arg0: i32) -> (i32, i32, i32) {
    %c0_i32 = arith.constant 0 : i32
    %c0_i32_0 = arith.constant 0 : i32
    %c0_i32_1 = arith.constant 0 : i32
    return %arg0, %c0_i32, %c0_i32_0 : i32, i32, i32
  }
}

</mosaic_0001>

<bundles_post_ra>
// kernel: tile.28
= control target key start
LH: loop header
LB: loop body
LE: loop exit
PB: predicated region body
PF: predicated region fallthrough
CT: control target
= control target key end

     0   :  { %2 = vsyncpa [#allocation1], 0  ;;  %s48_s8 = smov [#allocation0]   ;;  %s65_s0 = inlined_call_operand.hbm [shape: f32[8], index: 0, kind: input, shape index: {}]   ;;  %s66_s1 = inlined_call_operand.vmem [shape: f32[8,8], index: 1, kind: output, shape index: {}]  }
   0x1   :  { %s8_s0 = sshll.u32 %s65_s0, 4  ;;  %s10_s9 = sshll.u32 %s48_s8, 4  ;;  %s9_s0 = int_to_ptr.hbm [resolvable:$true] %s8_s0  ;;  %s11_s9 = int_to_ptr.vmem [resolvable:$true] %s10_s9 }
   0x2   :  { %13 = dma.hbm_to_vmem [thread:$0]  %s9_s0, 16, %s11_s9, [#allocation1]  }
   0x3   :  { %46 = dma.done.wait [#allocation1], 16  }
   0x4   :  { %47 = vsyncadd [#allocation1], 4294967280  ;;  %v18_v0 = vld [vmem:[#allocation0] ss:$0 sm:$0xff] }
   0x5   :  { %19 = vst [vmem:[%s66_s1] sm:$0xff] %v18_v0 }
   0x6   :  { %20 = vsyncpa [#allocation1], 1 }

// kernel: tile.45
= control target key start
LH: loop header
LB: loop body
LE: loop exit
PB: predicated region body
PF: predicated region fallthrough
CT: control target
= control target key end

     0   :  { %s67_s10 = smov 56   ;;  %s68_s11 = smov 40   ;;  %vm3_vm0 = vcmask 64512   ;;  %vm9_vm1 = vcmask 523712   ;;  %vm15_vm2 = vcmask 458112   ;;  %vm21_vm3 = vcmask 392512   ;;  %s111_s0 = inlined_call_operand.vmem [shape: f32[8,8], index: 0, kind: input, shape index: {}]   ;;  %s112_s1 = inlined_call_operand.vmem [shape: f32[1,1,64], index: 1, kind: output, shape index: {}]  }
   0x1   :  { %v53_v0 = vld [vmem:[%s111_s0 + $0x7] sm:$0x1]   ;;  %v55_v1 = vld [vmem:[%s111_s0 + $0x5] sm:$0x1]   ;;  %v57_v2 = vld [vmem:[%s111_s0 + $0x3] sm:$0x1]  }
   0x2   :  { %7 = vrot.lane.b32.xlu0 %v53_v0, %s67_s10  ;;  %19 = vrot.lane.b32.xlu1 %v55_v1, %s68_s11  ;;  %s69_s14 = smov 24   ;;  %v54_v3 = vld [vmem:[%s111_s0 + $0x6] sm:$0x1]   ;;  %v56_v4 = vld [vmem:[%s111_s0 + $0x4] sm:$0x1]   ;;  %s70_s21 = smov 48  }
   0x3   :  { %31 = vrot.lane.b32.xlu2 %v57_v2, %s69_s14  ;;  %v58_v5 = vld [vmem:[%s111_s0 + $0x2] sm:$0x1]   ;;  %s71_s22 = smov 32   ;;  %s72_s23 = smov 16   ;;  %v59_v6 = vld [vmem:[%s111_s0 + $0x1] sm:$0x1]  }
   0x4   :  { %s73_s26 = smov 8   ;;  %v2_v7 = vld [vmem:[%s111_s0] sm:$0x1]   ;;  %vm27_vm4 = vcmask 326912   ;;  %vm33_vm5 = vcmask 261312   ;;  %vm39_vm6 = vcmask 195712  }
   0x5   :  { %4 = vst.msk [vmem:[#allocation0] sm:$0x1] %vm3_vm0, %v2_v7   ;;  %vm45_vm7 = vcmask 130112  }
   0xa   :  { %13 = vrot.lane.b32.xlu0 %v54_v3, %s70_s21  ;;  %25 = vrot.lane.b32.xlu1 %v56_v4, %s71_s22 }
   0xb   :  { %37 = vrot.lane.b32.xlu2 %v58_v5, %s72_s23 }
  0x12   :  { %43 = vrot.lane.b32.xlu0 %v59_v6, %s73_s26 }
  0x5d   :  { %v32_v8 = vpop.permute.xlu2 %31  }
  0x65   :  { %v38_v9 = vpop.permute.xlu2 %37  }
  0x74   :  { %v8_v10 = vpop.permute.xlu0 %7   ;;  %v20_v11 = vpop.permute.xlu1 %19  }
  0x75   :  { %10 = vst.msk [vmem:[#allocation0] sm:$0x1] %vm9_vm1, %v8_v10  }
  0x7c   :  { %v14_v12 = vpop.permute.xlu0 %13   ;;  %v26_v13 = vpop.permute.xlu1 %25  }
  0x7d   :  { %16 = vst.msk [vmem:[#allocation0] sm:$0x1] %vm15_vm2, %v14_v12  }
  0x7e   :  { %22 = vst.msk [vmem:[#allocation0] sm:$0x1] %vm21_vm3, %v20_v11  }
  0x7f   :  { %28 = vst.msk [vmem:[#allocation0] sm:$0x1] %vm27_vm4, %v26_v13  }
  0x80   :  { %34 = vst.msk [vmem:[#allocation0] sm:$0x1] %vm33_vm5, %v32_v8  }
  0x81   :  { %40 = vst.msk [vmem:[#allocation0] sm:$0x1] %vm39_vm6, %v38_v9  }
  0x84   :  { %v44_v14 = vpop.permute.xlu0 %43  }
  0x85   :  { %46 = vst.msk [vmem:[#allocation0] sm:$0x1] %vm45_vm7, %v44_v14  }
  0x8c   :  { %v49_v15 = vld [vmem:[#allocation0] sm:$0x1] }
  0x8d   :  { %52 = vst [vmem:[%s112_s1] sm:$0x1] %v49_v15 }

// kernel: double_res.1
= control target key start
LH: loop header
LB: loop body
LE: loop exit
PB: predicated region body
PF: predicated region fallthrough
CT: control target
= control target key end

     0   :  { %s4987_s24 = smov 0   ;;  %s6425_s0 = inlined_call_operand.vmem [shape: bf16[2,8,8,32], index: 0, kind: input, shape index: {}]   ;;  %s6426_s1 = inlined_call_operand.vmem [shape: bf16[9,32,64], index: 1, kind: input, shape index: {}]   ;;  %s6427_s2 = inlined_call_operand.vmem [shape: bf16[9,64,64], index: 2, kind: input, shape index: {}]   ;;  %s6428_s3 = inlined_call_operand.vmem [shape: bf16[32,64], index: 3, kind: input, shape index: {}]   ;;  %s6429_s4 = inlined_call_operand.vmem [shape: bf16[9,64,64], index: 4, kind: input, shape index: {}]   ;;  %s6430_s5 = inlined_call_operand.vmem [shape: bf16[9,64,64], index: 5, kind: input, shape index: {}]   ;;  %s6431_s6 = inlined_call_operand.vmem [shape: f32[5,1,64], index: 6, kind: input, shape index: {}]   ;;  %s6432_s7 = inlined_call_operand.vmem [shape: f32[2,64,64], index: 7, kind: output, shape index: {}]  }
   0x1 LB: > { %s3806_s25 = sadd.s32 4294967295, %s4944_s24   ;;  %p3810_p0 = scmp.ge.s32.totalorder %s4944_s24, 1  ;;  %s4944_s24 = sphi %s4987_s24, %s17_s24  }
   0x2   : > { %p237_p1 = scmp.lt.s32.totalorder %s4944_s24, 3 }
   0x4   : > { %p238_p2 = pnand %p3810_p0, %p237_p1 }
   0x6   : > { %241 = sbr.rel (%p238_p2) target bundleno = 1170 (0x492), region = 48 }
   0xb   : > { %v4710_v0 = vld [vmem:[%s6426_s1 + $0x18] sm:$0xff]  ;;  %p269_p3 = scmp.lt.s32.totalorder %s3806_s25, 1  ;;  %vm280_vm0 = vcmask 261120   ;;  %vm282_vm1 = vcmask 254976   ;;  %v4946_v1 = vmov 0.0   ;;  %v4709_v2 = vld [vmem:[%s6426_s1 + $0x10] sm:$0xff] }
   0xc   : > { %286 = vst.msk [vmem:[#allocation2 + $0x20] sm:$0xff] %vm280_vm0, %v4946_v1  ;;  %4854 = vmatpush.bf16.msra.mxu1 %v4710_v0  ;;  %4855 = vmatpush.bf16.msra.mxu2 %v4710_v0  ;;  %v4712_v3 = vld [vmem:[%s6426_s1 + $0x28] sm:$0xff]  ;;  %v4714_v4 = vld [vmem:[%s6426_s1 + $0x38] sm:$0xff]  ;;  %v4711_v11 = vld [vmem:[%s6426_s1 + $0x20] sm:$0xff]  ;;  %vm302_vm2 = vcmask 523264   ;;  %vm304_vm3 = vcmask 517120  }
   0xd   : > { %s6440_s25 = smov (!%p269_p3, %s3806_s25), 1  ;;  %287 = vst.msk [vmem:[#allocation2 + $0x28] sm:$0x3] %vm282_vm1, %v4946_v1  ;;  %4856 = vmatpush.bf16.msra.mxu3 %v4710_v0  ;;  %432 = vmatpush.bf16.msra.mxu0 %v4710_v0  ;;  %v4708_v5 = vld [vmem:[%s6426_s1 + $0x8] sm:$0xff]  ;;  %v4713_v12 = vld [vmem:[%s6426_s1 + $0x30] sm:$0xff]  ;;  %v4707_v13 = vld [vmem:[%s6426_s1] sm:$0xff] }
   0xe   : > { %288 = vst.msk [vmem:[#allocation2 + $0x30] sm:$0xff] %vm280_vm0, %v4946_v1  ;;  %s4705_s30 = sshll.u32 %s6440_s25, 5  ;;  %v4716_v10 = vld [vmem:[%s6426_s1 + $0x48] sm:$0xff]  ;;  %v4715_v14 = vld [vmem:[%s6426_s1 + $0x40] sm:$0xff]  ;;  %v4718_v23 = vld [vmem:[%s6426_s1 + $0x58] sm:$0xff]  ;;  %s4706_s21 = sshll.u32 %s6440_s25, 6 }
   0xf   : > { %289 = vst.msk [vmem:[#allocation2 + $0x38] sm:$0x3] %vm282_vm1, %v4946_v1  ;;  %s5018_s12 = scalar_lea.vmem %s6425_s0, %s4705_s30  ;;  %v4720_v28 = vld [vmem:[%s6426_s1 + $0x68] sm:$0xff]  ;;  %v4722_v34 = vld [vmem:[%s6426_s1 + $0x78] sm:$0xff]  ;;  %v4719_v49 = vld [vmem:[%s6426_s1 + $0x60] sm:$0xff]  ;;  %s6369_s26 = scalar_lea.vmem %s6432_s7, %s4706_s21 }
  0x10   : > { %281 = vst.msk [vmem:[#allocation2] sm:$0xff] %vm280_vm0, %v4946_v1  ;;  %4857 = vmatpush.bf16.msra.mxu1 %v4709_v2  ;;  %4858 = vmatpush.bf16.msra.mxu2 %v4709_v2  ;;  %v4836_v6 = vld [vmem:[%s5018_s12] sm:$0xff]   ;;  %v4851_v7 = vld [vmem:[%s5018_s12 + $0x8] sm:$0xff]   ;;  %v4852_v17 = vld [vmem:[%s5018_s12 + $0x10] sm:$0xff]  }
  0x11   : > { %283 = vst.msk [vmem:[#allocation2 + $0x8] sm:$0x3] %vm282_vm1, %v4946_v1  ;;  %4859 = vmatpush.bf16.msra.mxu3 %v4709_v2  ;;  %433 = vmatpush.bf16.msra.mxu0 %v4709_v2  ;;  %v4838_v8 = vunpack.c.h.bf16 %v4836_v6  ;;  %v4841_v9 = vunpack.c.l.bf16 %v4851_v7  ;;  %v4842_v19 = vunpack.c.h.bf16 %v4851_v7  ;;  %v4853_v20 = vld [vmem:[%s5018_s12 + $0x18] sm:$0xff]   ;;  %v4845_v21 = vunpack.c.l.bf16 %v4852_v17  ;;  %v4724_v38 = vld [vmem:[%s6426_s1 + $0x88] sm:$0xff]  ;;  %v4721_v50 = vld [vmem:[%s6426_s1 + $0x70] sm:$0xff] }
  0x12   : > { %284 = vst.msk [vmem:[#allocation2 + $0x10] sm:$0xff] %vm280_vm0, %v4946_v1  ;;  %v4846_v22 = vunpack.c.h.bf16 %v4852_v17  ;;  %v4849_v24 = vunpack.c.l.bf16 %v4853_v20  ;;  %v4837_v25 = vunpack.c.l.bf16 %v4836_v6  ;;  %v4717_v51 = vld [vmem:[%s6426_s1 + $0x50] sm:$0xff]  ;;  %v4723_v52 = vld [vmem:[%s6426_s1 + $0x80] sm:$0xff]  ;;  %v4850_v53 = vunpack.c.h.bf16 %v4853_v20 }
  0x13   : > { %285 = vst.msk [vmem:[#allocation2 + $0x18] sm:$0x3] %vm282_vm1, %v4946_v1 }
  0x14   : > { %555 = vmatpush.bf16.msrb.mxu2 %v4712_v3  ;;  %362 = vst.msk [vmem:[#allocation2 + $0x21] sm:$0xff] %vm280_vm0, %v4838_v8  ;;  %485 = vmatpush.bf16.msrb.mxu1 %v4708_v5 }
  0x15   : > { %633 = vmatpush.bf16.msrb.mxu3 %v4714_v4  ;;  %711 = vmatpush.bf16.msrb.mxu0 %v4716_v10  ;;  %363 = vst.msk [vmem:[#allocation2 + $0x31] sm:$0xff] %vm280_vm0, %v4841_v9 }
  0x16   : > { %290 = vst.msk [vmem:[#allocation2 + $0x40] sm:$0xff] %vm280_vm0, %v4946_v1 }
  0x17   : > { %291 = vst.msk [vmem:[#allocation2 + $0x48] sm:$0x3] %vm282_vm1, %v4946_v1  ;;  %v369_v32 = vld [vmem:[#allocation2] sm:$0xff] }
  0x18   : > { %556 = vmatpush.bf16.msrb.mxu2 %v4711_v11  ;;  %292 = vst.msk [vmem:[#allocation2 + $0x50] sm:$0xff] %vm280_vm0, %v4946_v1  ;;  %486 = vmatpush.bf16.msrb.mxu1 %v4707_v13  ;;  %v385_v31 = vld [vmem:[#allocation2 + $0x1] sm:$0xff] }
  0x19   : > { %634 = vmatpush.bf16.msrb.mxu3 %v4713_v12  ;;  %712 = vmatpush.bf16.msrb.mxu0 %v4715_v14  ;;  %293 = vst.msk [vmem:[#allocation2 + $0x58] sm:$0x3] %vm282_vm1, %v4946_v1  ;;  %v508_v41 = vld [vmem:[#allocation2 + $0x2] sm:$0xff] }
  0x1a   : > { %294 = vst.msk [vmem:[#allocation2 + $0x60] sm:$0xff] %vm280_vm0, %v4946_v1 }
  0x1b   : > { %v387_v15 = vld [vmem:[#allocation2 + $0x21] sm:$0xff]  ;;  %295 = vst.msk [vmem:[#allocation2 + $0x68] sm:$0x3] %vm282_vm1, %v4946_v1 }
  0x1c   : > { %v5065_v16 = vld [vmem:[#allocation2 + $0x31] sm:$0xff]  ;;  %296 = vst.msk [vmem:[#allocation2 + $0x70] sm:$0xff] %vm280_vm0, %v4946_v1  ;;  %v587_v43 = vld [vmem:[#allocation2 + $0x20] sm:$0xff] }
  0x1d   : > { %v5071_v18 = vpack.c.bf16 %v5065_v16, %v387_v15  ;;  %297 = vst.msk [vmem:[#allocation2 + $0x78] sm:$0x3] %vm282_vm1, %v4946_v1  ;;  %v372_v45 = vld [vmem:[#allocation2 + $0x30] sm:$0xff]  ;;  %v510_v54 = vld [vmem:[#allocation2 + $0x22] sm:$0xff] }
  0x1e   : > { %298 = vst.msk [vmem:[#allocation2 + $0x80] sm:$0xff] %vm280_vm0, %v4946_v1  ;;  %v378_v48 = vpack.c.bf16 %v372_v45, %v587_v43  ;;  %v511_v55 = vld [vmem:[#allocation2 + $0x32] sm:$0xff] }
  0x1f   : > { %3828 = vmatmul.msk.bf16.vlgmr.msra.gmra.mxu1 %vm280_vm0, %v5071_v18  ;;  %299 = vst.msk [vmem:[#allocation2 + $0x88] sm:$0x3] %vm282_vm1, %v4946_v1  ;;  %v517_v57 = vpack.c.bf16 %v511_v55, %v510_v54 }
  0x20   : > { %300 = vst.msk [vmem:[#allocation2 + $0x90] sm:$0xff] %vm280_vm0, %v4946_v1  ;;  %789 = vmatpush.bf16.msra.mxu1 %v4718_v23 }
  0x21   : > { %301 = vst.msk [vmem:[#allocation2 + $0x98] sm:$0x3] %vm282_vm1, %v4946_v1 }
  0x22   : > { %364 = vst.msk [vmem:[#allocation2 + $0x41] sm:$0xff] %vm280_vm0, %v4842_v19 }
  0x23   : > { %365 = vst.msk [vmem:[#allocation2 + $0x51] sm:$0xff] %vm280_vm0, %v4845_v21 }
  0x24   : > { %366 = vst.msk [vmem:[#allocation2 + $0x61] sm:$0xff] %vm280_vm0, %v4846_v22  ;;  %790 = vmatpush.bf16.msra.mxu1 %v4717_v51 }
  0x25   : > { %367 = vst.msk [vmem:[#allocation2 + $0x71] sm:$0xff] %vm280_vm0, %v4849_v24 }
  0x26   : > { %361 = vst.msk [vmem:[#allocation2 + $0x11] sm:$0xff] %vm280_vm0, %v4837_v25 }
  0x27   : > { %368 = vst.msk [vmem:[#allocation2 + $0x81] sm:$0xff] %vm280_vm0, %v4850_v53  ;;  %v828_v21 = vld [vmem:[#allocation2 + $0x90] sm:$0xff] }
  0x28   : > { %v906_v22 = vld [vmem:[#allocation2 + $0x91] sm:$0xff]  ;;  %306 = vst.msk [vmem:[#allocation3 + $0x10] sm:$0xff] %vm302_vm2, %v4946_v1 }
  0x29   : > { %v389_v26 = vld [vmem:[#allocation2 + $0x41] sm:$0xff]  ;;  %v984_v24 = vld [vmem:[#allocation2 + $0x92] sm:$0xff]  ;;  %307 = vst.msk [vmem:[#allocation3 + $0x18] sm:$0x3] %vm304_vm3, %v4946_v1 }
  0x2a   : > { %v5094_v27 = vld [vmem:[#allocation2 + $0x51] sm:$0xff]  ;;  %v589_v56 = vld [vmem:[#allocation2 + $0x40] sm:$0xff]  ;;  %v673_v60 = vpack.c.bf16 %v389_v26, %v5065_v16  ;;  %303 = vst.msk [vmem:[#allocation3] sm:$0xff] %vm302_vm2, %v4946_v1 }
  0x2b   : > { %v5100_v29 = vpack.c.bf16 %v5094_v27, %v389_v26  ;;  %v5102_v30 = vld [vmem:[#allocation2 + $0x61] sm:$0xff]  ;;  %v374_v58 = vld [vmem:[#allocation2 + $0x50] sm:$0xff]  ;;  %v595_v59 = vpack.c.bf16 %v589_v56, %v372_v45  ;;  %305 = vst.msk [vmem:[#allocation3 + $0x8] sm:$0x3] %vm304_vm3, %v4946_v1 }
  0x2c   : > { %v5104_v33 = vld [vmem:[#allocation2 + $0x71] sm:$0xff]  ;;  %v379_v61 = vpack.c.bf16 %v374_v58, %v589_v56  ;;  %v512_v62 = vld [vmem:[#allocation2 + $0x42] sm:$0xff]  ;;  %v674_v5 = vpack.c.bf16 %v5102_v30, %v5094_v27  ;;  %308 = vst.msk [vmem:[#allocation3 + $0x20] sm:$0xff] %vm302_vm2, %v4946_v1 }
  0x2d   : > { %3829 = vmatmul.msk.bf16.vlgmr.msra.gmra.mxu2 %vm280_vm0, %v5100_v29  ;;  %v5113_v35 = vpack.c.bf16 %v5104_v33, %v5102_v30  ;;  %v386_v36 = vld [vmem:[#allocation2 + $0x11] sm:$0xff]  ;;  %v591_v0 = vld [vmem:[#allocation2 + $0x60] sm:$0xff]  ;;  %309 = vst.msk [vmem:[#allocation3 + $0x28] sm:$0x3] %vm304_vm3, %v4946_v1 }
  0x2e   : > { %v370_v37 = vld [vmem:[#allocation2 + $0x10] sm:$0xff]  ;;  %v393_v39 = vpack.c.bf16 %v386_v36, %v385_v31  ;;  %868 = vmatpush.bf16.msra.mxu2 %v4720_v28  ;;  %v672_v47 = vpack.c.bf16 %v387_v15, %v386_v36  ;;  %v596_v4 = vpack.c.bf16 %v591_v0, %v374_v58  ;;  %v514_v7 = vld [vmem:[#allocation2 + $0x62] sm:$0xff]  ;;  %v751_v15 = vpack.c.bf16 %v512_v62, %v511_v55 }
  0x2f   : > { %v377_v40 = vpack.c.bf16 %v370_v37, %v369_v32  ;;  %3830 = vmatmul.msk.bf16.vlgmr.msra.gmra.mxu3 %vm280_vm0, %v5113_v35  ;;  %v509_v42 = vld [vmem:[#allocation2 + $0x12] sm:$0xff]  ;;  %v594_v46 = vpack.c.bf16 %v587_v43, %v370_v37  ;;  %v593_v9 = vld [vmem:[#allocation2 + $0x80] sm:$0xff]  ;;  %v4726_v55 = vld [vmem:[%s6427_s2 + $0x8] sm:$0xff]  ;;  %310 = vst.msk [vmem:[#allocation3 + $0x30] sm:$0xff] %vm302_vm2, %v4946_v1 }
  0x30   : > { %3827 = vmatmul.msk.bf16.vlgmr.msra.gmra.mxu0 %vm280_vm0, %v393_v39  ;;  %946 = vmatpush.bf16.msra.mxu3 %v4722_v34  ;;  %v516_v44 = vpack.c.bf16 %v509_v42, %v508_v41  ;;  %v513_v63 = vld [vmem:[#allocation2 + $0x52] sm:$0xff]  ;;  %v671_v11 = vld [vmem:[#allocation2 + $0x81] sm:$0xff]  ;;  %v750_v14 = vpack.c.bf16 %v510_v54, %v509_v42  ;;  %v832_v23 = vpack.c.bf16 %v828_v21, %v593_v9 }
  0x31   : > { %3839 = vmatmul.msk.bf16.vlgmr.msrb.gmra.mxu1 %vm280_vm0, %v377_v40  ;;  %1024 = vmatpush.bf16.msra.mxu0 %v4724_v38  ;;  %v518_v2 = vpack.c.bf16 %v513_v63, %v512_v62  ;;  %v376_v3 = vld [vmem:[#allocation2 + $0x70] sm:$0xff]  ;;  %v675_v13 = vpack.c.bf16 %v671_v11, %v5104_v33  ;;  %v752_v16 = vpack.c.bf16 %v514_v7, %v513_v63  ;;  %v749_v17 = vld [vmem:[#allocation2 + $0x82] sm:$0xff]  ;;  %v4732_v38 = vld [vmem:[%s6427_s2 + $0x38] sm:$0xff] }
  0x32   : > { %869 = vmatpush.bf16.msra.mxu2 %v4719_v49  ;;  %v380_v6 = vpack.c.bf16 %v376_v3, %v591_v0  ;;  %v515_v8 = vld [vmem:[#allocation2 + $0x72] sm:$0xff]  ;;  %v597_v12 = vpack.c.bf16 %v593_v9, %v376_v3  ;;  %v910_v25 = vpack.c.bf16 %v906_v22, %v671_v11  ;;  %v988_v26 = vpack.c.bf16 %v984_v24, %v749_v17  ;;  %v4730_v58 = vld [vmem:[%s6427_s2 + $0x28] sm:$0xff] }
  0x33   : > { %v519_v10 = vpack.c.bf16 %v515_v8, %v514_v7  ;;  %v753_v20 = vpack.c.bf16 %v749_v17, %v515_v8  ;;  %1165 = vmatpush.bf16.msrb.mxu1 %v4732_v38  ;;  %v4727_v45 = vld [vmem:[%s6427_s2 + $0x10] sm:$0xff]  ;;  %311 = vst.msk [vmem:[#allocation3 + $0x38] sm:$0x3] %vm304_vm3, %v4946_v1  ;;  %v4734_v9 = vld [vmem:[%s6427_s2 + $0x48] sm:$0xff] }
  0x34   : > { %947 = vmatpush.bf16.msra.mxu3 %v4721_v50  ;;  %312 = vst.msk [vmem:[#allocation3 + $0x40] sm:$0xff] %vm302_vm2, %v4946_v1  ;;  %v4738_v24 = vld [vmem:[%s6427_s2 + $0x68] sm:$0xff] }
  0x35   : > { %1025 = vmatpush.bf16.msra.mxu0 %v4723_v52  ;;  %313 = vst.msk [vmem:[#allocation3 + $0x48] sm:$0x3] %vm304_vm3, %v4946_v1 }
  0x36   : > { %314 = vst.msk [vmem:[#allocation3 + $0x50] sm:$0xff] %vm302_vm2, %v4946_v1 }
  0x37   : > { %315 = vst.msk [vmem:[#allocation3 + $0x58] sm:$0x3] %vm304_vm3, %v4946_v1 }
  0x38   : > { %316 = vst.msk [vmem:[#allocation3 + $0x60] sm:$0xff] %vm302_vm2, %v4946_v1 }
  0x39   : > { %317 = vst.msk [vmem:[#allocation3 + $0x68] sm:$0x3] %vm304_vm3, %v4946_v1 }
  0x3a   : > { %318 = vst.msk [vmem:[#allocation3 + $0x70] sm:$0xff] %vm302_vm2, %v4946_v1 }
  0x3b   : > { %319 = vst.msk [vmem:[#allocation3 + $0x78] sm:$0x3] %vm304_vm3, %v4946_v1 }
  0x3c   : > { %320 = vst.msk [vmem:[#allocation3 + $0x80] sm:$0xff] %vm302_vm2, %v4946_v1 }
  0x3d   : > { %3855 = vmatmul.msk.bf16.vlgmr.msrb.gmra.mxu2 %vm280_vm0, %v516_v44  ;;  %321 = vst.msk [vmem:[#allocation3 + $0x88] sm:$0x3] %vm304_vm3, %v4946_v1 }
  0x3e   : > { %322 = vst.msk [vmem:[#allocation3 + $0x90] sm:$0xff] %vm302_vm2, %v4946_v1 }
  0x3f   : > { %3871 = vmatmul.msk.bf16.vlgmr.msrb.gmra.mxu3 %vm280_vm0, %v594_v46  ;;  %323 = vst.msk [vmem:[#allocation3 + $0x98] sm:$0x3] %vm304_vm3, %v4946_v1 }
  0x40   : > { %3887 = vmatmul.msk.bf16.vlgmr.msrb.gmra.mxu0 %vm280_vm0, %v672_v47  ;;  %324 = vst.msk [vmem:[#allocation4] sm:$0xff] %vm302_vm2, %v4946_v1 }
  0x41   : > { %3840 = vmatmul.msk.bf16.gmra.mxu1 %vm280_vm0, %v378_v48  ;;  %325 = vst.msk [vmem:[#allocation4 + $0x8] sm:$0x3] %vm304_vm3, %v4946_v1 }
  0x42   : > { %326 = vst.msk [vmem:[#allocation4 + $0x10] sm:$0xff] %vm302_vm2, %v4946_v1 }
  0x43   : > { %327 = vst.msk [vmem:[#allocation4 + $0x18] sm:$0x3] %vm304_vm3, %v4946_v1 }
  0x44   : > { %328 = vst.msk [vmem:[#allocation4 + $0x20] sm:$0xff] %vm302_vm2, %v4946_v1 }
  0x45   : > { %329 = vst.msk [vmem:[#allocation4 + $0x28] sm:$0x3] %vm304_vm3, %v4946_v1 }
  0x46   : > { %330 = vst.msk [vmem:[#allocation4 + $0x30] sm:$0xff] %vm302_vm2, %v4946_v1 }
  0x47   : > { %331 = vst.msk [vmem:[#allocation4 + $0x38] sm:$0x3] %vm304_vm3, %v4946_v1 }
  0x48   : > { %332 = vst.msk [vmem:[#allocation4 + $0x40] sm:$0xff] %vm302_vm2, %v4946_v1 }
  0x49   : > { %333 = vst.msk [vmem:[#allocation4 + $0x48] sm:$0x3] %vm304_vm3, %v4946_v1 }
  0x4a   : > { %334 = vst.msk [vmem:[#allocation4 + $0x50] sm:$0xff] %vm302_vm2, %v4946_v1 }
  0x4b   : > { %335 = vst.msk [vmem:[#allocation4 + $0x58] sm:$0x3] %vm304_vm3, %v4946_v1 }
  0x4c   : > { %336 = vst.msk [vmem:[#allocation4 + $0x60] sm:$0xff] %vm302_vm2, %v4946_v1 }
  0x4d   : > { %3856 = vmatmul.msk.bf16.gmra.mxu2 %vm280_vm0, %v517_v57  ;;  %337 = vst.msk [vmem:[#allocation4 + $0x68] sm:$0x3] %vm304_vm3, %v4946_v1 }
  0x4e   : > { %338 = vst.msk [vmem:[#allocation4 + $0x70] sm:$0xff] %vm302_vm2, %v4946_v1 }
  0x4f   : > { %3872 = vmatmul.msk.bf16.gmra.mxu3 %vm280_vm0, %v595_v59  ;;  %339 = vst.msk [vmem:[#allocation4 + $0x78] sm:$0x3] %vm304_vm3, %v4946_v1 }
  0x50   : > { %3888 = vmatmul.msk.bf16.gmra.mxu0 %vm280_vm0, %v673_v60  ;;  %340 = vst.msk [vmem:[#allocation4 + $0x80] sm:$0xff] %vm302_vm2, %v4946_v1 }
  0x51   : > { %3841 = vmatmul.msk.bf16.gmra.mxu1 %vm280_vm0, %v379_v61  ;;  %341 = vst.msk [vmem:[#allocation4 + $0x88] sm:$0x3] %vm304_vm3, %v4946_v1 }
  0x52   : > { %342 = vst.msk [vmem:[#allocation4 + $0x90] sm:$0xff] %vm302_vm2, %v4946_v1 }
  0x53   : > { %343 = vst.msk [vmem:[#allocation4 + $0x98] sm:$0x3] %vm304_vm3, %v4946_v1 }
  0x5d   : > { %3857 = vmatmul.msk.bf16.gmra.mxu2 %vm280_vm0, %v518_v2 }
  0x5f   : > { %3873 = vmatmul.msk.bf16.gmra.mxu3 %vm280_vm0, %v596_v4 }
  0x60   : > { %3889 = vmatmul.msk.bf16.gmra.mxu0 %vm280_vm0, %v674_v5  ;;  %v4735_v5 = vld [vmem:[%s6427_s2 + $0x50] sm:$0xff] }
  0x61   : > { %3842 = vmatmul.msk.bf16.gmra.mxu1 %vm280_vm0, %v380_v6 }
  0x6d   : > { %3858 = vmatmul.msk.bf16.gmra.mxu2 %vm280_vm0, %v519_v10 }
  0x6f   : > { %3874 = vmatmul.msk.bf16.gmra.mxu3 %vm280_vm0, %v597_v12 }
  0x70   : > { %3890 = vmatmul.msk.bf16.gmra.mxu0 %vm280_vm0, %v675_v13  ;;  %v4725_v13 = vld [vmem:[%s6427_s2] sm:$0xff] }
  0x71   : > { %3903 = vmatmul.msk.bf16.vlgmr.msra.gmra.mxu1 %vm280_vm0, %v750_v14  ;;  %v4729_v14 = vld [vmem:[%s6427_s2 + $0x20] sm:$0xff] }
  0x7d   : > { %3919 = vmatmul.msk.bf16.vlgmr.msra.gmra.mxu2 %vm280_vm0, %v378_v48  ;;  %v4731_v48 = vld [vmem:[%s6427_s2 + $0x30] sm:$0xff] }
  0x7e   : > { %1166 = vmatpush.bf16.msrb.mxu1 %v4731_v48 }
  0x7f   : > { %3935 = vmatmul.msk.bf16.vlgmr.msra.gmra.mxu3 %vm280_vm0, %v5071_v18 }
  0x80   : > { %3951 = vmatmul.msk.bf16.vlgmr.msra.gmra.mxu0 %vm280_vm0, %v517_v57 }
  0x81   : > { %3904 = vmatmul.msk.bf16.gmra.mxu1 %vm280_vm0, %v751_v15  ;;  %v4733_v15 = vld [vmem:[%s6427_s2 + $0x40] sm:$0xff] }
  0x82   : > { %1167 = vmatpush.bf16.msrb.mxu1 %v4730_v58 }
  0x86   : > { %1168 = vmatpush.bf16.msrb.mxu1 %v4729_v14 }
  0x8d   : > { %3920 = vmatmul.msk.bf16.gmra.mxu2 %vm280_vm0, %v379_v61 }
  0x8f   : > { %3936 = vmatmul.msk.bf16.gmra.mxu3 %vm280_vm0, %v5100_v29 }
  0x90   : > { %3952 = vmatmul.msk.bf16.gmra.mxu0 %vm280_vm0, %v518_v2  ;;  %v4736_v2 = vld [vmem:[%s6427_s2 + $0x58] sm:$0xff] }
  0x91   : > { %3905 = vmatmul.msk.bf16.gmra.mxu1 %vm280_vm0, %v752_v16  ;;  %1316 = vmatpush.bf16.msrb.mxu3 %v4736_v2  ;;  %v4748_v2 = vld [vmem:[%s6427_s2 + $0xb8] sm:$0xff] }
  0x95   : > { %1317 = vmatpush.bf16.msrb.mxu3 %v4735_v5 }
  0x99   : > { %1318 = vmatpush.bf16.msrb.mxu3 %v4734_v9 }
  0x9c   : > { %v5165_v19 = vpop.f32.mrf.mxu1 }
  0x9d   : > { %3921 = vmatmul.msk.bf16.gmra.mxu2 %vm280_vm0, %v380_v6  ;;  %1319 = vmatpush.bf16.msrb.mxu3 %v4733_v15 }
  0x9f   : > { %3937 = vmatmul.msk.bf16.gmra.mxu3 %vm280_vm0, %v5113_v35  ;;  %v4728_v35 = vld [vmem:[%s6427_s2 + $0x18] sm:$0xff] }
  0xa0   : > { %3953 = vmatmul.msk.bf16.gmra.mxu0 %vm280_vm0, %v519_v10  ;;  %1230 = vmatpush.bf16.msrb.mxu2 %v4728_v35  ;;  %v4740_v10 = vld [vmem:[%s6427_s2 + $0x78] sm:$0xff] }
  0xa1   : > { %3906 = vmatmul.msk.bf16.gmra.mxu1 %vm280_vm0, %v753_v20  ;;  %1410 = vmatpush.bf16.msrb.mxu0 %v4740_v10  ;;  %v4739_v20 = vld [vmem:[%s6427_s2 + $0x70] sm:$0xff] }
  0xa4   : > { %v5172_v18 = vpop.f32.mrf.mxu1  ;;  %1231 = vmatpush.bf16.msrb.mxu2 %v4727_v45  ;;  %v5378_v45 = vld [vmem:[%s6431_s6] ss:$0 sm:$0xff] }
  0xa5   : > { %1411 = vmatpush.bf16.msrb.mxu0 %v4739_v20 }
  0xa8   : > { %1232 = vmatpush.bf16.msrb.mxu2 %v4726_v55 }
  0xa9   : > { %1412 = vmatpush.bf16.msrb.mxu0 %v4738_v24 }
  0xac   : > { %1233 = vmatpush.bf16.msrb.mxu2 %v4725_v13 }
  0xad   : > { %v5174_v27 = vpop.f32.mrf.mxu0  ;;  %3922 = vmatmul.msk.bf16.gmra.mxu2 %vm280_vm0, %v832_v23 }
  0xae   : > { %v5177_v28 = vpop.f32.mrf.mxu1 }
  0xaf   : > { %3938 = vmatmul.msk.bf16.gmra.mxu3 %vm280_vm0, %v910_v25  ;;  %v489_v8 = vadd.f32 %v5177_v28, %v5174_v27 }
  0xb0   : > { %3954 = vmatmul.msk.bf16.gmra.mxu0 %vm280_vm0, %v988_v26  ;;  %v5181_v29 = vpop.f32.mrf.mxu2  ;;  %1598 = vmatpush.bf16.msra.mxu2 %v4748_v2 }
  0xb2   : > { %v5183_v30 = vpop.f32.mrf.mxu3 }
  0xb5   : > { %v5185_v31 = vpop.f32.mrf.mxu0 }
  0xb6   : > { %v5187_v32 = vpop.f32.mrf.mxu1 }
  0xb7   : > { %v491_v23 = vadd.f32 %v5187_v32, %v5185_v31  ;;  %v4737_v31 = vld [vmem:[%s6427_s2 + $0x60] sm:$0xff] }
  0xb8   : > { %v5189_v33 = vpop.f32.mrf.mxu2  ;;  %1413 = vmatpush.bf16.msrb.mxu0 %v4737_v31  ;;  %v1084_v31 = vld [vmem:[#allocation3] sm:$0xff] }
  0xba   : > { %v5191_v34 = vpop.f32.mrf.mxu3 }
  0xbd   : > { %v5196_v36 = vpop.f32.mrf.mxu0 }
  0xbe   : > { %v5198_v37 = vpop.f32.mrf.mxu1 }
  0xc0   : > { %v558_v39 = vpop.f32.mrf.mxu2 }
  0xc1   : > { %v578_v11 = vadd.f32 %v558_v39, %v489_v8 }
  0xc2   : > { %v5203_v40 = vpop.f32.mrf.mxu3 }
  0xc3   : > { %v656_v21 = vadd.f32 %v5203_v40, %v578_v11  ;;  %v494_v40 = vadd.f32 %v5198_v37, %v5165_v19 }
  0xc5   : > { %v5205_v41 = vpop.f32.mrf.mxu0  ;;  %v734_v26 = vadd.f32 %v5196_v36, %v656_v21 }
  0xc6   : > { %v5207_v42 = vpop.f32.mrf.mxu1 }
  0xc7   : > { %v496_v9 = vadd.f32 %v5207_v42, %v5172_v18 }
  0xc8   : > { %v5209_v43 = vpop.f32.mrf.mxu2 }
  0xc9   : > { %v579_v25 = vadd.f32 %v5209_v43, %v491_v23 }
  0xca   : > { %v5211_v44 = vpop.f32.mrf.mxu3 }
  0xcb   : > { %v657_v35 = vadd.f32 %v5211_v44, %v579_v25 }
  0xcd   : > { %v5216_v46 = vpop.f32.mrf.mxu0  ;;  %v735_v19 = vadd.f32 %v5205_v41, %v657_v35  ;;  %v4744_v41 = vld [vmem:[%s6427_s2 + $0x98] sm:$0xff] }
  0xce   : > { %v5218_v47 = vpop.f32.mrf.mxu1  ;;  %1504 = vmatpush.bf16.msra.mxu1 %v4744_v41 }
  0xcf   : > { %v499_v42 = vadd.f32 %v5218_v47, %v5181_v29 }
  0xd0   : > { %v5223_v49 = vpop.f32.mrf.mxu2 }
  0xd1   : > { %v580_v44 = vadd.f32 %v5223_v49, %v494_v40 }
  0xd2   : > { %v5225_v50 = vpop.f32.mrf.mxu3 }
  0xd5   : > { %v5227_v51 = vpop.f32.mrf.mxu0 }
  0xd6   : > { %v5229_v52 = vpop.f32.mrf.mxu1 }
  0xd8   : > { %v5231_v53 = vpop.f32.mrf.mxu2 }
  0xd9   : > { %v581_v13 = vadd.f32 %v5231_v53, %v496_v9 }
  0xda   : > { %v5233_v54 = vpop.f32.mrf.mxu3 }
  0xdb   : > { %v659_v23 = vadd.f32 %v5233_v54, %v581_v13 }
  0xdd   : > { %v5238_v56 = vpop.f32.mrf.mxu0 }
  0xde   : > { %v5240_v57 = vpop.f32.mrf.mxu1 }
  0xe0   : > { %v5245_v59 = vpop.f32.mrf.mxu2 }
  0xe1   : > { %v582_v25 = vadd.f32 %v5245_v59, %v499_v42 }
  0xe2   : > { %v5247_v60 = vpop.f32.mrf.mxu3 }
  0xe5   : > { %v5255_v61 = vpop.f32.mrf.mxu0 }
  0xe6   : > { %v5257_v62 = vpop.f32.mrf.mxu1 }
  0xe8   : > { %v5265_v63 = vpop.f32.mrf.mxu2 }
  0xea   : > { %v5271_v0 = vpop.f32.mrf.mxu3 }
  0xed   : > { %v5282_v3 = vpop.f32.mrf.mxu0 }
  0xee   : > { %v792_v4 = vpop.f32.mrf.mxu1 }
  0xef   : > { %v812_v28 = vadd.f32 %v792_v4, %v734_v26  ;;  %v658_v4 = vadd.f32 %v5225_v50, %v580_v44  ;;  %v737_v26 = vadd.f32 %v5227_v51, %v659_v23  ;;  %v4747_v44 = vld [vmem:[%s6427_s2 + $0xb0] sm:$0xff] }
  0xf0   : > { %v5293_v6 = vpop.f32.mrf.mxu2  ;;  %1599 = vmatpush.bf16.msra.mxu2 %v4747_v44 }
  0xf1   : > { %v736_v15 = vadd.f32 %v5216_v46, %v658_v4 }
  0xf2   : > { %v5299_v7 = vpop.f32.mrf.mxu3 }
  0xf5   : > { %v5315_v12 = vpop.f32.mrf.mxu0 }
  0xf6   : > { %v794_v17 = vpop.f32.mrf.mxu1 }
  0xf7   : > { %v813_v58 = vadd.f32 %v794_v17, %v735_v19  ;;  %v660_v19 = vadd.f32 %v5247_v60, %v582_v25 }
  0xf8   : > { %v5332_v16 = vpop.f32.mrf.mxu2 }
  0xf9   : > { %v738_v60 = vadd.f32 %v5238_v56, %v660_v19  ;;  %v504_v56 = vadd.f32 %v5240_v57, %v5183_v30 }
  0xfa   : > { %v5342_v22 = vpop.f32.mrf.mxu3 }
  0xfd   : > { %v1027_v27 = vpop.f32.mrf.mxu0 }
  0xfe   : > { %v797_v39 = vpop.f32.mrf.mxu1 }
  0xff   : > { %v814_v21 = vadd.f32 %v797_v39, %v736_v15 }
 0x100   : > { %v871_v32 = vpop.f32.mrf.mxu2 }
 0x101   : > { %v891_v36 = vadd.f32 %v871_v32, %v812_v28  ;;  %v1104_v28 = vld [vmem:[#allocation3 + $0x1] sm:$0xff] }
 0x102   : > { %v949_v38 = vpop.f32.mrf.mxu3  ;;  %v1255_v32 = vld [vmem:[#allocation3 + $0x2] sm:$0xff] }
 0x103   : > { %v969_v43 = vadd.f32 %v949_v38, %v891_v36 }
 0x105   : > { %v1047_v48 = vadd.f32 %v1027_v27, %v969_v43  ;;  %v1029_v37 = vpop.f32.mrf.mxu0 }
 0x106   : > { %v799_v11 = vpop.f32.mrf.mxu1 }
 0x107   : > { %v1059_v55 = vadd.f32 %v5378_v45, %v1047_v48  ;;  %v815_v38 = vadd.f32 %v799_v11, %v737_v26  ;;  %v4743_v48 = vld [vmem:[%s6427_s2 + $0x90] sm:$0xff]  ;;  %v4742_v26 = vld [vmem:[%s6427_s2 + $0x88] sm:$0xff] }
 0x108   : > { %v873_v49 = vpop.f32.mrf.mxu2  ;;  %1505 = vmatpush.bf16.msra.mxu1 %v4743_v48 }
 0x109   : > { %4874 = vtanh.f32 %v1059_v55  ;;  %v892_v5 = vadd.f32 %v873_v49, %v813_v58  ;;  %v501_v58 = vadd.f32 %v5229_v52, %v5189_v33 }
 0x10a   : > { %v951_v8 = vpop.f32.mrf.mxu3 }
 0x10b   : > { %v970_v10 = vadd.f32 %v951_v8, %v892_v5  ;;  %v583_v2 = vadd.f32 %v5265_v63, %v501_v58  ;;  %v4750_v58 = vld [vmem:[%s6427_s2 + $0xc8] sm:$0xff] }
 0x10c   : > { %1506 = vmatpush.bf16.msra.mxu1 %v4742_v26 }
 0x10d   : > { %v1048_v14 = vadd.f32 %v1029_v37, %v970_v10  ;;  %v1032_v17 = vpop.f32.mrf.mxu0  ;;  %v661_v13 = vadd.f32 %v5271_v0, %v583_v2 }
 0x10e   : > { %v802_v35 = vpop.f32.mrf.mxu1 }
 0x10f   : > { %v4875_v50 = vpop.eup %4874  ;;  %v1060_v20 = vadd.f32 %v5378_v45, %v1048_v14  ;;  %v816_v9 = vadd.f32 %v802_v35, %v738_v60  ;;  %v506_v35 = vadd.f32 %v5257_v62, %v5191_v34 }
 0x110   : > { %1076 = vst.msk [vmem:[#allocation3 + $0x11] sm:$0xff] %vm302_vm2, %v4875_v50  ;;  %v876_v1 = vpop.f32.mrf.mxu2 }
 0x111   : > { %4876 = vtanh.f32 %v1060_v20  ;;  %v893_v24 = vadd.f32 %v876_v1, %v814_v21  ;;  %v739_v20 = vadd.f32 %v5255_v61, %v661_v13  ;;  %v585_v34 = vadd.f32 %v5332_v16, %v506_v35 }
 0x112   : > { %v954_v18 = vpop.f32.mrf.mxu3 }
 0x113   : > { %v971_v53 = vadd.f32 %v954_v18, %v893_v24  ;;  %v663_v16 = vadd.f32 %v5342_v22, %v585_v34  ;;  %v4755_v22 = vld [vmem:[%s6427_s2 + $0xf0] sm:$0xff] }
 0x115   : > { %v1049_v46 = vadd.f32 %v1032_v17, %v971_v53  ;;  %v1034_v27 = vpop.f32.mrf.mxu0  ;;  %v584_v17 = vadd.f32 %v5293_v6, %v504_v56 }
 0x116   : > { %v804_v33 = vpop.f32.mrf.mxu1 }
 0x117   : > { %v4877_v36 = vpop.eup %4876  ;;  %v1061_v54 = vadd.f32 %v5378_v45, %v1049_v46  ;;  %v5416_v39 = vld [vmem:[#allocation3 + $0x11] sm:$0xff]  ;;  %v817_v24 = vadd.f32 %v804_v33, %v739_v20  ;;  %v4746_v46 = vld [vmem:[%s6427_s2 + $0xa8] sm:$0xff] }
 0x118   : > { %v1085_v40 = vld [vmem:[#allocation3 + $0x10] sm:$0xff]  ;;  %1077 = vst.msk [vmem:[#allocation3 + $0x21] sm:$0xff] %vm302_vm2, %v4877_v36  ;;  %v878_v29 = vpop.f32.mrf.mxu2  ;;  %v1112_v47 = vpack.c.bf16 %v5416_v39, %v1104_v28  ;;  %1600 = vmatpush.bf16.msra.mxu2 %v4746_v46 }
 0x119   : > { %v5418_v43 = vld [vmem:[#allocation3 + $0x12] sm:$0xff]  ;;  %v1092_v51 = vpack.c.bf16 %v1085_v40, %v1084_v31  ;;  %4878 = vtanh.f32 %v1061_v54  ;;  %v894_v37 = vadd.f32 %v878_v29, %v815_v38  ;;  %v4741_v38 = vld [vmem:[%s6427_s2 + $0x80] sm:$0xff] }
 0x11a   : > { %v1263_v59 = vpack.c.bf16 %v5418_v43, %v1255_v32  ;;  %v956_v55 = vpop.f32.mrf.mxu3  ;;  %3979 = vmatmul.msk.bf16.vlgmr.msrb.gmra.mxu1 %vm302_vm2, %v1112_v47  ;;  %v4752_v54 = vld [vmem:[%s6427_s2 + $0xd8] sm:$0xff]  ;;  %v4751_v29 = vld [vmem:[%s6427_s2 + $0xd0] sm:$0xff] }
 0x11b   : > { %3999 = vmatmul.msk.bf16.vlgmr.msrb.gmra.mxu2 %vm302_vm2, %v1092_v51  ;;  %v972_v49 = vadd.f32 %v956_v55, %v894_v37  ;;  %1693 = vmatpush.bf16.msra.mxu3 %v4752_v54 }
 0x11c   : > { %4027 = vmatmul.msk.bf16.vlgmr.msrb.gmra.mxu3 %vm302_vm2, %v1263_v59  ;;  %1507 = vmatpush.bf16.msra.mxu1 %v4741_v38 }
 0x11d   : > { %v1050_v41 = vadd.f32 %v1034_v27, %v972_v49  ;;  %v1037_v4 = vpop.f32.mrf.mxu0  ;;  %v662_v27 = vadd.f32 %v5299_v7, %v584_v17  ;;  %v4745_v7 = vld [vmem:[%s6427_s2 + $0xa0] sm:$0xff]  ;;  %v4756_v49 = vld [vmem:[%s6427_s2 + $0xf8] sm:$0xff] }
 0x11e   : > { %v807_v32 = vpop.f32.mrf.mxu1  ;;  %1601 = vmatpush.bf16.msra.mxu2 %v4745_v7  ;;  %1787 = vmatpush.bf16.msra.mxu0 %v4756_v49 }
 0x11f   : > { %v4879_v5 = vpop.eup %4878  ;;  %v1062_v8 = vadd.f32 %v5378_v45, %v1050_v41  ;;  %v1350_v10 = vld [vmem:[#allocation3 + $0x20] sm:$0xff]  ;;  %1694 = vmatpush.bf16.msra.mxu3 %v4751_v29 }
 0x120   : > { %1078 = vst.msk [vmem:[#allocation3 + $0x31] sm:$0xff] %vm302_vm2, %v4879_v5  ;;  %v881_v11 = vpop.f32.mrf.mxu2  ;;  %v1357_v52 = vpack.c.bf16 %v1350_v10, %v1085_v40  ;;  %v5445_v21 = vld [vmem:[#allocation3 + $0x21] sm:$0xff]  ;;  %v740_v40 = vadd.f32 %v5282_v3, %v662_v27 }
 0x121   : > { %4880 = vtanh.f32 %v1062_v8  ;;  %v895_v14 = vadd.f32 %v881_v11, %v816_v9  ;;  %v5447_v1 = vld [vmem:[#allocation3 + $0x22] sm:$0xff] }
 0x122   : > { %v959_v15 = vpop.f32.mrf.mxu3  ;;  %4055 = vmatmul.msk.bf16.vlgmr.msrb.gmra.mxu0 %vm302_vm2, %v1357_v52  ;;  %v818_v59 = vadd.f32 %v807_v32, %v740_v40  ;;  %v4749_v5 = vld [vmem:[%s6427_s2 + $0xc0] sm:$0xff] }
 0x123   : > { %v973_v63 = vadd.f32 %v959_v15, %v895_v14  ;;  %1695 = vmatpush.bf16.msra.mxu3 %v4750_v58  ;;  %1788 = vmatpush.bf16.msra.mxu0 %v4755_v22  ;;  %v1928_v58 = vld [vmem:[#allocation2 + $0x21] sm:$0xff] }
 0x125   : > { %v1051_v50 = vadd.f32 %v1037_v4, %v973_v63  ;;  %v1039_v30 = vpop.f32.mrf.mxu0  ;;  %v741_v4 = vadd.f32 %v5315_v12, %v663_v16 }
 0x126   : > { %v809_v41 = vpop.f32.mrf.mxu1 }
 0x127   : > { %v4881_v23 = vpop.eup %4880  ;;  %v1063_v0 = vadd.f32 %v5378_v45, %v1051_v50  ;;  %v5450_v18 = vld [vmem:[#allocation3 + $0x31] sm:$0xff]  ;;  %v819_v33 = vadd.f32 %v809_v41, %v741_v4  ;;  %1696 = vmatpush.bf16.msra.mxu3 %v4749_v5  ;;  %v1930_v5 = vld [vmem:[#allocation2 + $0x41] sm:$0xff] }
 0x128   : > { %v1087_v42 = vld [vmem:[#allocation3 + $0x30] sm:$0xff]  ;;  %1079 = vst.msk [vmem:[#allocation3 + $0x41] sm:$0xff] %vm302_vm2, %v4881_v23  ;;  %v883_v57 = vpop.f32.mrf.mxu2  ;;  %v5457_v61 = vpack.c.bf16 %v5450_v18, %v5445_v21  ;;  %v4762_v23 = vld [vmem:[%s6428_s3 + $0x8] sm:$0xff] }
 0x129   : > { %v5452_v53 = vld [vmem:[#allocation3 + $0x32] sm:$0xff]  ;;  %v5459_v6 = vpack.c.bf16 %v1087_v42, %v1350_v10  ;;  %4882 = vtanh.f32 %v1063_v0  ;;  %v896_v28 = vadd.f32 %v883_v57, %v817_v24  ;;  %v4754_v0 = vld [vmem:[%s6427_s2 + $0xe8] sm:$0xff]  ;;  %1978 = vmatpush.bf16.msrb.mxu2 %v4762_v23  ;;  %v4753_v57 = vld [vmem:[%s6427_s2 + $0xe0] sm:$0xff] }
 0x12a   : > { %v5463_v25 = vpack.c.bf16 %v5452_v53, %v5447_v1  ;;  %v961_v31 = vpop.f32.mrf.mxu3  ;;  %3980 = vmatmul.msk.bf16.gmra.mxu1 %vm302_vm2, %v5457_v61  ;;  %v4760_v24 = vld [vmem:[%s6427_s2 + $0x118] sm:$0xff]  ;;  %1789 = vmatpush.bf16.msra.mxu0 %v4754_v0 }
 0x12b   : > { %4000 = vmatmul.msk.bf16.gmra.mxu2 %vm302_vm2, %v5459_v6  ;;  %v974_v36 = vadd.f32 %v961_v31, %v896_v28  ;;  %1881 = vmatpush.bf16.msrb.mxu1 %v4760_v24  ;;  %v1929_v4 = vld [vmem:[#allocation2 + $0x31] sm:$0xff] }
 0x12c   : > { %4028 = vmatmul.msk.bf16.gmra.mxu3 %vm302_vm2, %v5463_v25  ;;  %v1933_v24 = vld [vmem:[#allocation2 + $0x71] sm:$0xff] }
 0x12d   : > { %v1052_v62 = vadd.f32 %v1039_v30, %v974_v36  ;;  %v1042_v37 = vpop.f32.mrf.mxu0 }
 0x12e   : > { %1790 = vmatpush.bf16.msra.mxu0 %v4753_v57  ;;  %v1827_v57 = vld [vmem:[#allocation3 + $0x92] sm:$0xff] }
 0x12f   : > { %v4883_v47 = vpop.eup %4882  ;;  %v1064_v51 = vadd.f32 %v5378_v45, %v1052_v62  ;;  %v1352_v44 = vld [vmem:[#allocation3 + $0x40] sm:$0xff] }
 0x130   : > { %1080 = vst.msk [vmem:[#allocation3 + $0x51] sm:$0xff] %vm302_vm2, %v4883_v47  ;;  %v886_v48 = vpop.f32.mrf.mxu2  ;;  %v1358_v19 = vpack.c.bf16 %v1352_v44, %v1087_v42  ;;  %v5511_v8 = vld [vmem:[#allocation3 + $0x41] sm:$0xff]  ;;  %v1451_v47 = vpack.c.bf16 %v5445_v21, %v5416_v39 }
 0x131   : > { %4884 = vtanh.f32 %v1064_v51  ;;  %v897_v3 = vadd.f32 %v886_v48, %v818_v59  ;;  %v5513_v9 = vld [vmem:[#allocation3 + $0x42] sm:$0xff]  ;;  %v1545_v51 = vpack.c.bf16 %v5447_v1, %v5418_v43  ;;  %v1452_v39 = vpack.c.bf16 %v5511_v8, %v5450_v18 }
 0x132   : > { %v964_v55 = vpop.f32.mrf.mxu3  ;;  %4056 = vmatmul.msk.bf16.gmra.mxu0 %vm302_vm2, %v1358_v19  ;;  %v4761_v59 = vld [vmem:[%s6428_s3] sm:$0xff]  ;;  %v1546_v43 = vpack.c.bf16 %v5513_v9, %v5452_v53 }
 0x133   : > { %v975_v2 = vadd.f32 %v964_v55, %v897_v3  ;;  %1979 = vmatpush.bf16.msrb.mxu2 %v4761_v59  ;;  %v4757_v21 = vld [vmem:[%s6427_s2 + $0x100] sm:$0xff]  ;;  %v1733_v3 = vld [vmem:[#allocation3 + $0x91] sm:$0xff] }
 0x134   : > { %v1927_v55 = vld [vmem:[#allocation2 + $0x11] sm:$0xff] }
 0x135   : > { %v1053_v60 = vadd.f32 %v1042_v37, %v975_v2  ;;  %v1044_v42 = vpop.f32.mrf.mxu0  ;;  %v1935_v49 = vpack.c.bf16 %v1928_v58, %v1927_v55  ;;  %v4766_v55 = vld [vmem:[%s6429_s4 + $0x18] sm:$0xff] }
 0x136   : > { %v4774_v58 = vld [vmem:[%s6429_s4 + $0x58] sm:$0xff]  ;;  %2172 = vmatpush.bf16.msrb.mxu0 %v4766_v55 }
 0x137   : > { %v4885_v10 = vpop.eup %4884  ;;  %v1065_v11 = vadd.f32 %v5378_v45, %v1053_v60  ;;  %v5516_v52 = vld [vmem:[#allocation3 + $0x51] sm:$0xff] }
 0x138   : > { %v1089_v13 = vld [vmem:[#allocation3 + $0x50] sm:$0xff]  ;;  %1081 = vst.msk [vmem:[#allocation3 + $0x61] sm:$0xff] %vm302_vm2, %v4885_v10  ;;  %v888_v12 = vpop.f32.mrf.mxu2  ;;  %v5523_v15 = vpack.c.bf16 %v5516_v52, %v5511_v8 }
 0x139   : > { %v5518_v14 = vld [vmem:[#allocation3 + $0x52] sm:$0xff]  ;;  %v1094_v56 = vpack.c.bf16 %v1089_v13, %v1352_v44  ;;  %4886 = vtanh.f32 %v1065_v11  ;;  %v898_v17 = vadd.f32 %v888_v12, %v819_v33  ;;  %v4758_v44 = vld [vmem:[%s6427_s2 + $0x108] sm:$0xff] }
 0x13a   : > { %v5527_v63 = vpack.c.bf16 %v5518_v14, %v5513_v9  ;;  %v966_v50 = vpop.f32.mrf.mxu3  ;;  %3981 = vmatmul.msk.bf16.gmra.mxu1 %vm302_vm2, %v5523_v15  ;;  %v1936_v9 = vpack.c.bf16 %v1930_v5, %v1929_v4  ;;  %v4765_v5 = vld [vmem:[%s6429_s4 + $0x10] sm:$0xff] }
 0x13b   : > { %4001 = vmatmul.msk.bf16.gmra.mxu2 %vm302_vm2, %v1094_v56  ;;  %v976_v20 = vadd.f32 %v966_v50, %v898_v17  ;;  %2173 = vmatpush.bf16.msrb.mxu0 %v4765_v5 }
 0x13c   : > { %4029 = vmatmul.msk.bf16.gmra.mxu3 %vm302_vm2, %v5527_v63 }
 0x13d   : > { %v1054_v30 = vadd.f32 %v1044_v42, %v976_v20  ;;  %v1934_v42 = vld [vmem:[#allocation2 + $0x81] sm:$0xff] }
 0x13f   : > { %v4887_v46 = vpop.eup %4886  ;;  %v1066_v26 = vadd.f32 %v5378_v45, %v1054_v30  ;;  %v1354_v27 = vld [vmem:[#allocation3 + $0x60] sm:$0xff]  ;;  %v4759_v45 = vld [vmem:[%s6427_s2 + $0x110] sm:$0xff] }
 0x140   : > { %1082 = vst.msk [vmem:[#allocation3 + $0x71] sm:$0xff] %vm302_vm2, %v4887_v46  ;;  %v1359_v28 = vpack.c.bf16 %v1354_v27, %v1089_v13  ;;  %v1110_v31 = vld [vmem:[#allocation3 + $0x61] sm:$0xff]  ;;  %1882 = vmatpush.bf16.msrb.mxu1 %v4759_v45  ;;  %v1938_v46 = vpack.c.bf16 %v1934_v42, %v1933_v24 }
 0x141   : > { %4888 = vtanh.f32 %v1066_v26  ;;  %v1261_v32 = vld [vmem:[#allocation3 + $0x62] sm:$0xff]  ;;  %v1453_v1 = vpack.c.bf16 %v1110_v31, %v5516_v52  ;;  %v1931_v52 = vld [vmem:[#allocation2 + $0x51] sm:$0xff] }
 0x142   : > { %4057 = vmatmul.msk.bf16.gmra.mxu0 %vm302_vm2, %v1359_v28  ;;  %v1547_v18 = vpack.c.bf16 %v1261_v32, %v5518_v14  ;;  %v1932_v13 = vld [vmem:[#allocation2 + $0x61] sm:$0xff] }
 0x143   : > { %v4763_v42 = vld [vmem:[%s6429_s4] sm:$0xff] }
 0x144   : > { %1883 = vmatpush.bf16.msrb.mxu1 %v4758_v44 }
 0x147   : > { %v4889_v35 = vpop.eup %4888  ;;  %v1111_v36 = vld [vmem:[#allocation3 + $0x71] sm:$0xff] }
 0x148   : > { %v1091_v7 = vld [vmem:[#allocation3 + $0x70] sm:$0xff]  ;;  %1083 = vst.msk [vmem:[#allocation3 + $0x81] sm:$0xff] %vm302_vm2, %v4889_v35  ;;  %v1115_v38 = vpack.c.bf16 %v1111_v36, %v1110_v31  ;;  %1884 = vmatpush.bf16.msrb.mxu1 %v4757_v21 }
 0x149   : > { %v1262_v54 = vld [vmem:[#allocation3 + $0x72] sm:$0xff]  ;;  %v1095_v34 = vpack.c.bf16 %v1091_v7, %v1354_v27 }
 0x14a   : > { %v5550_v62 = vpack.c.bf16 %v1262_v54, %v1261_v32  ;;  %3982 = vmatmul.msk.bf16.gmra.mxu1 %vm302_vm2, %v1115_v38 }
 0x14b   : > { %4002 = vmatmul.msk.bf16.gmra.mxu2 %vm302_vm2, %v1095_v34 }
 0x14c   : > { %4030 = vmatmul.msk.bf16.gmra.mxu3 %vm302_vm2, %v5550_v62 }
 0x14f   : > { %v1356_v40 = vld [vmem:[#allocation3 + $0x80] sm:$0xff] }
 0x150   : > { %v1360_v29 = vpack.c.bf16 %v1356_v40, %v1091_v7  ;;  %v1450_v53 = vld [vmem:[#allocation3 + $0x81] sm:$0xff]  ;;  %v4770_v7 = vld [vmem:[%s6429_s4 + $0x38] sm:$0xff] }
 0x151   : > { %v1454_v48 = vpack.c.bf16 %v1450_v53, %v1111_v36  ;;  %v1737_v37 = vpack.c.bf16 %v1733_v3, %v1450_v53  ;;  %2107 = vmatpush.bf16.msrb.mxu3 %v4770_v7  ;;  %v4768_v53 = vld [vmem:[%s6429_s4 + $0x28] sm:$0xff] }
 0x152   : > { %4058 = vmatmul.msk.bf16.gmra.mxu0 %vm302_vm2, %v1360_v29 }
 0x15a   : > { %4083 = vmatmul.msk.bf16.vlgmr.msra.gmra.mxu1 %vm302_vm2, %v1451_v47 }
 0x15b   : > { %4111 = vmatmul.msk.bf16.vlgmr.msra.gmra.mxu2 %vm302_vm2, %v1545_v51  ;;  %v4769_v51 = vld [vmem:[%s6429_s4 + $0x30] sm:$0xff]  ;;  %2258 = vmatpush.bf16.msra.mxu1 %v4774_v58  ;;  %v4775_v58 = vld [vmem:[%s6429_s4 + $0x60] sm:$0xff] }
 0x15c   : > { %4139 = vmatmul.msk.bf16.vlgmr.msra.gmra.mxu3 %vm302_vm2, %v5459_v6  ;;  %v1639_v6 = vld [vmem:[#allocation3 + $0x90] sm:$0xff] }
 0x15d   : > { %v1643_v16 = vpack.c.bf16 %v1639_v6, %v1356_v40  ;;  %2108 = vmatpush.bf16.msrb.mxu3 %v4769_v51 }
 0x161   : > { %2109 = vmatpush.bf16.msrb.mxu3 %v4768_v53 }
 0x162   : > { %4167 = vmatmul.msk.bf16.vlgmr.msra.gmra.mxu0 %vm302_vm2, %v5457_v61  ;;  %v1544_v61 = vld [vmem:[#allocation3 + $0x82] sm:$0xff] }
 0x163   : > { %v1548_v19 = vpack.c.bf16 %v1544_v61, %v1262_v54  ;;  %v1831_v27 = vpack.c.bf16 %v1827_v57, %v1544_v61  ;;  %v4771_v57 = vld [vmem:[%s6429_s4 + $0x40] sm:$0xff] }
 0x16a   : > { %4084 = vmatmul.msk.bf16.gmra.mxu1 %vm302_vm2, %v1452_v39 }
 0x16b   : > { %4112 = vmatmul.msk.bf16.gmra.mxu2 %vm302_vm2, %v1546_v43 }
 0x16c   : > { %4140 = vmatmul.msk.bf16.gmra.mxu3 %vm302_vm2, %v1094_v56 }
 0x172   : > { %4168 = vmatmul.msk.bf16.gmra.mxu0 %vm302_vm2, %v5523_v15  ;;  %v1937_v15 = vpack.c.bf16 %v1932_v13, %v1931_v52  ;;  %v4764_v13 = vld [vmem:[%s6429_s4 + $0x8] sm:$0xff] }
 0x173   : > { %2174 = vmatpush.bf16.msrb.mxu0 %v4764_v13 }
 0x177   : > { %2175 = vmatpush.bf16.msrb.mxu0 %v4763_v42 }
 0x17a   : > { %4085 = vmatmul.msk.bf16.gmra.mxu1 %vm302_vm2, %v1453_v1 }
 0x17b   : > { %4113 = vmatmul.msk.bf16.gmra.mxu2 %vm302_vm2, %v1547_v18 }
 0x17c   : > { %4141 = vmatmul.msk.bf16.gmra.mxu3 %vm302_vm2, %v1095_v34 }
 0x182   : > { %4169 = vmatmul.msk.bf16.gmra.mxu0 %vm302_vm2, %v1115_v38 }
 0x18a   : > { %4086 = vmatmul.msk.bf16.gmra.mxu1 %vm302_vm2, %v1454_v48 }
 0x18b   : > { %4114 = vmatmul.msk.bf16.gmra.mxu2 %vm302_vm2, %v1548_v19 }
 0x18c   : > { %4142 = vmatmul.msk.bf16.gmra.mxu3 %vm302_vm2, %v1643_v16 }
 0x192   : > { %4170 = vmatmul.msk.bf16.gmra.mxu0 %vm302_vm2, %v1737_v37 }
 0x197   : > { %v1170_v2 = vpop.f32.mrf.mxu1 }
 0x19a   : > { %4195 = vmatmul.msk.bf16.vlgmr.msrb.gmra.mxu1 %vm302_vm2, %v5463_v25 }
 0x19b   : > { %4209 = vmatmul.msk.bf16.vlgmr.msrb.gmra.mxu2 %vm280_vm0, %v1935_v49 }
 0x19e   : > { %v1235_v41 = vpop.f32.mrf.mxu2 }
 0x19f   : > { %v5601_v22 = vadd.f32 %v1235_v41, %v1170_v2  ;;  %v5603_v60 = vpop.f32.mrf.mxu1  ;;  %v1321_v14 = vpop.f32.mrf.mxu3 }
 0x1a0   : > { %v5616_v17 = vpop.f32.mrf.mxu0 }
 0x1a1   : > { %v1341_v4 = vadd.f32 %v1321_v14, %v5601_v22  ;;  %v4772_v14 = vld [vmem:[%s6429_s4 + $0x48] sm:$0xff] }
 0x1a3   : > { %v1435_v52 = vadd.f32 %v5616_v17, %v1341_v4 }
 0x1a6   : > { %v5605_v8 = vpop.f32.mrf.mxu2 }
 0x1a7   : > { %v1175_v10 = vpop.f32.mrf.mxu1  ;;  %v5623_v20 = vpop.f32.mrf.mxu3  ;;  %v1238_v22 = vadd.f32 %v5605_v8, %v5603_v60 }
 0x1a8   : > { %v5627_v0 = vpop.f32.mrf.mxu0 }
 0x1a9   : > { %v1342_v60 = vadd.f32 %v5623_v20, %v1238_v22 }
 0x1aa   : > { %4196 = vmatmul.msk.bf16.gmra.mxu1 %vm302_vm2, %v5527_v63 }
 0x1ab   : > { %4210 = vmatmul.msk.bf16.gmra.mxu2 %vm280_vm0, %v1936_v9  ;;  %v4773_v9 = vld [vmem:[%s6429_s4 + $0x50] sm:$0xff] }
 0x1ac   : > { %2259 = vmatpush.bf16.msra.mxu1 %v4773_v9 }
 0x1ae   : > { %v1240_v11 = vpop.f32.mrf.mxu2 }
 0x1af   : > { %v5610_v25 = vadd.f32 %v1240_v11, %v1175_v10  ;;  %v5612_v33 = vpop.f32.mrf.mxu1  ;;  %v5631_v28 = vpop.f32.mrf.mxu3  ;;  %v4767_v11 = vld [vmem:[%s6429_s4 + $0x20] sm:$0xff] }
 0x1b0   : > { %v5635_v31 = vpop.f32.mrf.mxu0  ;;  %2110 = vmatpush.bf16.msrb.mxu3 %v4767_v11  ;;  %2260 = vmatpush.bf16.msra.mxu1 %v4772_v14 }
 0x1b1   : > { %v1343_v51 = vadd.f32 %v5631_v28, %v5610_v25  ;;  %v5754_v25 = vld [vmem:[%s6431_s6 + $0x2] ss:$0 sm:$0xff] }
 0x1b3   : > { %v1437_v28 = vadd.f32 %v5635_v31, %v1343_v51 }
 0x1b4   : > { %2261 = vmatpush.bf16.msra.mxu1 %v4771_v57 }
 0x1b6   : > { %v5614_v12 = vpop.f32.mrf.mxu2 }
 0x1b7   : > { %v1180_v56 = vpop.f32.mrf.mxu1  ;;  %v5644_v54 = vpop.f32.mrf.mxu3 }
 0x1b8   : > { %v5648_v34 = vpop.f32.mrf.mxu0 }
 0x1ba   : > { %4197 = vmatmul.msk.bf16.gmra.mxu1 %vm302_vm2, %v5550_v62 }
 0x1bb   : > { %4211 = vmatmul.msk.bf16.gmra.mxu2 %vm280_vm0, %v1937_v15  ;;  %v4778_v15 = vld [vmem:[%s6429_s4 + $0x78] sm:$0xff] }
 0x1bc   : > { %2352 = vmatpush.bf16.msra.mxu2 %v4778_v15 }
 0x1be   : > { %v1245_v63 = vpop.f32.mrf.mxu2 }
 0x1bf   : > { %v5621_v50 = vadd.f32 %v1245_v63, %v1180_v56  ;;  %v5625_v23 = vpop.f32.mrf.mxu1  ;;  %v5650_v45 = vpop.f32.mrf.mxu3 }
 0x1c0   : > { %v5652_v47 = vpop.f32.mrf.mxu0 }
 0x1c6   : > { %v5629_v30 = vpop.f32.mrf.mxu2 }
 0x1c7   : > { %v1185_v26 = vpop.f32.mrf.mxu1  ;;  %v5657_v44 = vpop.f32.mrf.mxu3 }
 0x1c8   : > { %v5661_v43 = vpop.f32.mrf.mxu0 }
 0x1ca   : > { %4198 = vmatmul.msk.bf16.gmra.mxu1 %vm302_vm2, %v1831_v27  ;;  %v1436_v27 = vadd.f32 %v5627_v0, %v1342_v60 }
 0x1cb   : > { %4212 = vmatmul.msk.bf16.gmra.mxu2 %vm280_vm0, %v1938_v46  ;;  %v4777_v46 = vld [vmem:[%s6429_s4 + $0x70] sm:$0xff] }
 0x1cc   : > { %2353 = vmatpush.bf16.msra.mxu2 %v4777_v46 }
 0x1ce   : > { %v1250_v32 = vpop.f32.mrf.mxu2 }
 0x1cf   : > { %v5637_v35 = vadd.f32 %v1250_v32, %v1185_v26  ;;  %v5639_v36 = vpop.f32.mrf.mxu1  ;;  %v5667_v18 = vpop.f32.mrf.mxu3  ;;  %v4776_v32 = vld [vmem:[%s6429_s4 + $0x68] sm:$0xff] }
 0x1d0   : > { %v5672_v61 = vpop.f32.mrf.mxu0  ;;  %2354 = vmatpush.bf16.msra.mxu2 %v4776_v32 }
 0x1d4   : > { %2355 = vmatpush.bf16.msra.mxu2 %v4775_v58  ;;  %v2046_v58 = vld [vmem:[#allocation4 + $0x1] sm:$0xff] }
 0x1d6   : > { %v5646_v38 = vpop.f32.mrf.mxu2 }
 0x1d7   : > { %v1509_v62 = vpop.f32.mrf.mxu1  ;;  %v5678_v19 = vpop.f32.mrf.mxu3 }
 0x1d8   : > { %v5682_v3 = vpop.f32.mrf.mxu0  ;;  %v1529_v63 = vadd.f32 %v1509_v62, %v1435_v52 }
 0x1de   : > { %v1603_v40 = vpop.f32.mrf.mxu2 }
 0x1df   : > { %v1511_v29 = vpop.f32.mrf.mxu1  ;;  %v1698_v49 = vpop.f32.mrf.mxu3  ;;  %v1623_v8 = vadd.f32 %v1603_v40, %v1529_v63 }
 0x1e0   : > { %v1792_v10 = vpop.f32.mrf.mxu0  ;;  %v1530_v62 = vadd.f32 %v1511_v29, %v1436_v27  ;;  %v5749_v29 = vld [vmem:[%s6431_s6 + $0x1] ss:$0 sm:$0xff] }
 0x1e1   : > { %v1718_v20 = vadd.f32 %v1698_v49, %v1623_v8  ;;  %v4782_v49 = vld [vmem:[%s6429_s4 + $0x98] sm:$0xff] }
 0x1e2   : > { %2446 = vmatpush.bf16.msra.mxu3 %v4782_v49  ;;  %v2197_v49 = vld [vmem:[#allocation4 + $0x2] sm:$0xff] }
 0x1e3   : > { %v1812_v53 = vadd.f32 %v1792_v10, %v1718_v20 }
 0x1e6   : > { %v1605_v59 = vpop.f32.mrf.mxu2 }
 0x1e7   : > { %v5659_v39 = vpop.f32.mrf.mxu1  ;;  %v1700_v17 = vpop.f32.mrf.mxu3  ;;  %v1624_v55 = vadd.f32 %v1605_v59, %v1530_v62  ;;  %v1243_v59 = vadd.f32 %v5614_v12, %v5612_v33 }
 0x1e8   : > { %v1794_v26 = vpop.f32.mrf.mxu0  ;;  %v1531_v11 = vadd.f32 %v5659_v39, %v1437_v28 }
 0x1e9   : > { %v1719_v5 = vadd.f32 %v1700_v17, %v1624_v55  ;;  %v1344_v14 = vadd.f32 %v5644_v54, %v1243_v59 }
 0x1eb   : > { %v1813_v15 = vadd.f32 %v1794_v26, %v1719_v5  ;;  %v1438_v33 = vadd.f32 %v5648_v34, %v1344_v14  ;;  %v4781_v34 = vld [vmem:[%s6429_s4 + $0x90] sm:$0xff] }
 0x1ec   : > { %2447 = vmatpush.bf16.msra.mxu3 %v4781_v34 }
 0x1ee   : > { %v5663_v21 = vpop.f32.mrf.mxu2 }
 0x1ef   : > { %v5665_v1 = vpop.f32.mrf.mxu1  ;;  %v1703_v0 = vpop.f32.mrf.mxu3  ;;  %v1625_v63 = vadd.f32 %v5663_v21, %v1531_v11  ;;  %v1345_v21 = vadd.f32 %v5650_v45, %v5621_v50 }
 0x1f0   : > { %v1797_v9 = vpop.f32.mrf.mxu0  ;;  %v1532_v39 = vadd.f32 %v5665_v1, %v1438_v33 }
 0x1f1   : > { %v1720_v12 = vadd.f32 %v1703_v0, %v1625_v63  ;;  %v1439_v62 = vadd.f32 %v5652_v47, %v1345_v21  ;;  %v2026_v0 = vld [vmem:[#allocation4] sm:$0xff] }
 0x1f3   : > { %v1814_v26 = vadd.f32 %v1797_v9, %v1720_v12  ;;  %v1347_v12 = vadd.f32 %v5667_v18, %v5637_v35  ;;  %v1253_v18 = vadd.f32 %v5646_v38, %v5639_v36 }
 0x1f5   : > { %v1441_v35 = vadd.f32 %v5672_v61, %v1347_v12  ;;  %v1348_v61 = vadd.f32 %v5678_v19, %v1253_v18 }
 0x1f6   : > { %v5674_v6 = vpop.f32.mrf.mxu2 }
 0x1f7   : > { %v5676_v48 = vpop.f32.mrf.mxu1  ;;  %v1705_v8 = vpop.f32.mrf.mxu3  ;;  %v1626_v20 = vadd.f32 %v5674_v6, %v1532_v39 }
 0x1f8   : > { %v1799_v46 = vpop.f32.mrf.mxu0  ;;  %v1533_v6 = vadd.f32 %v5676_v48, %v1439_v62 }
 0x1f9   : > { %v1721_v50 = vadd.f32 %v1705_v8, %v1626_v20 }
 0x1fb   : > { %v1815_v59 = vadd.f32 %v1799_v46, %v1721_v50 }
 0x1fe   : > { %v5680_v16 = vpop.f32.mrf.mxu2 }
 0x1ff   : > { %v5684_v37 = vpop.f32.mrf.mxu1  ;;  %v1708_v45 = vpop.f32.mrf.mxu3 }
 0x206   : > { %v5692_v2 = vpop.f32.mrf.mxu2 }
 0x207   : > { %v5694_v41 = vpop.f32.mrf.mxu1 }
 0x20e   : > { %v5718_v56 = vpop.f32.mrf.mxu2 }
 0x20f   : > { %v5720_v24 = vpop.f32.mrf.mxu1 }
 0x216   : > { %v5736_v7 = vpop.f32.mrf.mxu2 }
 0x217   : > { %v1886_v40 = vpop.f32.mrf.mxu1 }
 0x218   : > { %v1906_v4 = vadd.f32 %v1886_v40, %v1812_v53  ;;  %v1248_v40 = vadd.f32 %v5629_v30, %v5625_v23  ;;  %v1627_v23 = vadd.f32 %v5680_v16, %v1533_v6 }
 0x21a   : > { %v1919_v52 = vadd.f32 %v5749_v29, %v1906_v4  ;;  %v1346_v47 = vadd.f32 %v5657_v44, %v1248_v40 }
 0x21c   : > { %v1440_v16 = vadd.f32 %v5661_v43, %v1346_v47  ;;  %v4790_v47 = vld [vmem:[%s6429_s4 + $0xd8] sm:$0xff] }
 0x21d   : > { %2635 = vmatpush.bf16.msrb.mxu1 %v4790_v47 }
 0x21e   : > { %v1981_v10 = vpop.f32.mrf.mxu2 }
 0x21f   : > { %v1982_v22 = vadd.f32 %v5754_v25, %v1981_v10  ;;  %v1888_v13 = vpop.f32.mrf.mxu1  ;;  %v1802_v10 = vpop.f32.mrf.mxu0 }
 0x220   : > { %v1907_v31 = vadd.f32 %v1888_v13, %v1813_v15  ;;  %v1722_v13 = vadd.f32 %v1708_v45, %v1627_v23  ;;  %v1534_v15 = vadd.f32 %v5684_v37, %v1440_v16 }
 0x221   : > { %v2001_v60 = vadd.f32 %v1982_v22, %v1919_v52 }
 0x222   : > { %v1920_v42 = vadd.f32 %v5749_v29, %v1907_v31  ;;  %v1710_v31 = vpop.f32.mrf.mxu3  ;;  %v1628_v43 = vadd.f32 %v5692_v2, %v1534_v15 }
 0x223   : > { %4890 = vtanh.f32 %v2001_v60 }
 0x224   : > { %v1723_v2 = vadd.f32 %v1710_v31, %v1628_v43  ;;  %v4794_v31 = vld [vmem:[%s6429_s4 + $0xf8] sm:$0xff] }
 0x225   : > { %2729 = vmatpush.bf16.msrb.mxu2 %v4794_v31  ;;  %v2675_v31 = vld [vmem:[#allocation4 + $0x91] sm:$0xff] }
 0x226   : > { %v1983_v17 = vpop.f32.mrf.mxu2 }
 0x227   : > { %v1984_v57 = vadd.f32 %v5754_v25, %v1983_v17  ;;  %v1891_v27 = vpop.f32.mrf.mxu1  ;;  %v1816_v17 = vadd.f32 %v1802_v10, %v1722_v13  ;;  %v4785_v10 = vld [vmem:[%s6429_s4 + $0xb0] sm:$0xff] }
 0x228   : > { %v1908_v1 = vadd.f32 %v1891_v27, %v1814_v26  ;;  %v1804_v27 = vpop.f32.mrf.mxu0  ;;  %v1535_v26 = vadd.f32 %v5694_v41, %v1441_v35 }
 0x229   : > { %v5768_v54 = vpop.eup %4890  ;;  %v2002_v32 = vadd.f32 %v1984_v57, %v1920_v42  ;;  %v4780_v57 = vld [vmem:[%s6429_s4 + $0x88] sm:$0xff]  ;;  %v1817_v50 = vadd.f32 %v1804_v27, %v1723_v2 }
 0x22a   : > { %2018 = vst.msk [vmem:[#allocation4 + $0x11] sm:$0xff] %vm302_vm2, %v5768_v54  ;;  %v1921_v53 = vadd.f32 %v5749_v29, %v1908_v1  ;;  %2448 = vmatpush.bf16.msra.mxu3 %v4780_v57  ;;  %v1629_v36 = vadd.f32 %v5718_v56, %v1535_v26  ;;  %v1713_v6 = vpop.f32.mrf.mxu3 }
 0x22b   : > { %4892 = vtanh.f32 %v2002_v32 }
 0x22e   : > { %v1986_v51 = vpop.f32.mrf.mxu2 }
 0x22f   : > { %v1987_v55 = vadd.f32 %v5754_v25, %v1986_v51  ;;  %v1893_v4 = vpop.f32.mrf.mxu1 }
 0x230   : > { %v1909_v44 = vadd.f32 %v1893_v4, %v1815_v59  ;;  %v4786_v4 = vld [vmem:[%s6429_s4 + $0xb8] sm:$0xff]  ;;  %v1807_v59 = vpop.f32.mrf.mxu0 }
 0x231   : > { %v5784_v28 = vpop.eup %4892  ;;  %v2003_v30 = vadd.f32 %v1987_v55, %v1921_v53  ;;  %v5788_v5 = vld [vmem:[#allocation4 + $0x11] sm:$0xff]  ;;  %2540 = vmatpush.bf16.msra.mxu0 %v4786_v4 }
 0x232   : > { %v2027_v9 = vld [vmem:[#allocation4 + $0x10] sm:$0xff]  ;;  %2019 = vst.msk [vmem:[#allocation4 + $0x21] sm:$0xff] %vm302_vm2, %v5784_v28  ;;  %v2054_v11 = vpack.c.bf16 %v5788_v5, %v2046_v58  ;;  %v1922_v63 = vadd.f32 %v5749_v29, %v1909_v44  ;;  %v1442_v58 = vadd.f32 %v5682_v3, %v1348_v61 }
 0x233   : > { %v5790_v48 = vld [vmem:[#allocation4 + $0x12] sm:$0xff]  ;;  %v2034_v52 = vpack.c.bf16 %v2027_v9, %v2026_v0  ;;  %4894 = vtanh.f32 %v2003_v30  ;;  %v1724_v0 = vadd.f32 %v1713_v6, %v1629_v36 }
 0x234   : > { %v2205_v22 = vpack.c.bf16 %v5790_v48, %v2197_v49  ;;  %4237 = vmatmul.msk.bf16.vlgmr.msrb.gmra.mxu3 %vm302_vm2, %v2054_v11  ;;  %v4779_v49 = vld [vmem:[%s6429_s4 + $0x80] sm:$0xff]  ;;  %v1536_v3 = vadd.f32 %v5720_v24, %v1442_v58 }
 0x235   : > { %4257 = vmatmul.msk.bf16.vlgmr.msrb.gmra.mxu0 %vm302_vm2, %v2034_v52  ;;  %2449 = vmatpush.bf16.msra.mxu3 %v4779_v49  ;;  %v4789_v52 = vld [vmem:[%s6429_s4 + $0xd0] sm:$0xff]  ;;  %v1818_v44 = vadd.f32 %v1807_v59, %v1724_v0  ;;  %v4791_v0 = vld [vmem:[%s6429_s4 + $0xe0] sm:$0xff] }
 0x236   : > { %4285 = vmatmul.msk.bf16.vlgmr.msra.gmra.mxu1 %vm302_vm2, %v2205_v22  ;;  %v1988_v14 = vpop.f32.mrf.mxu2  ;;  %v1630_v24 = vadd.f32 %v5736_v7, %v1536_v3  ;;  %2541 = vmatpush.bf16.msra.mxu0 %v4785_v10  ;;  %v4788_v7 = vld [vmem:[%s6429_s4 + $0xc8] sm:$0xff] }
 0x237   : > { %v1989_v60 = vadd.f32 %v5754_v25, %v1988_v14  ;;  %v1896_v8 = vpop.f32.mrf.mxu1  ;;  %2636 = vmatpush.bf16.msrb.mxu1 %v4789_v52 }
 0x238   : > { %v1910_v46 = vadd.f32 %v1896_v8, %v1816_v17  ;;  %v4793_v17 = vld [vmem:[%s6429_s4 + $0xf0] sm:$0xff] }
 0x239   : > { %v5803_v33 = vpop.eup %4894  ;;  %v2004_v39 = vadd.f32 %v1989_v60, %v1922_v63  ;;  %v2292_v42 = vld [vmem:[#allocation4 + $0x20] sm:$0xff]  ;;  %v1715_v63 = vpop.f32.mrf.mxu3  ;;  %v4784_v60 = vld [vmem:[%s6429_s4 + $0xa8] sm:$0xff]  ;;  %2730 = vmatpush.bf16.msrb.mxu2 %v4793_v17 }
 0x23a   : > { %2020 = vst.msk [vmem:[#allocation4 + $0x31] sm:$0xff] %vm302_vm2, %v5803_v33  ;;  %v2299_v37 = vpack.c.bf16 %v2292_v42, %v2027_v9  ;;  %v1923_v20 = vadd.f32 %v5749_v29, %v1910_v46  ;;  %v5820_v1 = vld [vmem:[#allocation4 + $0x21] sm:$0xff]  ;;  %v1725_v8 = vadd.f32 %v1715_v63, %v1630_v24  ;;  %2542 = vmatpush.bf16.msra.mxu0 %v4784_v60 }
 0x23b   : > { %4896 = vtanh.f32 %v2004_v39  ;;  %v5822_v62 = vld [vmem:[#allocation4 + $0x22] sm:$0xff]  ;;  %2637 = vmatpush.bf16.msrb.mxu1 %v4788_v7 }
 0x23c   : > { %4313 = vmatmul.msk.bf16.vlgmr.msra.gmra.mxu2 %vm302_vm2, %v2299_v37  ;;  %v1809_v37 = vpop.f32.mrf.mxu0 }
 0x23d   : > { %v1819_v18 = vadd.f32 %v1809_v37, %v1725_v8 }
 0x23e   : > { %v1991_v21 = vpop.f32.mrf.mxu2 }
 0x23f   : > { %v1992_v32 = vadd.f32 %v5754_v25, %v1991_v21  ;;  %v1898_v34 = vpop.f32.mrf.mxu1 }
 0x240   : > { %v1911_v56 = vadd.f32 %v1898_v34, %v1817_v50  ;;  %v4787_v50 = vld [vmem:[%s6429_s4 + $0xc0] sm:$0xff] }
 0x241   : > { %v5824_v40 = vpop.eup %4896  ;;  %v2005_v38 = vadd.f32 %v1992_v32, %v1923_v20  ;;  %v5828_v45 = vld [vmem:[#allocation4 + $0x31] sm:$0xff]  ;;  %2638 = vmatpush.bf16.msrb.mxu1 %v4787_v50 }
 0x242   : > { %v2029_v41 = vld [vmem:[#allocation4 + $0x30] sm:$0xff]  ;;  %2021 = vst.msk [vmem:[#allocation4 + $0x41] sm:$0xff] %vm302_vm2, %v5824_v40  ;;  %v5836_v53 = vpack.c.bf16 %v5828_v45, %v5820_v1  ;;  %v1924_v30 = vadd.f32 %v5749_v29, %v1911_v56  ;;  %v4806_v50 = vld [vmem:[%s6430_s5 + $0x38] sm:$0xff] }
 0x243   : > { %v5830_v51 = vld [vmem:[#allocation4 + $0x32] sm:$0xff]  ;;  %v5838_v55 = vpack.c.bf16 %v2029_v41, %v2292_v42  ;;  %4898 = vtanh.f32 %v2005_v38  ;;  %v4783_v42 = vld [vmem:[%s6429_s4 + $0xa0] sm:$0xff] }
 0x244   : > { %v5842_v19 = vpack.c.bf16 %v5830_v51, %v5822_v62  ;;  %4238 = vmatmul.msk.bf16.gmra.mxu3 %vm302_vm2, %v5836_v53  ;;  %2543 = vmatpush.bf16.msra.mxu0 %v4783_v42  ;;  %v4798_v38 = vld [vmem:[%s6429_s4 + $0x118] sm:$0xff] }
 0x245   : > { %4258 = vmatmul.msk.bf16.gmra.mxu0 %vm302_vm2, %v5838_v55  ;;  %2823 = vmatpush.bf16.msrb.mxu3 %v4798_v38 }
 0x246   : > { %4286 = vmatmul.msk.bf16.gmra.mxu1 %vm302_vm2, %v5842_v19  ;;  %v1993_v23 = vpop.f32.mrf.mxu2 }
 0x247   : > { %v1994_v9 = vadd.f32 %v5754_v25, %v1993_v23  ;;  %v1901_v11 = vpop.f32.mrf.mxu1 }
 0x248   : > { %v1912_v15 = vadd.f32 %v1901_v11, %v1818_v44  ;;  %v4797_v44 = vld [vmem:[%s6429_s4 + $0x110] sm:$0xff]  ;;  %2966 = vmatpush.bf16.msrb.mxu0 %v4806_v50 }
 0x249   : > { %v5869_v22 = vpop.eup %4898  ;;  %v2006_v16 = vadd.f32 %v1994_v9, %v1924_v30  ;;  %v2294_v13 = vld [vmem:[#allocation4 + $0x40] sm:$0xff]  ;;  %2824 = vmatpush.bf16.msrb.mxu3 %v4797_v44  ;;  %v4813_v50 = vld [vmem:[%s6430_s5 + $0x70] sm:$0xff] }
 0x24a   : > { %2022 = vst.msk [vmem:[#allocation4 + $0x51] sm:$0xff] %vm302_vm2, %v5869_v22  ;;  %v2300_v14 = vpack.c.bf16 %v2294_v13, %v2029_v41  ;;  %v1925_v43 = vadd.f32 %v5749_v29, %v1912_v15  ;;  %v5892_v46 = vld [vmem:[#allocation4 + $0x41] sm:$0xff] }
 0x24b   : > { %4900 = vtanh.f32 %v2006_v16  ;;  %v5894_v27 = vld [vmem:[#allocation4 + $0x42] sm:$0xff] }
 0x24c   : > { %4314 = vmatmul.msk.bf16.gmra.mxu2 %vm302_vm2, %v2300_v14  ;;  %v4792_v41 = vld [vmem:[%s6429_s4 + $0xe8] sm:$0xff]  ;;  %v2487_v14 = vpack.c.bf16 %v5822_v62, %v5790_v48  ;;  %v2488_v48 = vpack.c.bf16 %v5894_v27, %v5830_v51 }
 0x24d   : > { %2731 = vmatpush.bf16.msrb.mxu2 %v4792_v41  ;;  %v4796_v15 = vld [vmem:[%s6429_s4 + $0x108] sm:$0xff] }
 0x24e   : > { %v1996_v12 = vpop.f32.mrf.mxu2  ;;  %2825 = vmatpush.bf16.msrb.mxu3 %v4796_v15  ;;  %v4802_v15 = vld [vmem:[%s6430_s5 + $0x18] sm:$0xff] }
 0x24f   : > { %v1997_v39 = vadd.f32 %v5754_v25, %v1996_v12  ;;  %v1903_v57 = vpop.f32.mrf.mxu1  ;;  %3031 = vmatpush.bf16.msra.mxu1 %v4802_v15  ;;  %v4812_v15 = vld [vmem:[%s6430_s5 + $0x68] sm:$0xff] }
 0x250   : > { %v1913_v36 = vadd.f32 %v1903_v57, %v1819_v18 }
 0x251   : > { %v5896_v35 = vpop.eup %4900  ;;  %v2007_v2 = vadd.f32 %v1997_v39, %v1925_v43  ;;  %v5898_v21 = vld [vmem:[#allocation4 + $0x51] sm:$0xff]  ;;  %2732 = vmatpush.bf16.msrb.mxu2 %v4791_v0 }
 0x252   : > { %v2031_v26 = vld [vmem:[#allocation4 + $0x50] sm:$0xff]  ;;  %2023 = vst.msk [vmem:[#allocation4 + $0x61] sm:$0xff] %vm302_vm2, %v5896_v35  ;;  %v2056_v32 = vpack.c.bf16 %v5898_v21, %v5892_v46  ;;  %v1926_v56 = vadd.f32 %v5749_v29, %v1913_v36 }
 0x253   : > { %v5900_v20 = vld [vmem:[#allocation4 + $0x52] sm:$0xff]  ;;  %v2036_v34 = vpack.c.bf16 %v2031_v26, %v2294_v13  ;;  %4902 = vtanh.f32 %v2007_v2  ;;  %v2393_v13 = vpack.c.bf16 %v5820_v1, %v5788_v5  ;;  %v2394_v5 = vpack.c.bf16 %v5892_v46, %v5828_v45  ;;  %v4795_v1 = vld [vmem:[%s6429_s4 + $0x100] sm:$0xff] }
 0x254   : > { %v5908_v61 = vpack.c.bf16 %v5900_v20, %v5894_v27  ;;  %4239 = vmatmul.msk.bf16.gmra.mxu3 %vm302_vm2, %v2056_v32  ;;  %v4805_v0 = vld [vmem:[%s6430_s5 + $0x30] sm:$0xff] }
 0x255   : > { %4259 = vmatmul.msk.bf16.gmra.mxu0 %vm302_vm2, %v2036_v34  ;;  %2826 = vmatpush.bf16.msrb.mxu3 %v4795_v1 }
 0x256   : > { %4287 = vmatmul.msk.bf16.gmra.mxu1 %vm302_vm2, %v5908_v61  ;;  %v1998_v6 = vpop.f32.mrf.mxu2  ;;  %2967 = vmatpush.bf16.msrb.mxu0 %v4805_v0 }
 0x257   : > { %v1999_v58 = vadd.f32 %v5754_v25, %v1998_v6 }
 0x259   : > { %v5928_v49 = vpop.eup %4902  ;;  %v2008_v4 = vadd.f32 %v1999_v58, %v1926_v56  ;;  %v2296_v47 = vld [vmem:[#allocation4 + $0x60] sm:$0xff] }
 0x25a   : > { %6435 = vst [vmem:[#allocation5_spill] sm:$0xff] %v5928_v49  ;;  %v2301_v59 = vpack.c.bf16 %v2296_v47, %v2031_v26  ;;  %v2052_v29 = vld [vmem:[#allocation4 + $0x61] sm:$0xff] }
 0x25b   : > { %2024 = vst.msk [vmem:[#allocation4 + $0x71] sm:$0xff] %vm302_vm2, %v5928_v49  ;;  %4904 = vtanh.f32 %v2008_v4  ;;  %v2203_v25 = vld [vmem:[#allocation4 + $0x62] sm:$0xff]  ;;  %v2395_v62 = vpack.c.bf16 %v2052_v29, %v5898_v21  ;;  %v2769_v21 = vld [vmem:[#allocation4 + $0x92] sm:$0xff] }
 0x25c   : > { %4315 = vmatmul.msk.bf16.gmra.mxu2 %vm302_vm2, %v2301_v59  ;;  %v2489_v45 = vpack.c.bf16 %v2203_v25, %v5900_v20 }
 0x261   : > { %v5933_v23 = vpop.eup %4904 }
 0x262   : > { %6436 = vst [vmem:[#allocation6_spill] sm:$0xff] %v5933_v23  ;;  %v2053_v3 = vld [vmem:[#allocation4 + $0x71] sm:$0xff] }
 0x263   : > { %v2033_v30 = vld [vmem:[#allocation4 + $0x70] sm:$0xff]  ;;  %2025 = vst.msk [vmem:[#allocation4 + $0x81] sm:$0xff] %vm302_vm2, %v5933_v23  ;;  %v2057_v10 = vpack.c.bf16 %v2053_v3, %v2052_v29 }
 0x264   : > { %v2204_v9 = vld [vmem:[#allocation4 + $0x72] sm:$0xff]  ;;  %v2037_v11 = vpack.c.bf16 %v2033_v30, %v2296_v47 }
 0x265   : > { %v2208_v52 = vpack.c.bf16 %v2204_v9, %v2203_v25  ;;  %4240 = vmatmul.msk.bf16.gmra.mxu3 %vm302_vm2, %v2057_v10 }
 0x266   : > { %4260 = vmatmul.msk.bf16.gmra.mxu0 %vm302_vm2, %v2037_v11 }
 0x267   : > { %4288 = vmatmul.msk.bf16.gmra.mxu1 %vm302_vm2, %v2208_v52 }
 0x26a   : > { %v2298_v24 = vld [vmem:[#allocation4 + $0x80] sm:$0xff] }
 0x26b   : > { %v2302_v16 = vpack.c.bf16 %v2298_v24, %v2033_v30  ;;  %v2392_v51 = vld [vmem:[#allocation4 + $0x81] sm:$0xff] }
 0x26c   : > { %v2396_v63 = vpack.c.bf16 %v2392_v51, %v2053_v3  ;;  %v2679_v8 = vpack.c.bf16 %v2675_v31, %v2392_v51  ;;  %v4803_v51 = vld [vmem:[%s6430_s5 + $0x20] sm:$0xff]  ;;  %v4808_v31 = vld [vmem:[%s6430_s5 + $0x48] sm:$0xff] }
 0x26d   : > { %4316 = vmatmul.msk.bf16.gmra.mxu2 %vm302_vm2, %v2302_v16 }
 0x275   : > { %4341 = vmatmul.msk.bf16.vlgmr.msra.gmra.mxu3 %vm302_vm2, %v2393_v13 }
 0x276   : > { %4369 = vmatmul.msk.bf16.vlgmr.msra.gmra.mxu0 %vm302_vm2, %v2487_v14 }
 0x277   : > { %4397 = vmatmul.msk.bf16.vlgmr.msrb.gmra.mxu1 %vm302_vm2, %v5838_v55  ;;  %v2581_v55 = vld [vmem:[#allocation4 + $0x90] sm:$0xff] }
 0x278   : > { %v2585_v7 = vpack.c.bf16 %v2581_v55, %v2298_v24 }
 0x27d   : > { %4425 = vmatmul.msk.bf16.vlgmr.msrb.gmra.mxu2 %vm302_vm2, %v5836_v53  ;;  %v2486_v53 = vld [vmem:[#allocation4 + $0x82] sm:$0xff] }
 0x27e   : > { %v2490_v60 = vpack.c.bf16 %v2486_v53, %v2204_v9  ;;  %v2773_v26 = vpack.c.bf16 %v2769_v21, %v2486_v53  ;;  %v4804_v9 = vld [vmem:[%s6430_s5 + $0x28] sm:$0xff]  ;;  %v4799_v21 = vld [vmem:[%s6430_s5] sm:$0xff] }
 0x27f   : > { %2968 = vmatpush.bf16.msrb.mxu0 %v4804_v9 }
 0x283   : > { %2969 = vmatpush.bf16.msrb.mxu0 %v4803_v51 }
 0x285   : > { %4342 = vmatmul.msk.bf16.gmra.mxu3 %vm302_vm2, %v2394_v5  ;;  %v4810_v5 = vld [vmem:[%s6430_s5 + $0x58] sm:$0xff] }
 0x286   : > { %4370 = vmatmul.msk.bf16.gmra.mxu0 %vm302_vm2, %v2488_v48  ;;  %3117 = vmatpush.bf16.msra.mxu2 %v4810_v5 }
 0x287   : > { %4398 = vmatmul.msk.bf16.gmra.mxu1 %vm302_vm2, %v2036_v34 }
 0x28d   : > { %4426 = vmatmul.msk.bf16.gmra.mxu2 %vm302_vm2, %v2056_v32 }
 0x295   : > { %4343 = vmatmul.msk.bf16.gmra.mxu3 %vm302_vm2, %v2395_v62  ;;  %v4801_v62 = vld [vmem:[%s6430_s5 + $0x10] sm:$0xff] }
 0x296   : > { %4371 = vmatmul.msk.bf16.gmra.mxu0 %vm302_vm2, %v2489_v45  ;;  %v4809_v45 = vld [vmem:[%s6430_s5 + $0x50] sm:$0xff]  ;;  %3032 = vmatpush.bf16.msra.mxu1 %v4801_v62 }
 0x297   : > { %4399 = vmatmul.msk.bf16.gmra.mxu1 %vm302_vm2, %v2037_v11  ;;  %3118 = vmatpush.bf16.msra.mxu2 %v4809_v45 }
 0x29b   : > { %3119 = vmatpush.bf16.msra.mxu2 %v4808_v31 }
 0x29d   : > { %4427 = vmatmul.msk.bf16.gmra.mxu2 %vm302_vm2, %v2057_v10 }
 0x2a5   : > { %4344 = vmatmul.msk.bf16.gmra.mxu3 %vm302_vm2, %v2396_v63 }
 0x2a6   : > { %4372 = vmatmul.msk.bf16.gmra.mxu0 %vm302_vm2, %v2490_v60  ;;  %v4814_v60 = vld [vmem:[%s6430_s5 + $0x78] sm:$0xff] }
 0x2a7   : > { %4400 = vmatmul.msk.bf16.gmra.mxu1 %vm302_vm2, %v2585_v7  ;;  %v4800_v7 = vld [vmem:[%s6430_s5 + $0x8] sm:$0xff]  ;;  %3211 = vmatpush.bf16.msra.mxu3 %v4814_v60 }
 0x2a8   : > { %3033 = vmatpush.bf16.msra.mxu1 %v4800_v7 }
 0x2ab   : > { %3212 = vmatpush.bf16.msra.mxu3 %v4813_v50 }
 0x2ac   : > { %3034 = vmatpush.bf16.msra.mxu1 %v4799_v21 }
 0x2ad   : > { %4428 = vmatmul.msk.bf16.gmra.mxu2 %vm302_vm2, %v2679_v8 }
 0x2af   : > { %3213 = vmatpush.bf16.msra.mxu3 %v4812_v15 }
 0x2b2   : > { %v2177_v42 = vpop.f32.mrf.mxu0 }
 0x2b3   : > { %v2263_v37 = vpop.f32.mrf.mxu1 }
 0x2b5   : > { %4453 = vmatmul.msk.bf16.vlgmr.msrb.gmra.mxu3 %vm302_vm2, %v5842_v19 }
 0x2b7   : > { %v2112_v12 = vpop.f32.mrf.mxu3 }
 0x2b8   : > { %v2178_v53 = vadd.f32 %v2177_v42, %v2112_v12 }
 0x2ba   : > { %v5993_v27 = vpop.f32.mrf.mxu0  ;;  %v2283_v12 = vadd.f32 %v2263_v37, %v2178_v53 }
 0x2bb   : > { %v5995_v19 = vpop.f32.mrf.mxu1 }
 0x2bf   : > { %v5980_v17 = vpop.f32.mrf.mxu3  ;;  %v5989_v57 = vpop.f32.mrf.mxu2 }
 0x2c0   : > { %v2377_v42 = vadd.f32 %v5989_v57, %v2283_v12  ;;  %v2180_v37 = vadd.f32 %v5993_v27, %v5980_v17  ;;  %v4811_v17 = vld [vmem:[%s6430_s5 + $0x60] sm:$0xff]  ;;  %v4818_v27 = vld [vmem:[%s6430_s5 + $0x98] sm:$0xff] }
 0x2c1   : > { %3214 = vmatpush.bf16.msra.mxu3 %v4811_v17  ;;  %3305 = vmatpush.bf16.msra.mxu0 %v4818_v27 }
 0x2c2   : > { %v6002_v20 = vpop.f32.mrf.mxu0  ;;  %v2284_v45 = vadd.f32 %v5995_v19, %v2180_v37 }
 0x2c3   : > { %v6006_v34 = vpop.f32.mrf.mxu1 }
 0x2c5   : > { %4454 = vmatmul.msk.bf16.gmra.mxu3 %vm302_vm2, %v5908_v61 }
 0x2c7   : > { %v5984_v43 = vpop.f32.mrf.mxu3  ;;  %v5997_v18 = vpop.f32.mrf.mxu2 }
 0x2c8   : > { %v2378_v53 = vadd.f32 %v5997_v18, %v2284_v45  ;;  %v6115_v18 = vld [vmem:[%s6431_s6 + $0x3] ss:$0 sm:$0xff] }
 0x2ca   : > { %v6013_v36 = vpop.f32.mrf.mxu0 }
 0x2cb   : > { %v6017_v41 = vpop.f32.mrf.mxu1 }
 0x2cf   : > { %v5986_v39 = vpop.f32.mrf.mxu3  ;;  %v6008_v61 = vpop.f32.mrf.mxu2 }
 0x2d2   : > { %v6021_v58 = vpop.f32.mrf.mxu0 }
 0x2d3   : > { %v6026_v4 = vpop.f32.mrf.mxu1 }
 0x2d5   : > { %4455 = vmatmul.msk.bf16.gmra.mxu3 %vm302_vm2, %v2208_v52 }
 0x2d7   : > { %v5991_v46 = vpop.f32.mrf.mxu3  ;;  %v6019_v6 = vpop.f32.mrf.mxu2 }
 0x2da   : > { %v6030_v29 = vpop.f32.mrf.mxu0 }
 0x2db   : > { %v6032_v25 = vpop.f32.mrf.mxu1 }
 0x2df   : > { %v5999_v2 = vpop.f32.mrf.mxu3  ;;  %v6028_v47 = vpop.f32.mrf.mxu2 }
 0x2e3   : > { %v6041_v10 = vpop.f32.mrf.mxu0 }
 0x2e4   : > { %v6045_v52 = vpop.f32.mrf.mxu1 }
 0x2e5   : > { %4456 = vmatmul.msk.bf16.gmra.mxu3 %vm302_vm2, %v2773_v26  ;;  %v4807_v26 = vld [vmem:[%s6430_s5 + $0x40] sm:$0xff] }
 0x2e6   : > { %3120 = vmatpush.bf16.msra.mxu2 %v4807_v26 }
 0x2e7   : > { %v6034_v3 = vpop.f32.mrf.mxu2 }
 0x2e8   : > { %v6004_v32 = vpop.f32.mrf.mxu3 }
 0x2eb   : > { %v6049_v24 = vpop.f32.mrf.mxu0 }
 0x2ec   : > { %v6053_v13 = vpop.f32.mrf.mxu1 }
 0x2f0   : > { %v6015_v38 = vpop.f32.mrf.mxu3  ;;  %v6047_v44 = vpop.f32.mrf.mxu2 }
 0x2f3   : > { %v2545_v1 = vpop.f32.mrf.mxu0 }
 0x2f4   : > { %v2640_v55 = vpop.f32.mrf.mxu1 }
 0x2f8   : > { %v2451_v56 = vpop.f32.mrf.mxu3  ;;  %v6055_v14 = vpop.f32.mrf.mxu2 }
 0x2f9   : > { %v2471_v9 = vadd.f32 %v2451_v56, %v2377_v42  ;;  %v2183_v56 = vadd.f32 %v6002_v20, %v5984_v43 }
 0x2fb   : > { %v2547_v0 = vpop.f32.mrf.mxu0  ;;  %v2565_v51 = vadd.f32 %v2545_v1, %v2471_v9  ;;  %v2285_v12 = vadd.f32 %v6006_v34, %v2183_v56 }
 0x2fc   : > { %v2642_v57 = vpop.f32.mrf.mxu1 }
 0x2fd   : > { %v2660_v7 = vadd.f32 %v2640_v55, %v2565_v51  ;;  %v2379_v43 = vadd.f32 %v6008_v61, %v2285_v12 }
 0x300   : > { %v2453_v59 = vpop.f32.mrf.mxu3  ;;  %v2734_v63 = vpop.f32.mrf.mxu2 }
 0x301   : > { %v2472_v60 = vadd.f32 %v2453_v59, %v2378_v53  ;;  %v2754_v19 = vadd.f32 %v2734_v63, %v2660_v7  ;;  %v2185_v59 = vadd.f32 %v6013_v36, %v5986_v39  ;;  %v4817_v39 = vld [vmem:[%s6430_s5 + $0x90] sm:$0xff]  ;;  %v2188_v36 = vadd.f32 %v6021_v58, %v5991_v46  ;;  %v2905_v7 = vld [vmem:[#allocation3 + $0x1] sm:$0xff] }
 0x302   : > { %3306 = vmatpush.bf16.msra.mxu0 %v4817_v39 }
 0x303   : > { %v2550_v31 = vpop.f32.mrf.mxu0  ;;  %v2566_v42 = vadd.f32 %v2547_v0, %v2472_v60  ;;  %v2286_v34 = vadd.f32 %v6017_v41, %v2185_v59 }
 0x304   : > { %v2645_v21 = vpop.f32.mrf.mxu1 }
 0x305   : > { %v2661_v63 = vadd.f32 %v2642_v57, %v2566_v42  ;;  %v2380_v53 = vadd.f32 %v6019_v6, %v2286_v34 }
 0x308   : > { %v6036_v30 = vpop.f32.mrf.mxu3  ;;  %v2736_v5 = vpop.f32.mrf.mxu2 }
 0x309   : > { %v2473_v55 = vadd.f32 %v6036_v30, %v2379_v43  ;;  %v2755_v37 = vadd.f32 %v2736_v5, %v2661_v63  ;;  %v2287_v5 = vadd.f32 %v6026_v4, %v2188_v36  ;;  %v2190_v43 = vadd.f32 %v6030_v29, %v5999_v2 }
 0x30b   : > { %v2552_v9 = vpop.f32.mrf.mxu0  ;;  %v2567_v0 = vadd.f32 %v2550_v31, %v2473_v55  ;;  %v2885_v31 = vld [vmem:[#allocation3] sm:$0xff]  ;;  %v2381_v42 = vadd.f32 %v6028_v47, %v2287_v5 }
 0x30c   : > { %v2647_v61 = vpop.f32.mrf.mxu1 }
 0x30d   : > { %v2662_v30 = vadd.f32 %v2645_v21, %v2567_v0 }
 0x310   : > { %v6043_v11 = vpop.f32.mrf.mxu3  ;;  %v2739_v50 = vpop.f32.mrf.mxu2 }
 0x311   : > { %v2474_v41 = vadd.f32 %v6043_v11, %v2380_v53  ;;  %v2756_v57 = vadd.f32 %v2739_v50, %v2662_v30  ;;  %v4816_v53 = vld [vmem:[%s6430_s5 + $0x88] sm:$0xff] }
 0x312   : > { %3307 = vmatpush.bf16.msra.mxu0 %v4816_v53 }
 0x313   : > { %v2568_v56 = vadd.f32 %v2552_v9, %v2474_v41  ;;  %v2288_v9 = vadd.f32 %v6032_v25, %v2190_v43  ;;  %v4821_v43 = vld [vmem:[%s6430_s5 + $0xb0] sm:$0xff] }
 0x315   : > { %v2663_v59 = vadd.f32 %v2647_v61, %v2568_v56  ;;  %v2382_v2 = vadd.f32 %v6034_v3, %v2288_v9  ;;  %v2193_v61 = vadd.f32 %v6041_v10, %v6004_v32 }
 0x317   : > { %v2289_v41 = vadd.f32 %v6045_v52, %v2193_v61  ;;  %v4819_v61 = vld [vmem:[%s6430_s5 + $0xa0] sm:$0xff] }
 0x318   : > { %v6051_v16 = vpop.f32.mrf.mxu3  ;;  %v2741_v27 = vpop.f32.mrf.mxu2 }
 0x319   : > { %v2475_v47 = vadd.f32 %v6051_v16, %v2381_v42  ;;  %v2757_v63 = vadd.f32 %v2741_v27, %v2663_v59  ;;  %v2383_v10 = vadd.f32 %v6047_v44, %v2289_v41  ;;  %v2195_v44 = vadd.f32 %v6049_v24, %v6015_v38  ;;  %v4822_v38 = vld [vmem:[%s6430_s5 + $0xb8] sm:$0xff]  ;;  %v4825_v59 = vld [vmem:[%s6430_s5 + $0xd0] sm:$0xff] }
 0x31a   : > { %v4826_v24 = vld [vmem:[%s6430_s5 + $0xd8] sm:$0xff]  ;;  %3399 = vmatpush.bf16.msrb.mxu1 %v4822_v38  ;;  %v4827_v38 = vld [vmem:[%s6430_s5 + $0xe0] sm:$0xff] }
 0x31b   : > { %3493 = vmatpush.bf16.msrb.mxu2 %v4826_v24 }
 0x31e   : > { %3400 = vmatpush.bf16.msrb.mxu1 %v4821_v43 }
 0x31f   : > { %3494 = vmatpush.bf16.msrb.mxu2 %v4825_v59 }
 0x320   : > { %v6063_v48 = vpop.f32.mrf.mxu3  ;;  %v2744_v55 = vpop.f32.mrf.mxu2 }
 0x321   : > { %v2476_v25 = vadd.f32 %v6063_v48, %v2382_v2  ;;  %v4824_v2 = vld [vmem:[%s6430_s5 + $0xc8] sm:$0xff] }
 0x323   : > { %3495 = vmatpush.bf16.msrb.mxu2 %v4824_v2 }
 0x328   : > { %v6083_v8 = vpop.f32.mrf.mxu3  ;;  %v2746_v39 = vpop.f32.mrf.mxu2 }
 0x330   : > { %v6100_v62 = vpop.f32.mrf.mxu3 }
 0x338   : > { %v2828_v1 = vpop.f32.mrf.mxu3 }
 0x339   : > { %v2848_v26 = vadd.f32 %v2828_v1, %v2754_v19  ;;  %v3056_v19 = vld [vmem:[#allocation3 + $0x2] sm:$0xff]  ;;  %v2555_v1 = vpop.f32.mrf.mxu0 }
 0x33b   : > { %v2861_v20 = vadd.f32 %v6115_v18, %v2848_v26 }
 0x33d   : > { %4906 = vtanh.f32 %v2861_v20  ;;  %v2650_v20 = vpop.f32.mrf.mxu1 }
 0x340   : > { %v2830_v15 = vpop.f32.mrf.mxu3 }
 0x341   : > { %v2849_v45 = vadd.f32 %v2830_v15, %v2755_v37  ;;  %v2569_v15 = vadd.f32 %v2555_v1, %v2475_v47  ;;  %v2477_v1 = vadd.f32 %v6083_v8, %v2383_v10  ;;  %v2749_v47 = vpop.f32.mrf.mxu2 }
 0x343   : > { %v4907_v51 = vpop.eup %4906  ;;  %v2862_v17 = vadd.f32 %v6115_v18, %v2849_v45  ;;  %v2557_v45 = vpop.f32.mrf.mxu0 }
 0x344   : > { %2877 = vst.msk [vmem:[#allocation3 + $0x11] sm:$0xff] %vm302_vm2, %v4907_v51  ;;  %v2570_v30 = vadd.f32 %v2557_v45, %v2476_v25  ;;  %v4829_v45 = vld [vmem:[%s6430_s5 + $0xf0] sm:$0xff] }
 0x345   : > { %4908 = vtanh.f32 %v2862_v17  ;;  %v2664_v17 = vadd.f32 %v2650_v20, %v2569_v15  ;;  %v2652_v3 = vpop.f32.mrf.mxu1 }
 0x347   : > { %v2758_v27 = vadd.f32 %v2744_v55, %v2664_v17 }
 0x348   : > { %v2833_v6 = vpop.f32.mrf.mxu3 }
 0x349   : > { %v2850_v60 = vadd.f32 %v2833_v6, %v2756_v57 }
 0x34b   : > { %v4909_v12 = vpop.eup %4908  ;;  %v2863_v46 = vadd.f32 %v6115_v18, %v2850_v60  ;;  %v6136_v58 = vld [vmem:[#allocation3 + $0x11] sm:$0xff]  ;;  %v2560_v42 = vpop.f32.mrf.mxu0 }
 0x34c   : > { %v2886_v11 = vld [vmem:[#allocation3 + $0x10] sm:$0xff]  ;;  %2878 = vst.msk [vmem:[#allocation3 + $0x21] sm:$0xff] %vm302_vm2, %v4909_v12  ;;  %v2913_v4 = vpack.c.bf16 %v6136_v58, %v2905_v7  ;;  %v2665_v12 = vadd.f32 %v2652_v3, %v2570_v30 }
 0x34d   : > { %v6138_v21 = vld [vmem:[#allocation3 + $0x12] sm:$0xff]  ;;  %v2893_v26 = vpack.c.bf16 %v2886_v11, %v2885_v31  ;;  %4910 = vtanh.f32 %v2863_v46  ;;  %v2655_v20 = vpop.f32.mrf.mxu1 }
 0x34e   : > { %v3064_v50 = vpack.c.bf16 %v6138_v21, %v3056_v19  ;;  %4482 = vmatmul.msk.bf16.vlgmr.msrb.gmra.mxu0 %vm302_vm2, %v2913_v4  ;;  %v2759_v46 = vadd.f32 %v2746_v39, %v2665_v12  ;;  %v2290_v4 = vadd.f32 %v6053_v13, %v2195_v44  ;;  %v4834_v12 = vld [vmem:[%s6430_s5 + $0x118] sm:$0xff] }
 0x34f   : > { %4502 = vmatmul.msk.bf16.vlgmr.msra.gmra.mxu1 %vm302_vm2, %v2893_v26  ;;  %v2571_v26 = vadd.f32 %v2560_v42, %v2477_v1  ;;  %v4828_v42 = vld [vmem:[%s6430_s5 + $0xe8] sm:$0xff] }
 0x350   : > { %4530 = vmatmul.msk.bf16.vlgmr.msra.gmra.mxu2 %vm302_vm2, %v3064_v50  ;;  %v2835_v37 = vpop.f32.mrf.mxu3 }
 0x351   : > { %v2851_v34 = vadd.f32 %v2835_v37, %v2757_v63  ;;  %v2384_v63 = vadd.f32 %v6055_v14, %v2290_v4  ;;  %v4820_v14 = vld [vmem:[%s6430_s5 + $0xa8] sm:$0xff] }
 0x352   : > { %3401 = vmatpush.bf16.msrb.mxu1 %v4820_v14  ;;  %v4832_v14 = vld [vmem:[%s6430_s5 + $0x108] sm:$0xff] }
 0x353   : > { %v4911_v0 = vpop.eup %4910  ;;  %v2864_v29 = vadd.f32 %v6115_v18, %v2851_v34  ;;  %v3151_v16 = vld [vmem:[#allocation3 + $0x20] sm:$0xff]  ;;  %v2478_v15 = vadd.f32 %v6100_v62, %v2384_v63  ;;  %v2666_v34 = vadd.f32 %v2655_v20, %v2571_v26  ;;  %v2562_v62 = vpop.f32.mrf.mxu0 }
 0x354   : > { %2879 = vst.msk [vmem:[#allocation3 + $0x31] sm:$0xff] %vm302_vm2, %v4911_v0  ;;  %v3158_v51 = vpack.c.bf16 %v3151_v16, %v2886_v11  ;;  %v6161_v6 = vld [vmem:[#allocation3 + $0x21] sm:$0xff]  ;;  %v4830_v0 = vld [vmem:[%s6430_s5 + $0xf8] sm:$0xff] }
 0x355   : > { %4912 = vtanh.f32 %v2864_v29  ;;  %v6163_v5 = vld [vmem:[#allocation3 + $0x22] sm:$0xff]  ;;  %v2760_v29 = vadd.f32 %v2749_v47, %v2666_v34  ;;  %3587 = vmatpush.bf16.msrb.mxu3 %v4830_v0  ;;  %v2657_v30 = vpop.f32.mrf.mxu1  ;;  %v3252_v34 = vpack.c.bf16 %v6161_v6, %v6136_v58 }
 0x356   : > { %4558 = vmatmul.msk.bf16.vlgmr.msra.gmra.mxu3 %vm302_vm2, %v3158_v51  ;;  %v4815_v11 = vld [vmem:[%s6430_s5 + $0x80] sm:$0xff]  ;;  %v2572_v51 = vadd.f32 %v2562_v62, %v2478_v15  ;;  %3402 = vmatpush.bf16.msrb.mxu1 %v4819_v61  ;;  %v3346_v0 = vpack.c.bf16 %v6163_v5, %v6138_v21 }
 0x357   : > { %3308 = vmatpush.bf16.msra.mxu0 %v4815_v11 }
 0x358   : > { %v2838_v36 = vpop.f32.mrf.mxu3  ;;  %v2667_v44 = vadd.f32 %v2657_v30, %v2572_v51 }
 0x359   : > { %v2852_v57 = vadd.f32 %v2838_v36, %v2758_v27  ;;  %3588 = vmatpush.bf16.msrb.mxu3 %v4829_v45 }
 0x35b   : > { %v4913_v32 = vpop.eup %4912  ;;  %v2865_v48 = vadd.f32 %v6115_v18, %v2852_v57  ;;  %v6167_v56 = vld [vmem:[#allocation3 + $0x31] sm:$0xff]  ;;  %v2751_v57 = vpop.f32.mrf.mxu2  ;;  %3681 = vmatpush.bf16.msrb.mxu0 %v4834_v12 }
 0x35c   : > { %v2888_v60 = vld [vmem:[#allocation3 + $0x30] sm:$0xff]  ;;  %2880 = vst.msk [vmem:[#allocation3 + $0x41] sm:$0xff] %vm302_vm2, %v4913_v32  ;;  %v6174_v52 = vpack.c.bf16 %v6167_v56, %v6161_v6  ;;  %v2761_v1 = vadd.f32 %v2751_v57, %v2667_v44  ;;  %v4831_v6 = vld [vmem:[%s6430_s5 + $0x100] sm:$0xff] }
 0x35d   : > { %v6169_v7 = vld [vmem:[#allocation3 + $0x32] sm:$0xff]  ;;  %v6176_v31 = vpack.c.bf16 %v2888_v60, %v3151_v16  ;;  %4914 = vtanh.f32 %v2865_v48  ;;  %3589 = vmatpush.bf16.msrb.mxu3 %v4828_v42 }
 0x35e   : > { %v6180_v19 = vpack.c.bf16 %v6169_v7, %v6163_v5  ;;  %4483 = vmatmul.msk.bf16.gmra.mxu0 %vm302_vm2, %v6174_v52 }
 0x35f   : > { %4503 = vmatmul.msk.bf16.gmra.mxu1 %vm302_vm2, %v6176_v31 }
 0x360   : > { %4531 = vmatmul.msk.bf16.gmra.mxu2 %vm302_vm2, %v6180_v19  ;;  %v2840_v8 = vpop.f32.mrf.mxu3 }
 0x361   : > { %v2853_v50 = vadd.f32 %v2840_v8, %v2759_v46  ;;  %3590 = vmatpush.bf16.msrb.mxu3 %v4827_v38 }
 0x363   : > { %v4915_v55 = vpop.eup %4914  ;;  %v2866_v13 = vadd.f32 %v6115_v18, %v2853_v50  ;;  %v3153_v37 = vld [vmem:[#allocation3 + $0x40] sm:$0xff] }
 0x364   : > { %2881 = vst.msk [vmem:[#allocation3 + $0x51] sm:$0xff] %vm302_vm2, %v4915_v55  ;;  %v3159_v9 = vpack.c.bf16 %v3153_v37, %v2888_v60  ;;  %v6227_v25 = vld [vmem:[#allocation3 + $0x41] sm:$0xff] }
 0x365   : > { %4916 = vtanh.f32 %v2866_v13  ;;  %v6229_v17 = vld [vmem:[#allocation3 + $0x42] sm:$0xff]  ;;  %v3253_v58 = vpack.c.bf16 %v6227_v25, %v6167_v56 }
 0x366   : > { %4559 = vmatmul.msk.bf16.gmra.mxu3 %vm302_vm2, %v3159_v9  ;;  %v4823_v60 = vld [vmem:[%s6430_s5 + $0xc0] sm:$0xff]  ;;  %v3347_v21 = vpack.c.bf16 %v6229_v17, %v6169_v7 }
 0x367   : > { %3496 = vmatpush.bf16.msrb.mxu2 %v4823_v60 }
 0x368   : > { %v2843_v16 = vpop.f32.mrf.mxu3 }
 0x369   : > { %v2854_v53 = vadd.f32 %v2843_v16, %v2760_v29  ;;  %v3533_v16 = vld [vmem:[#allocation3 + $0x91] sm:$0xff] }
 0x36b   : > { %v4917_v3 = vpop.eup %4916  ;;  %v2867_v27 = vadd.f32 %v6115_v18, %v2854_v53  ;;  %v6232_v39 = vld [vmem:[#allocation3 + $0x51] sm:$0xff] }
 0x36c   : > { %v2890_v36 = vld [vmem:[#allocation3 + $0x50] sm:$0xff]  ;;  %2882 = vst.msk [vmem:[#allocation3 + $0x61] sm:$0xff] %vm302_vm2, %v4917_v3  ;;  %v2915_v32 = vpack.c.bf16 %v6232_v39, %v6227_v25 }
 0x36d   : > { %v6234_v41 = vld [vmem:[#allocation3 + $0x52] sm:$0xff]  ;;  %v2895_v10 = vpack.c.bf16 %v2890_v36, %v3153_v37  ;;  %4918 = vtanh.f32 %v2867_v27 }
 0x36e   : > { %v6241_v48 = vpack.c.bf16 %v6234_v41, %v6229_v17  ;;  %4484 = vmatmul.msk.bf16.gmra.mxu0 %vm302_vm2, %v2915_v32 }
 0x36f   : > { %4504 = vmatmul.msk.bf16.gmra.mxu1 %vm302_vm2, %v2895_v10 }
 0x370   : > { %4532 = vmatmul.msk.bf16.gmra.mxu2 %vm302_vm2, %v6241_v48  ;;  %v2845_v46 = vpop.f32.mrf.mxu3 }
 0x371   : > { %v2855_v11 = vadd.f32 %v2845_v46, %v2761_v1 }
 0x373   : > { %v4919_v24 = vpop.eup %4918  ;;  %v2868_v8 = vadd.f32 %v6115_v18, %v2855_v11  ;;  %v3155_v4 = vld [vmem:[#allocation3 + $0x60] sm:$0xff]  ;;  %v4833_v18 = vld [vmem:[%s6430_s5 + $0x110] sm:$0xff] }
 0x374   : > { %2883 = vst.msk [vmem:[#allocation3 + $0x71] sm:$0xff] %vm302_vm2, %v4919_v24  ;;  %v3160_v26 = vpack.c.bf16 %v3155_v4, %v2890_v36  ;;  %v2911_v50 = vld [vmem:[#allocation3 + $0x61] sm:$0xff]  ;;  %3682 = vmatpush.bf16.msrb.mxu0 %v4833_v18 }
 0x375   : > { %4920 = vtanh.f32 %v2868_v8  ;;  %v3062_v43 = vld [vmem:[#allocation3 + $0x62] sm:$0xff]  ;;  %v3254_v5 = vpack.c.bf16 %v2911_v50, %v6232_v39 }
 0x376   : > { %4560 = vmatmul.msk.bf16.gmra.mxu3 %vm302_vm2, %v3160_v26  ;;  %v3348_v56 = vpack.c.bf16 %v3062_v43, %v6234_v41 }
 0x378   : > { %3683 = vmatpush.bf16.msrb.mxu0 %v4832_v14 }
 0x37b   : > { %v4921_v20 = vpop.eup %4920  ;;  %v2912_v47 = vld [vmem:[#allocation3 + $0x71] sm:$0xff] }
 0x37c   : > { %v2892_v59 = vld [vmem:[#allocation3 + $0x70] sm:$0xff]  ;;  %2884 = vst.msk [vmem:[#allocation3 + $0x81] sm:$0xff] %vm302_vm2, %v4921_v20  ;;  %v2916_v63 = vpack.c.bf16 %v2912_v47, %v2911_v50  ;;  %3684 = vmatpush.bf16.msrb.mxu0 %v4831_v6 }
 0x37d   : > { %v3063_v55 = vld [vmem:[#allocation3 + $0x72] sm:$0xff]  ;;  %v2896_v13 = vpack.c.bf16 %v2892_v59, %v3155_v4 }
 0x37e   : > { %v3067_v37 = vpack.c.bf16 %v3063_v55, %v3062_v43  ;;  %4485 = vmatmul.msk.bf16.gmra.mxu0 %vm302_vm2, %v2916_v63 }
 0x37f   : > { %4505 = vmatmul.msk.bf16.gmra.mxu1 %vm302_vm2, %v2896_v13 }
 0x380   : > { %4533 = vmatmul.msk.bf16.gmra.mxu2 %vm302_vm2, %v3067_v37 }
 0x383   : > { %v3157_v9 = vld [vmem:[#allocation3 + $0x80] sm:$0xff] }
 0x384   : > { %v3161_v15 = vpack.c.bf16 %v3157_v9, %v2892_v59  ;;  %v3251_v7 = vld [vmem:[#allocation3 + $0x81] sm:$0xff] }
 0x385   : > { %v3255_v2 = vpack.c.bf16 %v3251_v7, %v2912_v47  ;;  %v3537_v45 = vpack.c.bf16 %v3533_v16, %v3251_v7 }
 0x386   : > { %4561 = vmatmul.msk.bf16.gmra.mxu3 %vm302_vm2, %v3161_v15 }
 0x38e   : > { %4586 = vmatmul.msk.bf16.vlgmr.msra.gmra.mxu0 %vm302_vm2, %v3252_v34 }
 0x38f   : > { %4614 = vmatmul.msk.bf16.vlgmr.msrb.gmra.mxu1 %vm302_vm2, %v3346_v0 }
 0x390   : > { %4642 = vmatmul.msk.bf16.vlgmr.msrb.gmra.mxu2 %vm302_vm2, %v6176_v31  ;;  %v3439_v31 = vld [vmem:[#allocation3 + $0x90] sm:$0xff] }
 0x391   : > { %v3443_v62 = vpack.c.bf16 %v3439_v31, %v3157_v9 }
 0x396   : > { %4670 = vmatmul.msk.bf16.vlgmr.msrb.gmra.mxu3 %vm302_vm2, %v6174_v52  ;;  %v3345_v52 = vld [vmem:[#allocation3 + $0x82] sm:$0xff] }
 0x397   : > { %v3349_v29 = vpack.c.bf16 %v3345_v52, %v3063_v55 }
 0x39e   : > { %4587 = vmatmul.msk.bf16.gmra.mxu0 %vm302_vm2, %v3253_v58 }
 0x39f   : > { %4615 = vmatmul.msk.bf16.gmra.mxu1 %vm302_vm2, %v3347_v21 }
 0x3a0   : > { %4643 = vmatmul.msk.bf16.gmra.mxu2 %vm302_vm2, %v2895_v10 }
 0x3a6   : > { %4671 = vmatmul.msk.bf16.gmra.mxu3 %vm302_vm2, %v2915_v32 }
 0x3ae   : > { %4588 = vmatmul.msk.bf16.gmra.mxu0 %vm302_vm2, %v3254_v5 }
 0x3af   : > { %4616 = vmatmul.msk.bf16.gmra.mxu1 %vm302_vm2, %v3348_v56 }
 0x3b0   : > { %4644 = vmatmul.msk.bf16.gmra.mxu2 %vm302_vm2, %v2896_v13 }
 0x3b6   : > { %4672 = vmatmul.msk.bf16.gmra.mxu3 %vm302_vm2, %v2916_v63 }
 0x3be   : > { %4589 = vmatmul.msk.bf16.gmra.mxu0 %vm302_vm2, %v3255_v2 }
 0x3bf   : > { %4617 = vmatmul.msk.bf16.gmra.mxu1 %vm302_vm2, %v3349_v29 }
 0x3c0   : > { %4645 = vmatmul.msk.bf16.gmra.mxu2 %vm302_vm2, %v3443_v62 }
 0x3c6   : > { %4673 = vmatmul.msk.bf16.gmra.mxu3 %vm302_vm2, %v3537_v45 }
 0x3cb   : > { %v2971_v51 = vpop.f32.mrf.mxu0 }
 0x3cc   : > { %v3036_v17 = vpop.f32.mrf.mxu1 }
 0x3cd   : > { %v3037_v21 = vadd.f32 %v3036_v17, %v2971_v51  ;;  %v6359_v51 = vld [vmem:[%s6431_s6 + $0x4] ss:$0 sm:$0xff] }
 0x3ce   : > { %4698 = vmatmul.msk.bf16.vlgmr.msrb.gmra.mxu0 %vm302_vm2, %v6180_v19  ;;  %v3627_v19 = vld [vmem:[#allocation3 + $0x92] sm:$0xff] }
 0x3d3   : > { %v2973_v53 = vpop.f32.mrf.mxu0  ;;  %v3122_v3 = vpop.f32.mrf.mxu2 }
 0x3d4   : > { %v3038_v36 = vpop.f32.mrf.mxu1  ;;  %v3142_v6 = vadd.f32 %v3122_v3, %v3037_v21 }
 0x3d5   : > { %v3039_v29 = vadd.f32 %v3038_v36, %v2973_v53 }
 0x3d9   : > { %v3216_v27 = vpop.f32.mrf.mxu3 }
 0x3da   : > { %v3236_v5 = vadd.f32 %v3216_v27, %v3142_v6 }
 0x3db   : > { %v6306_v61 = vpop.f32.mrf.mxu0  ;;  %v3124_v41 = vpop.f32.mrf.mxu2 }
 0x3dc   : > { %v3041_v32 = vpop.f32.mrf.mxu1  ;;  %v3143_v62 = vadd.f32 %v3124_v41, %v3039_v29 }
 0x3dd   : > { %v3042_v27 = vadd.f32 %v3041_v32, %v6306_v61 }
 0x3de   : > { %4699 = vmatmul.msk.bf16.gmra.mxu0 %vm302_vm2, %v6241_v48  ;;  %v3631_v48 = vpack.c.bf16 %v3627_v19, %v3345_v52 }
 0x3e1   : > { %v3218_v30 = vpop.f32.mrf.mxu3 }
 0x3e2   : > { %v3237_v45 = vadd.f32 %v3218_v30, %v3143_v62 }
 0x3e3   : > { %v6310_v25 = vpop.f32.mrf.mxu0  ;;  %v3127_v10 = vpop.f32.mrf.mxu2 }
 0x3e4   : > { %v3043_v12 = vpop.f32.mrf.mxu1  ;;  %v3144_v53 = vadd.f32 %v3127_v10, %v3042_v27 }
 0x3e9   : > { %v3221_v44 = vpop.f32.mrf.mxu3 }
 0x3ea   : > { %v3238_v30 = vadd.f32 %v3221_v44, %v3144_v53 }
 0x3eb   : > { %v6312_v39 = vpop.f32.mrf.mxu0  ;;  %v3129_v42 = vpop.f32.mrf.mxu2 }
 0x3ec   : > { %v6324_v38 = vpop.f32.mrf.mxu1 }
 0x3ee   : > { %4700 = vmatmul.msk.bf16.gmra.mxu0 %vm302_vm2, %v3067_v37 }
 0x3f1   : > { %v6322_v46 = vpop.f32.mrf.mxu3 }
 0x3f3   : > { %v6315_v57 = vpop.f32.mrf.mxu0  ;;  %v6326_v24 = vpop.f32.mrf.mxu2 }
 0x3f4   : > { %v6330_v26 = vpop.f32.mrf.mxu1 }
 0x3f5   : > { %v3049_v27 = vadd.f32 %v6330_v26, %v6315_v57 }
 0x3f9   : > { %v6328_v8 = vpop.f32.mrf.mxu3 }
 0x3fb   : > { %v6317_v60 = vpop.f32.mrf.mxu0  ;;  %v6332_v50 = vpop.f32.mrf.mxu2 }
 0x3fc   : > { %v6336_v47 = vpop.f32.mrf.mxu1 }
 0x3fe   : > { %4701 = vmatmul.msk.bf16.gmra.mxu0 %vm302_vm2, %v3631_v48 }
 0x401   : > { %v6334_v43 = vpop.f32.mrf.mxu3 }
 0x403   : > { %v6320_v1 = vpop.f32.mrf.mxu0  ;;  %v6338_v59 = vpop.f32.mrf.mxu2 }
 0x404   : > { %v6344_v37 = vpop.f32.mrf.mxu1 }
 0x409   : > { %v6340_v63 = vpop.f32.mrf.mxu3 }
 0x40b   : > { %v3310_v11 = vpop.f32.mrf.mxu0  ;;  %v6346_v18 = vpop.f32.mrf.mxu2 }
 0x40c   : > { %v3404_v34 = vpop.f32.mrf.mxu1  ;;  %v3330_v52 = vadd.f32 %v3310_v11, %v3236_v5  ;;  %v3044_v5 = vadd.f32 %v3043_v12, %v6310_v25 }
 0x40e   : > { %v3424_v16 = vadd.f32 %v3404_v34, %v3330_v52 }
 0x411   : > { %v6348_v9 = vpop.f32.mrf.mxu3 }
 0x413   : > { %v3312_v4 = vpop.f32.mrf.mxu0  ;;  %v3498_v0 = vpop.f32.mrf.mxu2 }
 0x414   : > { %v3406_v56 = vpop.f32.mrf.mxu1  ;;  %v3518_v19 = vadd.f32 %v3498_v0, %v3424_v16  ;;  %v3331_v48 = vadd.f32 %v3312_v4, %v3237_v45 }
 0x416   : > { %v3425_v36 = vadd.f32 %v3406_v56, %v3331_v48 }
 0x419   : > { %v3592_v14 = vpop.f32.mrf.mxu3 }
 0x41a   : > { %v3612_v23 = vadd.f32 %v3592_v14, %v3518_v19 }
 0x41b   : > { %v3315_v20 = vpop.f32.mrf.mxu0  ;;  %v3500_v7 = vpop.f32.mrf.mxu2 }
 0x41c   : > { %v3409_v49 = vpop.f32.mrf.mxu1  ;;  %v3519_v4 = vadd.f32 %v3500_v7, %v3425_v36  ;;  %v3332_v0 = vadd.f32 %v3315_v20, %v3238_v30  ;;  %v3047_v7 = vadd.f32 %v6324_v38, %v6312_v39 }
 0x41e   : > { %v3426_v32 = vadd.f32 %v3409_v49, %v3332_v0  ;;  %v3146_v62 = vadd.f32 %v6326_v24, %v3047_v7  ;;  %v3052_v0 = vadd.f32 %v6336_v47, %v6317_v60 }
 0x421   : > { %v3594_v31 = vpop.f32.mrf.mxu3 }
 0x422   : > { %v3613_v14 = vadd.f32 %v3594_v31, %v3519_v4 }
 0x423   : > { %v3317_v55 = vpop.f32.mrf.mxu0  ;;  %v3503_v17 = vpop.f32.mrf.mxu2 }
 0x424   : > { %v3411_v52 = vpop.f32.mrf.mxu1  ;;  %v3520_v56 = vadd.f32 %v3503_v17, %v3426_v32 }
 0x429   : > { %v3597_v21 = vpop.f32.mrf.mxu3 }
 0x42a   : > { %v3614_v49 = vadd.f32 %v3597_v21, %v3520_v56  ;;  %v3147_v21 = vadd.f32 %v6332_v50, %v3049_v27 }
 0x42b   : > { %v6342_v13 = vpop.f32.mrf.mxu0  ;;  %v3505_v61 = vpop.f32.mrf.mxu2 }
 0x42c   : > { %v3414_v45 = vpop.f32.mrf.mxu1 }
 0x431   : > { %v3599_v10 = vpop.f32.mrf.mxu3 }
 0x433   : > { %v6350_v15 = vpop.f32.mrf.mxu0  ;;  %v3508_v19 = vpop.f32.mrf.mxu2 }
 0x434   : > { %v3416_v30 = vpop.f32.mrf.mxu1 }
 0x43b   : > { %v6352_v58 = vpop.f32.mrf.mxu0 }
 0x443   : > { %v6354_v2 = vpop.f32.mrf.mxu0 }
 0x44b   : > { %v3686_v3 = vpop.f32.mrf.mxu0 }
 0x44c   : > { %v3706_v11 = vadd.f32 %v3686_v3, %v3612_v23  ;;  %v3145_v23 = vadd.f32 %v3129_v42, %v3044_v5  ;;  %v3602_v3 = vpop.f32.mrf.mxu3 }
 0x44e   : > { %v3719_v41 = vadd.f32 %v6359_v51, %v3706_v11  ;;  %v3239_v20 = vadd.f32 %v6322_v46, %v3145_v23  ;;  %v3419_v23 = vpop.f32.mrf.mxu1 }
 0x450   : > { %v3727_v34 = vadd.f32 %v5768_v54, %v3719_v41  ;;  %v3333_v12 = vadd.f32 %v3317_v55, %v3239_v20 }
 0x452   : > { %4922 = vtanh.f32 %v3727_v34  ;;  %v3427_v16 = vadd.f32 %v3411_v52, %v3333_v12 }
 0x453   : > { %v3688_v6 = vpop.f32.mrf.mxu0 }
 0x454   : > { %v3707_v29 = vadd.f32 %v3688_v6, %v3613_v14  ;;  %v3521_v17 = vadd.f32 %v3505_v61, %v3427_v16  ;;  %v3604_v26 = vpop.f32.mrf.mxu3 }
 0x456   : > { %v3720_v54 = vadd.f32 %v6359_v51, %v3707_v29  ;;  %v3615_v38 = vadd.f32 %v3599_v10, %v3521_v17  ;;  %v6438_v17 = vld [vmem:[#allocation6_spill] sm:$0xff] }
 0x458   : > { %v4923_v44 = vpop.eup %4922  ;;  %v3728_v25 = vadd.f32 %v5784_v28, %v3720_v54  ;;  %v3240_v28 = vadd.f32 %v6328_v8, %v3146_v62 }
 0x459   : > { %3743 = vst.msk [vmem:[%s6369_s26] sm:$0xff] %vm302_vm2, %v4923_v44 }
 0x45a   : > { %4924 = vtanh.f32 %v3728_v25  ;;  %v3334_v39 = vadd.f32 %v6342_v13, %v3240_v28  ;;  %v3510_v13 = vpop.f32.mrf.mxu2 }
 0x45b   : > { %v3691_v42 = vpop.f32.mrf.mxu0 }
 0x45c   : > { %v3708_v31 = vadd.f32 %v3691_v42, %v3614_v49  ;;  %v3428_v53 = vadd.f32 %v3414_v45, %v3334_v39  ;;  %v3607_v10 = vpop.f32.mrf.mxu3  ;;  %v3421_v42 = vpop.f32.mrf.mxu1  ;;  %v6437_v45 = vld [vmem:[#allocation5_spill] sm:$0xff] }
 0x45e   : > { %v3721_v46 = vadd.f32 %v6359_v51, %v3708_v31  ;;  %v3522_v41 = vadd.f32 %v3508_v19, %v3428_v53 }
 0x460   : > { %v4925_v48 = vpop.eup %4924  ;;  %v3729_v55 = vadd.f32 %v5803_v33, %v3721_v46  ;;  %v3241_v33 = vadd.f32 %v6334_v43, %v3147_v21  ;;  %v3616_v57 = vadd.f32 %v3602_v3, %v3522_v41  ;;  %v3148_v43 = vadd.f32 %v6338_v59, %v3052_v0 }
 0x461   : > { %3744 = vst.msk [vmem:[%s6369_s26 + $0x8] sm:$0xff] %vm302_vm2, %v4925_v48  ;;  %v3054_v59 = vadd.f32 %v6344_v37, %v6320_v1 }
 0x462   : > { %4926 = vtanh.f32 %v3729_v55  ;;  %v3335_v34 = vadd.f32 %v6350_v15, %v3241_v33  ;;  %v3242_v52 = vadd.f32 %v6340_v63, %v3148_v43  ;;  %v3513_v60 = vpop.f32.mrf.mxu2 }
 0x463   : > { %v3693_v24 = vpop.f32.mrf.mxu0  ;;  %v3149_v63 = vadd.f32 %v6346_v18, %v3054_v59 }
 0x464   : > { %v3709_v11 = vadd.f32 %v3693_v24, %v3615_v38  ;;  %v3429_v6 = vadd.f32 %v3416_v30, %v3335_v34  ;;  %v3336_v15 = vadd.f32 %v6352_v58, %v3242_v52 }
 0x465   : > { %v3243_v56 = vadd.f32 %v6348_v9, %v3149_v63  ;;  %v3609_v9 = vpop.f32.mrf.mxu3 }
 0x466   : > { %v3722_v8 = vadd.f32 %v6359_v51, %v3709_v11  ;;  %v3523_v29 = vadd.f32 %v3510_v13, %v3429_v6  ;;  %v3430_v44 = vadd.f32 %v3419_v23, %v3336_v15 }
 0x467   : > { %v3337_v12 = vadd.f32 %v6354_v2, %v3243_v56 }
 0x468   : > { %v4927_v36 = vpop.eup %4926  ;;  %v3730_v4 = vadd.f32 %v5824_v40, %v3722_v8  ;;  %v3617_v32 = vadd.f32 %v3604_v26, %v3523_v29  ;;  %v3524_v58 = vadd.f32 %v3513_v60, %v3430_v44 }
 0x469   : > { %3745 = vst.msk [vmem:[%s6369_s26 + $0x10] sm:$0xff] %vm302_vm2, %v4927_v36  ;;  %v3431_v7 = vadd.f32 %v3421_v42, %v3337_v12 }
 0x46a   : > { %4928 = vtanh.f32 %v3730_v4  ;;  %v3618_v49 = vadd.f32 %v3607_v10, %v3524_v58  ;;  %v3515_v18 = vpop.f32.mrf.mxu2 }
 0x46b   : > { %v3696_v50 = vpop.f32.mrf.mxu0  ;;  %v3525_v16 = vadd.f32 %v3515_v18, %v3431_v7 }
 0x46c   : > { %v3710_v14 = vadd.f32 %v3696_v50, %v3616_v57 }
 0x46d   : > { %v3619_v46 = vadd.f32 %v3609_v9, %v3525_v16 }
 0x46e   : > { %v3723_v5 = vadd.f32 %v6359_v51, %v3710_v14 }
 0x470   : > { %v4929_v40 = vpop.eup %4928  ;;  %v3731_v61 = vadd.f32 %v5869_v22, %v3723_v5 }
 0x471   : > { %3746 = vst.msk [vmem:[%s6369_s26 + $0x18] sm:$0xff] %vm302_vm2, %v4929_v40 }
 0x472   : > { %4930 = vtanh.f32 %v3731_v61 }
 0x473   : > { %v3698_v47 = vpop.f32.mrf.mxu0 }
 0x474   : > { %v3711_v54 = vadd.f32 %v3698_v47, %v3617_v32 }
 0x476   : > { %v3724_v22 = vadd.f32 %v6359_v51, %v3711_v54 }
 0x478   : > { %v4931_v20 = vpop.eup %4930  ;;  %v3732_v25 = vadd.f32 %v5896_v35, %v3724_v22 }
 0x479   : > { %3747 = vst.msk [vmem:[%s6369_s26 + $0x20] sm:$0xff] %vm302_vm2, %v4931_v20 }
 0x47a   : > { %4932 = vtanh.f32 %v3732_v25 }
 0x47b   : > { %v3701_v1 = vpop.f32.mrf.mxu0 }
 0x47c   : > { %v3712_v37 = vadd.f32 %v3701_v1, %v3618_v49 }
 0x47e   : > { %v3725_v31 = vadd.f32 %v6359_v51, %v3712_v37 }
 0x480   : > { %v4933_v62 = vpop.eup %4932  ;;  %v3733_v35 = vadd.f32 %v6437_v45, %v3725_v31 }
 0x481   : > { %3748 = vst.msk [vmem:[%s6369_s26 + $0x28] sm:$0xff] %vm302_vm2, %v4933_v62 }
 0x482   : > { %4934 = vtanh.f32 %v3733_v35 }
 0x483   : > { %v3703_v2 = vpop.f32.mrf.mxu0 }
 0x484   : > { %v3713_v19 = vadd.f32 %v3703_v2, %v3619_v46 }
 0x486   : > { %v3726_v48 = vadd.f32 %v6359_v51, %v3713_v19 }
 0x488   : > { %v4935_v28 = vpop.eup %4934  ;;  %v3734_v55 = vadd.f32 %v6438_v17, %v3726_v48 }
 0x489   : > { %3749 = vst.msk [vmem:[%s6369_s26 + $0x30] sm:$0xff] %vm302_vm2, %v4935_v28 }
 0x48a   : > { %4936 = vtanh.f32 %v3734_v55 }
 0x490   : > { %v4937_v3 = vpop.eup %4936 }
 0x491   : > { %3750 = vst.msk [vmem:[%s6369_s26 + $0x38] sm:$0xff] %vm302_vm2, %v4937_v3 }
 0x492 PF: > { %s17_s24 = sadd.s32 1, %s4944_s24  }
 0x493   : > { %p14_p4 = scmp.ge.s32.totalorder %s17_s24, 4  }
 0x495   :  { %16 = sbr.rel (!%p14_p4) target bundleno = 1 (0x1), region = 120 }

</bundles_post_ra>
